<compile_context>
chip_gen: v7x
topology: tpu7x:2x2x1
jax: 0.10.0
libtpu: 0.0.40
codegen_flags: <defaults>
</compile_context>

<pallas_src>
import numpy as np
import jax
import jax.numpy as jnp
from jax.experimental import pallas as pl
from jax.experimental.pallas import tpu as pltpu

# ----------------------------- configuration --------------------------------
H0, W0 = 24, 32          # synthetic "cv2.Mat" camera image (HWC, values 0..255)
S = 32                   # resize target (original module resizes to 448)
C_IN = 3
C_MID = 16               # backbone channels
NC = 8                   # number of classes (yolov5s uses 80); class 0 = "person"
DET_DIM = 5 + NC         # cx, cy, w, h, obj, class scores...
OUT_PAD = 128            # lane-dense padding of the detection row
KSIZE, STRIDE = 3, 2
OH = OW = S // STRIDE    # 16
N_DET = OH * OW          # 256 detections
K_PATCH = KSIZE * KSIZE * C_IN   # 27
K_PAD = 32               # pad im2col contraction dim (zeros; no effect on result)

SCORE_THRESH = 0.65
IOU_THRESH = 0.4


# ------------------------------ fused Pallas kernel --------------------------
def _fused_kernel(patches_ref, w1_ref, b1_ref, w2_ref, b2_ref,
                  det_ref, cls_ref, obj_ref, iou_ref):
    # --- detector: conv-as-matmul over im2col rows + SiLU, then 1x1 head ------
    # w1 already contains the folded BGR->RGB permutation and the 1/255 scale.
    h = jnp.dot(patches_ref[...], w1_ref[...],
                preferred_element_type=jnp.float32) + b1_ref[...]
    h = h * jax.nn.sigmoid(h)                                   # SiLU
    logits = jnp.dot(h, w2_ref[...],
                     preferred_element_type=jnp.float32) + b2_ref[...]   # (N, 128)

    # yolov5-style decoded output: sigmoid everywhere, box channels in pixels.
    col = jax.lax.broadcasted_iota(jnp.int32, logits.shape, 1)
    scale = jnp.where(col < 4, float(S), jnp.where(col < DET_DIM, 1.0, 0.0))
    det = jax.nn.sigmoid(logits) * scale                        # (N, 128) lane-dense
    det_ref[...] = det

    # one XLU transpose of the tile-aligned (N, 128) slab gives all the (1, N)
    # row forms needed below (boxes, objectness, class scores).
    det_t = det.T                                               # (128, N)

    # --- class argmax (first occurrence of the max, like torch.argmax) --------
    cls_t = det_t[5:5 + NC, :]                                  # (NC, N)
    ridx = jax.lax.broadcasted_iota(jnp.int32, cls_t.shape, 0).astype(jnp.float32)
    mx = jnp.max(cls_t, axis=0, keepdims=True)                  # (1, N)
    best = jnp.min(jnp.where(cls_t >= mx, ridx, float(NC)), axis=0, keepdims=True)
    cls_ref[...] = best.astype(jnp.int32)                       # (1, N)

    # --- objectness score (row 4) ---------------------------------------------
    obj_ref[...] = det_t[4:5, :]                                # (1, N)

    # --- pairwise IoU, xywh -> xyxy conversion (correctness fix) --------------
    cx, cy, bw, bh = det[:, 0:1], det[:, 1:2], det[:, 2:3], det[:, 3:4]      # (N,1)
    x1, y1 = cx - 0.5 * bw, cy - 0.5 * bh
    x2, y2 = cx + 0.5 * bw, cy + 0.5 * bh
    cxt, cyt = det_t[0:1, :], det_t[1:2, :]                                  # (1,N)
    bwt, bht = det_t[2:3, :], det_t[3:4, :]
    x1t, y1t = cxt - 0.5 * bwt, cyt - 0.5 * bht
    x2t, y2t = cxt + 0.5 * bwt, cyt + 0.5 * bht

    iw = jnp.maximum(jnp.minimum(x2, x2t) - jnp.maximum(x1, x1t), 0.0)       # (N,N)
    ih = jnp.maximum(jnp.minimum(y2, y2t) - jnp.maximum(y1, y1t), 0.0)
    inter = iw * ih
    denom = bw * bh + bwt * bht - inter + 1e-6
    # divide -> EUP approx reciprocal (frees the VALU slot in the IoU block)
    iou_ref[...] = inter * pl.reciprocal(denom, approx=True)


def run_fused(patches, w1_eff, b1, w2_pad, b2_pad):
    return pl.pallas_call(
        _fused_kernel,
        out_shape=(
            jax.ShapeDtypeStruct((N_DET, OUT_PAD), jnp.float32),   # padded detections
            jax.ShapeDtypeStruct((1, N_DET), jnp.int32),           # class argmax
            jax.ShapeDtypeStruct((1, N_DET), jnp.float32),         # objectness
            jax.ShapeDtypeStruct((N_DET, N_DET), jnp.float32),     # IoU matrix
        ),
        grid=(1,),
        in_specs=[
            pl.BlockSpec((N_DET, K_PAD), lambda i: (0, 0)),
            pl.BlockSpec((K_PAD, C_MID), lambda i: (0, 0)),
            pl.BlockSpec((1, C_MID), lambda i: (0, 0)),
            pl.BlockSpec((C_MID, OUT_PAD), lambda i: (0, 0)),
            pl.BlockSpec((1, OUT_PAD), lambda i: (0, 0)),
        ],
        out_specs=(
            pl.BlockSpec((N_DET, OUT_PAD), lambda i: (0, 0)),
            pl.BlockSpec((1, N_DET), lambda i: (0, 0)),
            pl.BlockSpec((1, N_DET), lambda i: (0, 0)),
            pl.BlockSpec((N_DET, N_DET), lambda i: (0, 0)),
        ),
        compiler_params=pltpu.CompilerParams(
            dimension_semantics=("arbitrary",)),
    )(patches, w1_eff, b1, w2_pad, b2_pad)


# ------------------------------ XLA-side glue --------------------------------
def _im2col(x):
    """x: (S, S, 3) -> (N_DET, K_PAD) im2col rows for 3x3/stride-2/pad-1 conv."""
    xpad = jnp.pad(x, ((1, 1), (1, 1), (0, 0)))
    cols = []
    for dy in range(KSIZE):
        for dx in range(KSIZE):
            cols.append(xpad[dy:dy + STRIDE * OH:STRIDE,
                             dx:dx + STRIDE * OW:STRIDE, :])      # (OH, OW, 3)
    patches = jnp.concatenate(cols, axis=-1).reshape(N_DET, K_PATCH)
    return jnp.pad(patches, ((0, 0), (0, K_PAD - K_PATCH)))


@jax.jit
def _device_forward(img_bgr, w1_eff, b1, w2_pad, b2_pad):
    # preprocess: BGR->RGB and /255 are folded into w1_eff (both commute with the
    # channel-wise linear resize), so only the resize remains here.
    # TODO(synk): torchvision v2.Resize uses antialiased bilinear; this is plain bilinear.
    resized = jax.image.resize(img_bgr, (S, S, C_IN), method="bilinear")
    patches = _im2col(resized)
    return run_fused(patches, w1_eff, b1, w2_pad, b2_pad)


def _nms_and_filter_host(det_np, cls_idx_np, obj_np, iou_np):
    """Data-dependent selection (boolean indexing + greedy NMS) — host glue."""
    if det_np.shape[0] == 0:
        return []
    person_idx = np.nonzero(cls_idx_np == 0)[0]                 # argmax == 0 (person)
    keep = person_idx[obj_np[person_idx] >= SCORE_THRESH]       # score >= 0.65
    if keep.size == 0:
        return []
    order = keep[np.argsort(-obj_np[keep], kind="stable")]      # sort by score desc
    suppressed = np.zeros(order.size, dtype=bool)
    selected = []
    for i in range(order.size):                                 # greedy NMS, iou 0.4
        if suppressed[i]:
            continue
        selected.append(order[i])
        suppressed[i + 1:] |= iou_np[order[i], order[i + 1:]] > IOU_THRESH
    selected = np.asarray(selected, dtype=np.int64)
    bboxes = det_np[selected, :4] / float(S)                    # original: / 448
    scores = det_np[selected, 4]
    indxs = cls_idx_np[selected]
    return list(zip(bboxes, scores, indxs))


def yolo_pipeline_forward(img_bgr, w1_eff, b1, w2_pad, b2_pad):
    det, cls_idx, obj, iou = _device_forward(img_bgr, w1_eff, b1, w2_pad, b2_pad)
    jax.block_until_ready((det, cls_idx, obj, iou))
    return _nms_and_filter_host(
        np.asarray(det),
        np.asarray(cls_idx)[0],
        np.asarray(obj)[0],
        np.asarray(iou),
    )


# ------------------------------------ main -----------------------------------
if __name__ == "__main__":
    key = jax.random.PRNGKey(0)
    k_img, k_w1, k_w2 = jax.random.split(key, 3)

    # synthetic BGR "cv2.Mat" image, HWC, values in [0, 255)
    img_bgr = jax.random.uniform(k_img, (H0, W0, 3), jnp.float32, 0.0, 255.0)

    # deterministic synthetic detector parameters.  w1_rgb acts on normalized
    # RGB im2col rows; fold the BGR->RGB permutation (reverse each channel
    # triplet) and the ToTensor 1/255 scale into the effective weights.
    w1_rgb = jax.random.normal(k_w1, (K_PATCH, C_MID), jnp.float32) * 0.3
    w1_eff = (w1_rgb.reshape(KSIZE * KSIZE, C_IN, C_MID)[:, ::-1, :]
              * (1.0 / 255.0)).reshape(K_PATCH, C_MID)
    w1_eff = jnp.pad(w1_eff, ((0, K_PAD - K_PATCH), (0, 0)))    # zero rows in padded K
    b1 = jnp.zeros((1, C_MID), jnp.float32)

    w2 = jax.random.normal(k_w2, (C_MID, DET_DIM), jnp.float32) * 0.3
    w2_pad = jnp.pad(w2, ((0, 0), (0, OUT_PAD - DET_DIM)))      # lane-dense head
    b2 = (jnp.zeros((DET_DIM,), jnp.float32)
          .at[4].set(2.0)          # bias objectness high so some detections pass 0.65
          .at[5].set(1.5))         # bias class 0 ("person") so the person filter keeps rows
    b2_pad = jnp.pad(b2, (0, OUT_PAD - DET_DIM)).reshape(1, OUT_PAD)

    detections = yolo_pipeline_forward(img_bgr, w1_eff, b1, w2_pad, b2_pad)
    _ = len(detections)  # force evaluation of host postprocess
    print("KERNEL_OK")
</pallas_src>

<mosaic_0001>
module attributes {stable_mosaic.version = 11 : i64} {
  func.func @_fused_kernel(%arg0: i32, %arg1: memref<256x32xf32, #tpu.memory_space<vmem>>, %arg2: memref<32x16xf32, #tpu.memory_space<vmem>>, %arg3: memref<1x16xf32, #tpu.memory_space<vmem>>, %arg4: memref<16x128xf32, #tpu.memory_space<vmem>>, %arg5: memref<1x128xf32, #tpu.memory_space<vmem>>, %arg6: memref<256x128xf32, #tpu.memory_space<vmem>>, %arg7: memref<1x256xi32, #tpu.memory_space<vmem>>, %arg8: memref<1x256xf32, #tpu.memory_space<vmem>>, %arg9: memref<256x256xf32, #tpu.memory_space<vmem>>) attributes {dimension_semantics = [#tpu.dimension_semantics<arbitrary>], iteration_bounds = array<i64: 1>, scalar_prefetch = 0 : i64, scratch_operands = 0 : i64, tpu.core_type = #tpu.core_type<tc>, window_params = [{pipeline_mode = #tpu.pipeline_mode<synchronous>, transform_indices = @transform_0, window_bounds = array<i64: 256, 32>}, {pipeline_mode = #tpu.pipeline_mode<synchronous>, transform_indices = @transform_1, window_bounds = array<i64: 32, 16>}, {pipeline_mode = #tpu.pipeline_mode<synchronous>, transform_indices = @transform_2, window_bounds = array<i64: 1, 16>}, {pipeline_mode = #tpu.pipeline_mode<synchronous>, transform_indices = @transform_3, window_bounds = array<i64: 16, 128>}, {pipeline_mode = #tpu.pipeline_mode<synchronous>, transform_indices = @transform_4, window_bounds = array<i64: 1, 128>}, {pipeline_mode = #tpu.pipeline_mode<synchronous>, transform_indices = @transform_5, window_bounds = array<i64: 256, 128>}, {pipeline_mode = #tpu.pipeline_mode<synchronous>, transform_indices = @transform_6, window_bounds = array<i64: 1, 256>}, {pipeline_mode = #tpu.pipeline_mode<synchronous>, transform_indices = @transform_7, window_bounds = array<i64: 1, 256>}, {pipeline_mode = #tpu.pipeline_mode<synchronous>, transform_indices = @transform_8, window_bounds = array<i64: 256, 256>}]} {
    %c0 = arith.constant 0 : index
    %c0_0 = arith.constant 0 : index
    %0 = vector.load %arg1[%c0, %c0_0] : memref<256x32xf32, #tpu.memory_space<vmem>>, vector<256x32xf32>
    %c0_1 = arith.constant 0 : index
    %c0_2 = arith.constant 0 : index
    %1 = vector.load %arg2[%c0_1, %c0_2] : memref<32x16xf32, #tpu.memory_space<vmem>>, vector<32x16xf32>
    %cst = arith.constant dense<0.000000e+00> : vector<256x16xf32>
    %2 = tpu.matmul %0, %1, %cst {dimension_numbers = #tpu.dot_dimension_numbers<[1], [0], [0], [1], [0, 0, 1, 1], [], []>} : vector<256x32xf32>, vector<32x16xf32>, vector<256x16xf32> -> vector<256x16xf32>
    %c0_3 = arith.constant 0 : index
    %c0_4 = arith.constant 0 : index
    %3 = vector.load %arg3[%c0_3, %c0_4] : memref<1x16xf32, #tpu.memory_space<vmem>>, vector<1x16xf32>
    %4 = vector.broadcast %3 : vector<1x16xf32> to vector<256x16xf32>
    %5 = arith.addf %2, %4 : vector<256x16xf32>
    %6 = arith.negf %5 : vector<256x16xf32>
    %7 = math.exp %6 : vector<256x16xf32>
    %cst_5 = arith.constant 1.000000e+00 : f32
    %8 = vector.broadcast %cst_5 : f32 to vector<256x16xf32>
    %9 = arith.addf %8, %7 : vector<256x16xf32>
    %10 = arith.divf %8, %9 : vector<256x16xf32>
    %11 = arith.mulf %5, %10 : vector<256x16xf32>
    %c0_6 = arith.constant 0 : index
    %c0_7 = arith.constant 0 : index
    %12 = vector.load %arg4[%c0_6, %c0_7] : memref<16x128xf32, #tpu.memory_space<vmem>>, vector<16x128xf32>
    %cst_8 = arith.constant dense<0.000000e+00> : vector<256x128xf32>
    %13 = tpu.matmul %11, %12, %cst_8 {dimension_numbers = #tpu.dot_dimension_numbers<[1], [0], [0], [1], [0, 0, 1, 1], [], []>} : vector<256x16xf32>, vector<16x128xf32>, vector<256x128xf32> -> vector<256x128xf32>
    %c0_9 = arith.constant 0 : index
    %c0_10 = arith.constant 0 : index
    %14 = vector.load %arg5[%c0_9, %c0_10] : memref<1x128xf32, #tpu.memory_space<vmem>>, vector<1x128xf32>
    %15 = vector.broadcast %14 : vector<1x128xf32> to vector<256x128xf32>
    %16 = arith.addf %13, %15 : vector<256x128xf32>
    %17 = tpu.iota {dimensions = array<i32: 1>} : vector<256x128xi32>
    %c4_i32 = arith.constant 4 : i32
    %18 = vector.broadcast %c4_i32 : i32 to vector<256x128xi32>
    %19 = arith.cmpi slt, %17, %18 : vector<256x128xi32>
    %c13_i32 = arith.constant 13 : i32
    %20 = vector.broadcast %c13_i32 : i32 to vector<256x128xi32>
    %21 = arith.cmpi slt, %17, %20 : vector<256x128xi32>
    %cst_11 = arith.constant 1.000000e+00 : f32
    %cst_12 = arith.constant 0.000000e+00 : f32
    %22 = vector.broadcast %cst_11 : f32 to vector<256x128xf32>
    %23 = vector.broadcast %cst_12 : f32 to vector<256x128xf32>
    %24 = arith.select %21, %22, %23 : vector<256x128xi1>, vector<256x128xf32>
    %cst_13 = arith.constant 3.200000e+01 : f32
    %25 = vector.broadcast %cst_13 : f32 to vector<256x128xf32>
    %26 = arith.select %19, %25, %24 : vector<256x128xi1>, vector<256x128xf32>
    %27 = arith.negf %16 : vector<256x128xf32>
    %28 = math.exp %27 : vector<256x128xf32>
    %cst_14 = arith.constant 1.000000e+00 : f32
    %29 = vector.broadcast %cst_14 : f32 to vector<256x128xf32>
    %30 = arith.addf %29, %28 : vector<256x128xf32>
    %31 = arith.divf %29, %30 : vector<256x128xf32>
    %32 = arith.mulf %31, %26 : vector<256x128xf32>
    %c0_15 = arith.constant 0 : index
    %c0_16 = arith.constant 0 : index
    %33 = vector.load %arg6[%c0_15, %c0_16] : memref<256x128xf32, #tpu.memory_space<vmem>>, vector<256x128xf32>
    tpu.vector_store %arg6[%c0_15, %c0_16], %32 {strides = array<i32>} : memref<256x128xf32, #tpu.memory_space<vmem>>, vector<256x128xf32>,
    %34 = tpu.transpose %32, [1, 0] : vector<256x128xf32> -> vector<128x256xf32>
    %35 = vector.extract_strided_slice %34 {offsets = [5, 0], sizes = [8, 256], strides = [1, 1]} : vector<128x256xf32> to vector<8x256xf32>
    %36 = tpu.iota {dimensions = array<i32: 0>} : vector<8x256xi32>
    %37 = arith.sitofp %36 : vector<8x256xi32> to vector<8x256xf32>
    %cst_17 = arith.constant dense<0xFF800000> : vector<256xf32>
    %38 = vector.multi_reduction <maximumf>, %35, %cst_17 [0] : vector<8x256xf32> to vector<256xf32>
    %39 = vector.shape_cast %38 : vector<256xf32> to vector<1x256xf32>
    %40 = vector.broadcast %39 : vector<1x256xf32> to vector<8x256xf32>
    %41 = arith.cmpf oge, %35, %40 : vector<8x256xf32>
    %cst_18 = arith.constant 8.000000e+00 : f32
    %42 = vector.broadcast %cst_18 : f32 to vector<8x256xf32>
    %43 = arith.select %41, %37, %42 : vector<8x256xi1>, vector<8x256xf32>
    %cst_19 = arith.constant dense<0x7F800000> : vector<256xf32>
    %44 = vector.multi_reduction <minimumf>, %43, %cst_19 [0] : vector<8x256xf32> to vector<256xf32>
    %45 = vector.shape_cast %44 : vector<256xf32> to vector<1x256xf32>
    %46 = arith.fptosi %45 : vector<1x256xf32> to vector<1x256xi32>
    %c0_20 = arith.constant 0 : index
    %c0_21 = arith.constant 0 : index
    %47 = vector.load %arg7[%c0_20, %c0_21] : memref<1x256xi32, #tpu.memory_space<vmem>>, vector<1x256xi32>
    tpu.vector_store %arg7[%c0_20, %c0_21], %46 {strides = array<i32>} : memref<1x256xi32, #tpu.memory_space<vmem>>, vector<1x256xi32>,
    %48 = vector.extract_strided_slice %34 {offsets = [4, 0], sizes = [1, 256], strides = [1, 1]} : vector<128x256xf32> to vector<1x256xf32>
    %c0_22 = arith.constant 0 : index
    %c0_23 = arith.constant 0 : index
    %49 = vector.load %arg8[%c0_22, %c0_23] : memref<1x256xf32, #tpu.memory_space<vmem>>, vector<1x256xf32>
    tpu.vector_store %arg8[%c0_22, %c0_23], %48 {strides = array<i32>} : memref<1x256xf32, #tpu.memory_space<vmem>>, vector<1x256xf32>,
    %50 = vector.extract_strided_slice %32 {offsets = [0, 0], sizes = [256, 1], strides = [1, 1]} : vector<256x128xf32> to vector<256x1xf32>
    %51 = vector.extract_strided_slice %32 {offsets = [0, 1], sizes = [256, 1], strides = [1, 1]} : vector<256x128xf32> to vector<256x1xf32>
    %52 = vector.extract_strided_slice %32 {offsets = [0, 2], sizes = [256, 1], strides = [1, 1]} : vector<256x128xf32> to vector<256x1xf32>
    %53 = vector.extract_strided_slice %32 {offsets = [0, 3], sizes = [256, 1], strides = [1, 1]} : vector<256x128xf32> to vector<256x1xf32>
    %cst_24 = arith.constant 5.000000e-01 : f32
    %54 = vector.broadcast %cst_24 : f32 to vector<256x1xf32>
    %55 = arith.mulf %54, %52 : vector<256x1xf32>
    %56 = arith.subf %50, %55 : vector<256x1xf32>
    %cst_25 = arith.constant 5.000000e-01 : f32
    %57 = vector.broadcast %cst_25 : f32 to vector<256x1xf32>
    %58 = arith.mulf %57, %53 : vector<256x1xf32>
    %59 = arith.subf %51, %58 : vector<256x1xf32>
    %cst_26 = arith.constant 5.000000e-01 : f32
    %60 = vector.broadcast %cst_26 : f32 to vector<256x1xf32>
    %61 = arith.mulf %60, %52 : vector<256x1xf32>
    %62 = arith.addf %50, %61 : vector<256x1xf32>
    %cst_27 = arith.constant 5.000000e-01 : f32
    %63 = vector.broadcast %cst_27 : f32 to vector<256x1xf32>
    %64 = arith.mulf %63, %53 : vector<256x1xf32>
    %65 = arith.addf %51, %64 : vector<256x1xf32>
    %66 = vector.extract_strided_slice %34 {offsets = [0, 0], sizes = [1, 256], strides = [1, 1]} : vector<128x256xf32> to vector<1x256xf32>
    %67 = vector.extract_strided_slice %34 {offsets = [1, 0], sizes = [1, 256], strides = [1, 1]} : vector<128x256xf32> to vector<1x256xf32>
    %68 = vector.extract_strided_slice %34 {offsets = [2, 0], sizes = [1, 256], strides = [1, 1]} : vector<128x256xf32> to vector<1x256xf32>
    %69 = vector.extract_strided_slice %34 {offsets = [3, 0], sizes = [1, 256], strides = [1, 1]} : vector<128x256xf32> to vector<1x256xf32>
    %cst_28 = arith.constant 5.000000e-01 : f32
    %70 = vector.broadcast %cst_28 : f32 to vector<1x256xf32>
    %71 = arith.mulf %70, %68 : vector<1x256xf32>
    %72 = arith.subf %66, %71 : vector<1x256xf32>
    %cst_29 = arith.constant 5.000000e-01 : f32
    %73 = vector.broadcast %cst_29 : f32 to vector<1x256xf32>
    %74 = arith.mulf %73, %69 : vector<1x256xf32>
    %75 = arith.subf %67, %74 : vector<1x256xf32>
    %cst_30 = arith.constant 5.000000e-01 : f32
    %76 = vector.broadcast %cst_30 : f32 to vector<1x256xf32>
    %77 = arith.mulf %76, %68 : vector<1x256xf32>
    %78 = arith.addf %66, %77 : vector<1x256xf32>
    %cst_31 = arith.constant 5.000000e-01 : f32
    %79 = vector.broadcast %cst_31 : f32 to vector<1x256xf32>
    %80 = arith.mulf %79, %69 : vector<1x256xf32>
    %81 = arith.addf %67, %80 : vector<1x256xf32>
    %82 = vector.broadcast %62 : vector<256x1xf32> to vector<256x256xf32>
    %83 = vector.broadcast %78 : vector<1x256xf32> to vector<256x256xf32>
    %84 = arith.minimumf %82, %83 : vector<256x256xf32>
    %85 = vector.broadcast %56 : vector<256x1xf32> to vector<256x256xf32>
    %86 = vector.broadcast %72 : vector<1x256xf32> to vector<256x256xf32>
    %87 = arith.maximumf %85, %86 : vector<256x256xf32>
    %88 = arith.subf %84, %87 : vector<256x256xf32>
    %cst_32 = arith.constant 0.000000e+00 : f32
    %89 = vector.broadcast %cst_32 : f32 to vector<256x256xf32>
    %90 = arith.maximumf %88, %89 : vector<256x256xf32>
    %91 = vector.broadcast %65 : vector<256x1xf32> to vector<256x256xf32>
    %92 = vector.broadcast %81 : vector<1x256xf32> to vector<256x256xf32>
    %93 = arith.minimumf %91, %92 : vector<256x256xf32>
    %94 = vector.broadcast %59 : vector<256x1xf32> to vector<256x256xf32>
    %95 = vector.broadcast %75 : vector<1x256xf32> to vector<256x256xf32>
    %96 = arith.maximumf %94, %95 : vector<256x256xf32>
    %97 = arith.subf %93, %96 : vector<256x256xf32>
    %cst_33 = arith.constant 0.000000e+00 : f32
    %98 = vector.broadcast %cst_33 : f32 to vector<256x256xf32>
    %99 = arith.maximumf %97, %98 : vector<256x256xf32>
    %100 = arith.mulf %90, %99 : vector<256x256xf32>
    %101 = arith.mulf %52, %53 : vector<256x1xf32>
    %102 = arith.mulf %68, %69 : vector<1x256xf32>
    %103 = vector.broadcast %101 : vector<256x1xf32> to vector<256x256xf32>
    %104 = vector.broadcast %102 : vector<1x256xf32> to vector<256x256xf32>
    %105 = arith.addf %103, %104 : vector<256x256xf32>
    %106 = arith.subf %105, %100 : vector<256x256xf32>
    %cst_34 = arith.constant 9.99999997E-7 : f32
    %107 = vector.broadcast %cst_34 : f32 to vector<256x256xf32>
    %108 = arith.addf %106, %107 : vector<256x256xf32>
    %109 = tpu.reciprocal %108 {approx = true} : vector<256x256xf32> -> vector<256x256xf32>
    %110 = arith.mulf %100, %109 : vector<256x256xf32>
    %c0_35 = arith.constant 0 : index
    %c0_36 = arith.constant 0 : index
    %111 = vector.load %arg9[%c0_35, %c0_36] : memref<256x256xf32, #tpu.memory_space<vmem>>, vector<256x256xf32>
    tpu.vector_store %arg9[%c0_35, %c0_36], %110 {strides = array<i32>} : memref<256x256xf32, #tpu.memory_space<vmem>>, vector<256x256xf32>,
    return
  }
  func.func @transform_0(%arg0: i32) -> (i32, i32) {
    %c0_i32 = arith.constant 0 : i32
    %c0_i32_0 = arith.constant 0 : i32
    %c0_i32_1 = arith.constant 0 : i32
    return %c0_i32, %c0_i32_0 : i32, i32
  }
  func.func @transform_1(%arg0: i32) -> (i32, i32) {
    %c0_i32 = arith.constant 0 : i32
    %c0_i32_0 = arith.constant 0 : i32
    %c0_i32_1 = arith.constant 0 : i32
    return %c0_i32, %c0_i32_0 : i32, i32
  }
  func.func @transform_2(%arg0: i32) -> (i32, i32) {
    %c0_i32 = arith.constant 0 : i32
    %c0_i32_0 = arith.constant 0 : i32
    %c0_i32_1 = arith.constant 0 : i32
    return %c0_i32, %c0_i32_0 : i32, i32
  }
  func.func @transform_3(%arg0: i32) -> (i32, i32) {
    %c0_i32 = arith.constant 0 : i32
    %c0_i32_0 = arith.constant 0 : i32
    %c0_i32_1 = arith.constant 0 : i32
    return %c0_i32, %c0_i32_0 : i32, i32
  }
  func.func @transform_4(%arg0: i32) -> (i32, i32) {
    %c0_i32 = arith.constant 0 : i32
    %c0_i32_0 = arith.constant 0 : i32
    %c0_i32_1 = arith.constant 0 : i32
    return %c0_i32, %c0_i32_0 : i32, i32
  }
  func.func @transform_5(%arg0: i32) -> (i32, i32) {
    %c0_i32 = arith.constant 0 : i32
    %c0_i32_0 = arith.constant 0 : i32
    %c0_i32_1 = arith.constant 0 : i32
    return %c0_i32, %c0_i32_0 : i32, i32
  }
  func.func @transform_6(%arg0: i32) -> (i32, i32) {
    %c0_i32 = arith.constant 0 : i32
    %c0_i32_0 = arith.constant 0 : i32
    %c0_i32_1 = arith.constant 0 : i32
    return %c0_i32, %c0_i32_0 : i32, i32
  }
  func.func @transform_7(%arg0: i32) -> (i32, i32) {
    %c0_i32 = arith.constant 0 : i32
    %c0_i32_0 = arith.constant 0 : i32
    %c0_i32_1 = arith.constant 0 : i32
    return %c0_i32, %c0_i32_0 : i32, i32
  }
  func.func @transform_8(%arg0: i32) -> (i32, i32) {
    %c0_i32 = arith.constant 0 : i32
    %c0_i32_0 = arith.constant 0 : i32
    %c0_i32_1 = arith.constant 0 : i32
    return %c0_i32, %c0_i32_0 : i32, i32
  }
}

</mosaic_0001>

<bundles_post_ra>
// kernel: _device_forward.1
= control target key start
LH: loop header
LB: loop body
LE: loop exit
PB: predicated region body
PF: predicated region fallthrough
CT: control target
= control target key end

     0   :  { %14 = vsyncpa [#allocation3], 0  ;;  %s6761_s0 = inlined_call_operand.vmem [shape: f32[256,32], index: 0, kind: input, shape index: {}]   ;;  %s6762_s1 = inlined_call_operand.vmem [shape: f32[32,16], index: 1, kind: input, shape index: {}]   ;;  %s6763_s2 = inlined_call_operand.vmem [shape: f32[1,16], index: 2, kind: input, shape index: {}]   ;;  %s6764_s3 = inlined_call_operand.vmem [shape: f32[16,128], index: 3, kind: input, shape index: {}]   ;;  %s6765_s4 = inlined_call_operand.vmem [shape: f32[1,128], index: 4, kind: input, shape index: {}]   ;;  %s6766_s5 = inlined_call_operand.hbm [shape: f32[256,128], index: 5, kind: output, shape index: {0}]   ;;  %s6767_s6 = inlined_call_operand.hbm [shape: s32[1,256], index: 6, kind: output, shape index: {1}]   ;;  %s6768_s7 = inlined_call_operand.hbm [shape: f32[1,256], index: 7, kind: output, shape index: {2}]   ;;  %s6769_s8 = inlined_call_operand.hbm [shape: f32[256,256], index: 8, kind: output, shape index: {3}]  }
   0x1   :  { %15 = vsyncpa [#allocation5], 0  ;;  %v59_v0 = vld [vmem:[%s6762_s1] sm:$0xff]  ;;  %v60_v1 = vld [vmem:[%s6762_s1 + $0x8] sm:$0xff]  ;;  %vm70_vm0 = vcmask 261120  }
   0x2   :  { %v61_v2 = vld [vmem:[%s6762_s1 + $0x10] sm:$0xff]  ;;  %v3871_v3 = vpack.c.bf16 %v60_v1, %v59_v0  ;;  %v62_v4 = vld [vmem:[%s6762_s1 + $0x18] sm:$0xff]  ;;  %v27_v5 = vld [vmem:[%s6761_s0] sm:$0xff] }
   0x3   :  { %v3875_v6 = vpack.c.bf16 %v62_v4, %v61_v2  ;;  %3771 = vmatprep.mubr.msk.f32.mxu0 %vm70_vm0, %v27_v5  ;;  %v28_v7 = vld [vmem:[%s6761_s0 + $0x8] sm:$0xff]  ;;  %v29_v8 = vld [vmem:[%s6761_s0 + $0x10] sm:$0xff]  ;;  %v30_v9 = vld [vmem:[%s6761_s0 + $0x18] sm:$0xff] }
   0x4   :  { %3872 = vmatprep.subr.bf16.mxu0 %v3871_v3 }
   0x5   :  { %3874 = vmatpush3.bf16.msra.mxu0 %v3871_v3 }
   0x6   :  { %3876 = vmatprep.subr.bf16.mxu0 %v3875_v6 }
   0x9   :  { %3878 = vmatpush3.bf16.msra.mxu0 %v3875_v6 }
   0xc   :  { %3772 = vmatmul.mubr.msk.f32.vlgmr.msra.gmra.mrb[0].mxu0 %vm70_vm0, %v28_v7 }
   0xd   :  { %3774 = vmatprep.mubr.msk.f32.mxu0 %vm70_vm0, %v29_v8 }
   0xe   :  { %16 = vsyncpa [#allocation8], 0  ;;  %v31_v10 = vld [vmem:[%s6761_s0 + $0x20] sm:$0xff]  ;;  %v32_v11 = vld [vmem:[%s6761_s0 + $0x28] sm:$0xff]  ;;  %vm625_vm1 = vcmask 130048   ;;  %vm1276_vm4 = vcmask 1047557  }
   0xf   :  { %v33_v12 = vld [vmem:[%s6761_s0 + $0x30] sm:$0xff]  ;;  %v34_v13 = vld [vmem:[%s6761_s0 + $0x38] sm:$0xff]  ;;  %v35_v14 = vld [vmem:[%s6761_s0 + $0x40] sm:$0xff]  ;;  %vm1278_vm5 = vcmask 1044480   ;;  %s4505_s14 = smov [#allocation4]   ;;  %s4506_s16 = smov [#allocation2]  }
  0x10   :  { %3775 = vmatmul.mubr.msk.f32.gmra.mrb[2].mxu0 %vm70_vm0, %v30_v9  ;;  %v36_v15 = vld [vmem:[%s6761_s0 + $0x48] sm:$0xff]  ;;  %v37_v16 = vld [vmem:[%s6761_s0 + $0x50] sm:$0xff]  ;;  %v38_v17 = vld [vmem:[%s6761_s0 + $0x58] sm:$0xff]  ;;  %s3522_s15 = sshll.u32 %s4505_s14, 4  ;;  %s3509_s17 = sshll.u32 %s4506_s16, 4  ;;  %s3523_s15 = int_to_ptr.vmem [resolvable:$true] %s3522_s15  ;;  %s3510_s17 = int_to_ptr.vmem [resolvable:$true] %s3509_s17 }
  0x11   :  { %3777 = vmatprep.mubr.msk.f32.mxu0 %vm70_vm0, %v31_v10  ;;  %v39_v18 = vld [vmem:[%s6761_s0 + $0x60] sm:$0xff]  ;;  %v40_v19 = vld [vmem:[%s6761_s0 + $0x68] sm:$0xff]  ;;  %v41_v20 = vld [vmem:[%s6761_s0 + $0x70] sm:$0xff]  ;;  %s4404_s18 = scalar_lea.vmem %s3523_s15, 32  ;;  %p4409_p1 = scmp.lt.s32.totalorder %s3523_s15, %s3523_s15 }
  0x12   :  { %v42_v21 = vld [vmem:[%s6761_s0 + $0x78] sm:$0xff]  ;;  %v43_v22 = vld [vmem:[%s6761_s0 + $0x80] sm:$0xff]  ;;  %v44_v23 = vld [vmem:[%s6761_s0 + $0x88] sm:$0xff]  ;;  %p4405_p0 = scmp.ne.s32.totalorder %s3523_s15, %s4404_s18  ;;  %p4410_p2 = scmp.lt.s32.totalorder %s4404_s18, %s4404_s18 }
  0x13   :  { %v45_v24 = vld [vmem:[%s6761_s0 + $0x90] sm:$0xff]  ;;  %v46_v25 = vld [vmem:[%s6761_s0 + $0x98] sm:$0xff]  ;;  %v47_v26 = vld [vmem:[%s6761_s0 + $0xa0] sm:$0xff] }
  0x14   :  { %3778 = vmatmul.mubr.msk.f32.gmra.mrb[4].mxu0 %vm70_vm0, %v32_v11  ;;  %v48_v27 = vld [vmem:[%s6761_s0 + $0xa8] sm:$0xff]  ;;  %v49_v28 = vld [vmem:[%s6761_s0 + $0xb0] sm:$0xff]  ;;  %v50_v29 = vld [vmem:[%s6761_s0 + $0xb8] sm:$0xff]  ;;  %p4411_p3 = por %p4410_p2, %p4409_p1 }
  0x15   :  { %3780 = vmatprep.mubr.msk.f32.mxu0 %vm70_vm0, %v33_v12  ;;  %v51_v30 = vld [vmem:[%s6761_s0 + $0xc0] sm:$0xff]  ;;  %v52_v31 = vld [vmem:[%s6761_s0 + $0xc8] sm:$0xff]  ;;  %v53_v32 = vld [vmem:[%s6761_s0 + $0xd0] sm:$0xff] }
  0x16   :  { %v54_v33 = vld [vmem:[%s6761_s0 + $0xd8] sm:$0xff]  ;;  %v55_v34 = vld [vmem:[%s6761_s0 + $0xe0] sm:$0xff]  ;;  %v56_v35 = vld [vmem:[%s6761_s0 + $0xe8] sm:$0xff]  ;;  %p4412_p4 = pnand %p4411_p3, %p4405_p0 }
  0x17   :  { %v57_v36 = vld [vmem:[%s6761_s0 + $0xf0] sm:$0xff]  ;;  %v58_v37 = vld [vmem:[%s6761_s0 + $0xf8] sm:$0xff]  ;;  %v616_v38 = vld [vmem:[%s6764_s3] sm:$0xff] }
  0x18   :  { %3781 = vmatmul.mubr.msk.f32.gmra.mrb[6].mxu0 %vm70_vm0, %v34_v13  ;;  %v617_v39 = vld [vmem:[%s6764_s3 + $0x8] sm:$0xff]  ;;  %v4707_v41 = vld [vmem:[%s6763_s2] ss:$0 sm:$0xff]  ;;  %s4499_s3 = smov 127  }
  0x19   :  { %3783 = vmatprep.mubr.msk.f32.mxu0 %vm70_vm0, %v35_v14  ;;  %v3879_v40 = vpack.c.bf16 %v617_v39, %v616_v38 }
  0x1b   :  { %3880 = vmatprep.subr.bf16.mxu1 %v3879_v40 }
  0x1c   :  { %3784 = vmatmul.mubr.msk.f32.gmra.mrb[8].mxu0 %vm70_vm0, %v36_v15  ;;  %3882 = vmatpush3.bf16.msra.mxu1 %v3879_v40 }
  0x1d   :  { %3786 = vmatprep.mubr.msk.f32.mxu0 %vm70_vm0, %v37_v16 }
  0x20   :  { %3787 = vmatmul.mubr.msk.f32.gmra.mrb[10].mxu0 %vm70_vm0, %v38_v17 }
  0x21   :  { %3789 = vmatprep.mubr.msk.f32.mxu0 %vm70_vm0, %v39_v18 }
  0x24   :  { %3790 = vmatmul.mubr.msk.f32.gmra.mrb[12].mxu0 %vm70_vm0, %v40_v19 }
  0x25   :  { %3792 = vmatprep.mubr.msk.f32.mxu0 %vm70_vm0, %v41_v20 }
  0x28   :  { %3793 = vmatmul.mubr.msk.f32.gmra.mrb[14].mxu0 %vm70_vm0, %v42_v21 }
  0x29   :  { %3795 = vmatprep.mubr.msk.f32.mxu0 %vm70_vm0, %v43_v22 }
  0x2c   :  { %3796 = vmatmul.mubr.msk.f32.gmra.mrb[16].mxu0 %vm70_vm0, %v44_v23 }
  0x2d   :  { %3798 = vmatprep.mubr.msk.f32.mxu0 %vm70_vm0, %v45_v24 }
  0x30   :  { %3799 = vmatmul.mubr.msk.f32.gmra.mrb[18].mxu0 %vm70_vm0, %v46_v25 }
  0x31   :  { %3801 = vmatprep.mubr.msk.f32.mxu0 %vm70_vm0, %v47_v26 }
  0x34   :  { %3802 = vmatmul.mubr.msk.f32.gmra.mrb[20].mxu0 %vm70_vm0, %v48_v27 }
  0x35   :  { %3804 = vmatprep.mubr.msk.f32.mxu0 %vm70_vm0, %v49_v28 }
  0x38   :  { %3805 = vmatmul.mubr.msk.f32.gmra.mrb[22].mxu0 %vm70_vm0, %v50_v29 }
  0x39   :  { %3807 = vmatprep.mubr.msk.f32.mxu0 %vm70_vm0, %v51_v30 }
  0x3c   :  { %3808 = vmatmul.mubr.msk.f32.gmra.mrb[24].mxu0 %vm70_vm0, %v52_v31 }
  0x3d   :  { %3810 = vmatprep.mubr.msk.f32.mxu0 %vm70_vm0, %v53_v32 }
  0x40   :  { %3811 = vmatmul.mubr.msk.f32.gmra.mrb[26].mxu0 %vm70_vm0, %v54_v33 }
  0x41   :  { %3813 = vmatprep.mubr.msk.f32.mxu0 %vm70_vm0, %v55_v34 }
  0x44   :  { %3814 = vmatmul.mubr.msk.f32.gmra.mrb[28].mxu0 %vm70_vm0, %v56_v35 }
  0x45   :  { %3816 = vmatprep.mubr.msk.f32.mxu0 %vm70_vm0, %v57_v36 }
  0x48   :  { %3817 = vmatmul.mubr.msk.f32.gmra.mrb[30].mxu0 %vm70_vm0, %v58_v37 }
  0xdf   :  { %v3773_v42 = vpop.f32.mrb[0].mxu0 }
  0xe0   :  { %v4710_v43 = vadd.f32 %v3773_v42, %v4707_v41  ;;  %v233_v44 = vpop.f32.mrb[1].mxu0 }
  0xe1   :  { %v4713_v45 = vadd.f32 %v4707_v41, %v233_v44 }
  0xe2   :  { %v3597_v46 = vmul.f32 -1.442695, %v4710_v43 }
  0xe3   :  { %v3596_v47 = vmul.f32 -1.442695, %v4713_v45  ;;  %v3776_v48 = vpop.f32.mrb[2].mxu0 }
  0xe4   :  { %3999 = vpow2.f32 %v3597_v46  ;;  %v4718_v49 = vadd.f32 %v3776_v48, %v4707_v41  ;;  %v243_v50 = vpop.f32.mrb[3].mxu0 }
  0xe5   :  { %4001 = vpow2.f32 %v3596_v47  ;;  %v4721_v51 = vadd.f32 %v4707_v41, %v243_v50 }
  0xe6   :  { %v3599_v52 = vmul.f32 -1.442695, %v4718_v49 }
  0xe7   :  { %v3598_v53 = vmul.f32 -1.442695, %v4721_v51  ;;  %v3779_v54 = vpop.f32.mrb[4].mxu0 }
  0xe8   :  { %4003 = vpow2.f32 %v3599_v52  ;;  %v4726_v55 = vadd.f32 %v3779_v54, %v4707_v41  ;;  %v253_v56 = vpop.f32.mrb[5].mxu0 }
  0xe9   :  { %4005 = vpow2.f32 %v3598_v53  ;;  %v4729_v57 = vadd.f32 %v4707_v41, %v253_v56 }
  0xea   :  { %v3601_v58 = vmul.f32 -1.442695, %v4726_v55 }
  0xeb   :  { %v3600_v59 = vmul.f32 -1.442695, %v4729_v57  ;;  %v3782_v60 = vpop.f32.mrb[6].mxu0 }
  0xec   :  { %4007 = vpow2.f32 %v3601_v58  ;;  %v4734_v61 = vadd.f32 %v3782_v60, %v4707_v41  ;;  %v263_v62 = vpop.f32.mrb[7].mxu0 }
  0xed   :  { %4009 = vpow2.f32 %v3600_v59  ;;  %v4737_v63 = vadd.f32 %v4707_v41, %v263_v62 }
  0xee   :  { %v4000_v0 = vpop.eup %3999  ;;  %v3603_v1 = vmul.f32 -1.442695, %v4734_v61 }
  0xef   :  { %v4002_v2 = vpop.eup %4001  ;;  %v489_v3 = vadd.f32 1.0, %v4000_v0  ;;  %v3602_v4 = vmul.f32 -1.442695, %v4737_v63  ;;  %v3785_v5 = vpop.f32.mrb[8].mxu0 }
  0xf0   :  { %v488_v6 = vadd.f32 1.0, %v4002_v2  ;;  %4011 = vpow2.f32 %v3603_v1  ;;  %v4742_v7 = vadd.f32 %v3785_v5, %v4707_v41  ;;  %v273_v8 = vpop.f32.mrb[9].mxu0 }
  0xf1   :  { %4013 = vrcp.f32 %v489_v3  ;;  %v4745_v9 = vadd.f32 %v4707_v41, %v273_v8 }
  0xf2   :  { %v4004_v10 = vpop.eup %4003  ;;  %4015 = vrcp.f32 %v488_v6  ;;  %v3605_v11 = vmul.f32 -1.442695, %v4742_v7 }
  0xf3   :  { %v4006_v12 = vpop.eup %4005  ;;  %v491_v13 = vadd.f32 1.0, %v4004_v10  ;;  %4017 = vpow2.f32 %v3602_v4  ;;  %v3604_v14 = vmul.f32 -1.442695, %v4745_v9  ;;  %v3788_v15 = vpop.f32.mrb[10].mxu0 }
  0xf4   :  { %v490_v16 = vadd.f32 1.0, %v4006_v12  ;;  %4019 = vpow2.f32 %v3605_v11  ;;  %v4750_v17 = vadd.f32 %v3788_v15, %v4707_v41  ;;  %v283_v18 = vpop.f32.mrb[11].mxu0 }
  0xf5   :  { %4021 = vrcp.f32 %v491_v13  ;;  %v4753_v19 = vadd.f32 %v4707_v41, %v283_v18 }
  0xf6   :  { %v4008_v20 = vpop.eup %4007  ;;  %4023 = vrcp.f32 %v490_v16  ;;  %v3607_v21 = vmul.f32 -1.442695, %v4750_v17 }
  0xf7   :  { %v4010_v22 = vpop.eup %4009  ;;  %v493_v23 = vadd.f32 1.0, %v4008_v20  ;;  %4025 = vpow2.f32 %v3604_v14  ;;  %v3606_v24 = vmul.f32 -1.442695, %v4753_v19  ;;  %v3791_v25 = vpop.f32.mrb[12].mxu0 }
  0xf8   :  { %v492_v26 = vadd.f32 1.0, %v4010_v22  ;;  %4027 = vpow2.f32 %v3607_v21  ;;  %v4758_v27 = vadd.f32 %v3791_v25, %v4707_v41  ;;  %v293_v28 = vpop.f32.mrb[13].mxu0 }
  0xf9   :  { %4029 = vrcp.f32 %v493_v23  ;;  %v4761_v29 = vadd.f32 %v4707_v41, %v293_v28 }
  0xfa   :  { %v4012_v30 = vpop.eup %4011  ;;  %4031 = vrcp.f32 %v492_v26  ;;  %v3609_v31 = vmul.f32 -1.442695, %v4758_v27 }
  0xfb   :  { %v4014_v32 = vpop.eup %4013  ;;  %v495_v33 = vadd.f32 1.0, %v4012_v30  ;;  %4033 = vpow2.f32 %v3606_v24  ;;  %v3608_v34 = vmul.f32 -1.442695, %v4761_v29  ;;  %v3794_v35 = vpop.f32.mrb[14].mxu0 }
  0xfc   :  { %v4016_v36 = vpop.eup %4015  ;;  %4035 = vpow2.f32 %v3609_v31  ;;  %v4766_v37 = vadd.f32 %v3794_v35, %v4707_v41  ;;  %v303_v38 = vpop.f32.mrb[15].mxu0  ;;  %v585_v46 = vmul.f32 %v4014_v32, %v4710_v43 }
  0xfd   :  { %v4018_v39 = vpop.eup %4017  ;;  %v4769_v40 = vadd.f32 %v4707_v41, %v303_v38  ;;  %v584_v42 = vmul.f32 %v4016_v36, %v4713_v45  ;;  %4037 = vpow2.f32 %v3608_v34 }
  0xfe   :  { %v4020_v44 = vpop.eup %4019  ;;  %v494_v47 = vadd.f32 1.0, %v4018_v39  ;;  %v3611_v48 = vmul.f32 -1.442695, %v4766_v37  ;;  %4039 = vrcp.f32 %v495_v33 }
  0xff   :  { %v4022_v50 = vpop.eup %4021  ;;  %v497_v52 = vadd.f32 1.0, %v4020_v44  ;;  %v3610_v53 = vmul.f32 -1.442695, %v4769_v40  ;;  %3823 = vmatprep.mubr.msk.f32.mxu1 %vm625_vm1, %v584_v42  ;;  %v3797_v54 = vpop.f32.mrb[16].mxu0 }
 0x100   :  { %v4024_v56 = vpop.eup %4023  ;;  %4041 = vrcp.f32 %v494_v47  ;;  %3824 = vmatmul.mubr.msk.f32.vlgmr.msra.gmra.mrb[0].mxu1 %vm625_vm1, %v585_v46  ;;  %v4778_v45 = vadd.f32 %v3797_v54, %v4707_v41  ;;  %v313_v43 = vpop.f32.mrb[17].mxu0  ;;  %v587_v0 = vmul.f32 %v4022_v50, %v4718_v49 }
 0x101   :  { %v4026_v58 = vpop.eup %4025  ;;  %v586_v59 = vmul.f32 %v4024_v56, %v4721_v51  ;;  %4043 = vrcp.f32 %v497_v52  ;;  %v4782_v60 = vadd.f32 %v4707_v41, %v313_v43 }
 0x102   :  { %v4028_v62 = vpop.eup %4027  ;;  %v496_v1 = vadd.f32 1.0, %v4026_v58  ;;  %4045 = vpow2.f32 %v3611_v48  ;;  %v3613_v2 = vmul.f32 -1.442695, %v4778_v45 }
 0x103   :  { %v4030_v3 = vpop.eup %4029  ;;  %v499_v4 = vadd.f32 1.0, %v4028_v62  ;;  %4047 = vpow2.f32 %v3610_v53  ;;  %3826 = vmatprep.mubr.msk.f32.mxu1 %vm625_vm1, %v586_v59  ;;  %v3612_v5 = vmul.f32 -1.442695, %v4782_v60  ;;  %v3800_v6 = vpop.f32.mrb[18].mxu0 }
 0x104   :  { %v4032_v51 = vpop.eup %4031  ;;  %4049 = vrcp.f32 %v496_v1  ;;  %3827 = vmatmul.mubr.msk.f32.gmra.mrb[2].mxu1 %vm625_vm1, %v587_v0  ;;  %v4790_v8 = vadd.f32 %v3800_v6, %v4707_v41  ;;  %v323_v49 = vpop.f32.mrb[19].mxu0  ;;  %v589_v14 = vmul.f32 %v4030_v3, %v4726_v55 }
 0x105   :  { %v4034_v10 = vpop.eup %4033  ;;  %v588_v11 = vmul.f32 %v4032_v51, %v4729_v57  ;;  %4051 = vrcp.f32 %v499_v4  ;;  %v4794_v12 = vadd.f32 %v4707_v41, %v323_v49 }
 0x106   :  { %v4036_v13 = vpop.eup %4035  ;;  %v498_v15 = vadd.f32 1.0, %v4034_v10  ;;  %4053 = vpow2.f32 %v3613_v2  ;;  %v3615_v16 = vmul.f32 -1.442695, %v4790_v8 }
 0x107   :  { %v501_v18 = vadd.f32 1.0, %v4036_v13  ;;  %4055 = vpow2.f32 %v3612_v5  ;;  %3829 = vmatprep.mubr.msk.f32.mxu1 %vm625_vm1, %v588_v11  ;;  %v3803_v20 = vpop.f32.mrb[20].mxu0  ;;  %v4038_v21 = vpop.eup %4037  ;;  %v3614_v57 = vmul.f32 -1.442695, %v4794_v12 }
 0x108   :  { %4057 = vrcp.f32 %v498_v15  ;;  %3830 = vmatmul.mubr.msk.f32.gmra.mrb[4].mxu1 %vm625_vm1, %v589_v14  ;;  %v4802_v22 = vadd.f32 %v3803_v20, %v4707_v41  ;;  %v333_v23 = vpop.f32.mrb[21].mxu0  ;;  %v4040_v55 = vpop.eup %4039  ;;  %v500_v24 = vadd.f32 1.0, %v4038_v21 }
 0x109   :  { %4059 = vrcp.f32 %v501_v18  ;;  %v4805_v25 = vadd.f32 %v4707_v41, %v333_v23  ;;  %v591_v35 = vmul.f32 %v4040_v55, %v4734_v61 }
 0x10a   :  { %v4042_v26 = vpop.eup %4041  ;;  %4061 = vpow2.f32 %v3615_v16  ;;  %v3617_v28 = vmul.f32 -1.442695, %v4802_v22 }
 0x10b   :  { %v4044_v30 = vpop.eup %4043  ;;  %v590_v31 = vmul.f32 %v4042_v26, %v4737_v63  ;;  %4063 = vrcp.f32 %v500_v24  ;;  %v3616_v32 = vmul.f32 -1.442695, %v4805_v25  ;;  %v3806_v33 = vpop.f32.mrb[22].mxu0 }
 0x10c   :  { %v4046_v34 = vpop.eup %4045  ;;  %4065 = vpow2.f32 %v3614_v57  ;;  %v4812_v36 = vadd.f32 %v3806_v33, %v4707_v41  ;;  %v343_v38 = vpop.f32.mrb[23].mxu0  ;;  %v593_v54 = vmul.f32 %v4044_v30, %v4742_v7 }
 0x10d   :  { %v4048_v39 = vpop.eup %4047  ;;  %v503_v42 = vadd.f32 1.0, %v4046_v34  ;;  %3832 = vmatprep.mubr.msk.f32.mxu1 %vm625_vm1, %v590_v31  ;;  %4067 = vpow2.f32 %v3617_v28  ;;  %v4816_v44 = vadd.f32 %v4707_v41, %v343_v38 }
 0x10e   :  { %v4050_v63 = vpop.eup %4049  ;;  %v502_v46 = vadd.f32 1.0, %v4048_v39  ;;  %3833 = vmatmul.mubr.msk.f32.gmra.mrb[6].mxu1 %vm625_vm1, %v591_v35  ;;  %4069 = vpow2.f32 %v3616_v32  ;;  %v3619_v61 = vmul.f32 -1.442695, %v4812_v36 }
 0x10f   :  { %v4052_v47 = vpop.eup %4051  ;;  %v592_v48 = vmul.f32 %v4050_v63, %v4745_v9  ;;  %4071 = vrcp.f32 %v503_v42  ;;  %v3618_v50 = vmul.f32 -1.442695, %v4816_v44  ;;  %v3809_v52 = vpop.f32.mrb[24].mxu0 }
 0x110   :  { %v4054_v53 = vpop.eup %4053  ;;  %4073 = vrcp.f32 %v502_v46  ;;  %v4824_v56 = vadd.f32 %v3809_v52, %v4707_v41  ;;  %v353_v43 = vpop.f32.mrb[25].mxu0  ;;  %v595_v6 = vmul.f32 %v4052_v47, %v4750_v17 }
 0x111   :  { %v4056_v58 = vpop.eup %4055  ;;  %v505_v59 = vadd.f32 1.0, %v4054_v53  ;;  %3835 = vmatprep.mubr.msk.f32.mxu1 %vm625_vm1, %v592_v48  ;;  %4075 = vpow2.f32 %v3619_v61  ;;  %v4828_v62 = vadd.f32 %v4707_v41, %v353_v43 }
 0x112   :  { %v4058_v9 = vpop.eup %4057  ;;  %v504_v0 = vadd.f32 1.0, %v4056_v58  ;;  %3836 = vmatmul.mubr.msk.f32.gmra.mrb[8].mxu1 %vm625_vm1, %v593_v54  ;;  %4077 = vpow2.f32 %v3618_v50  ;;  %v3621_v7 = vmul.f32 -1.442695, %v4824_v56 }
 0x113   :  { %v4060_v1 = vpop.eup %4059  ;;  %v594_v2 = vmul.f32 %v4058_v9, %v4753_v19  ;;  %4079 = vrcp.f32 %v505_v59  ;;  %v3620_v3 = vmul.f32 -1.442695, %v4828_v62  ;;  %v3812_v4 = vpop.f32.mrb[26].mxu0 }
 0x114   :  { %v4062_v5 = vpop.eup %4061  ;;  %4081 = vrcp.f32 %v504_v0  ;;  %v4836_v51 = vadd.f32 %v3812_v4, %v4707_v41  ;;  %v363_v49 = vpop.f32.mrb[27].mxu0  ;;  %v597_v14 = vmul.f32 %v4060_v1, %v4758_v27 }
 0x115   :  { %v4064_v10 = vpop.eup %4063  ;;  %v507_v11 = vadd.f32 1.0, %v4062_v5  ;;  %3838 = vmatprep.mubr.msk.f32.mxu1 %vm625_vm1, %v594_v2  ;;  %4083 = vpow2.f32 %v3621_v7  ;;  %v4840_v13 = vadd.f32 %v4707_v41, %v363_v49 }
 0x116   :  { %v4066_v19 = vpop.eup %4065  ;;  %v596_v15 = vmul.f32 %v4064_v10, %v4761_v29  ;;  %3839 = vmatmul.mubr.msk.f32.gmra.mrb[10].mxu1 %vm625_vm1, %v595_v6  ;;  %4085 = vpow2.f32 %v3620_v3  ;;  %v3623_v17 = vmul.f32 -1.442695, %v4836_v51 }
 0x117   :  { %v4068_v16 = vpop.eup %4067  ;;  %4087 = vrcp.f32 %v507_v11  ;;  %v506_v18 = vadd.f32 1.0, %v4066_v19  ;;  %v3815_v20 = vpop.f32.mrb[28].mxu0  ;;  %v3622_v23 = vmul.f32 -1.442695, %v4840_v13 }
 0x118   :  { %v4070_v21 = vpop.eup %4069  ;;  %v509_v57 = vadd.f32 1.0, %v4068_v16  ;;  %3841 = vmatprep.mubr.msk.f32.mxu1 %vm625_vm1, %v596_v15  ;;  %4089 = vpow2.f32 %v3623_v17  ;;  %v4849_v27 = vadd.f32 %v3815_v20, %v4707_v41  ;;  %v373_v29 = vpop.f32.mrb[29].mxu0 }
 0x119   :  { %v4072_v55 = vpop.eup %4071  ;;  %4091 = vrcp.f32 %v506_v18  ;;  %v508_v24 = vadd.f32 1.0, %v4070_v21  ;;  %v4852_v26 = vadd.f32 %v4707_v41, %v373_v29 }
 0x11a   :  { %v4074_v28 = vpop.eup %4073  ;;  %v599_v30 = vmul.f32 %v4072_v55, %v4766_v37  ;;  %4093 = vrcp.f32 %v509_v57  ;;  %3842 = vmatmul.mubr.msk.f32.gmra.mrb[12].mxu1 %vm625_vm1, %v597_v14  ;;  %v3625_v31 = vmul.f32 -1.442695, %v4849_v27 }
 0x11b   :  { %v4076_v32 = vpop.eup %4075  ;;  %v598_v33 = vmul.f32 %v4074_v28, %v4769_v40  ;;  %4095 = vrcp.f32 %v508_v24  ;;  %v3818_v34 = vpop.f32.mrb[30].mxu0  ;;  %v3624_v39 = vmul.f32 -1.442695, %v4852_v26 }
 0x11c   :  { %v4078_v35 = vpop.eup %4077  ;;  %v511_v38 = vadd.f32 1.0, %v4076_v32  ;;  %4097 = vpow2.f32 %v3622_v23  ;;  %v4860_v42 = vadd.f32 %v3818_v34, %v4707_v41  ;;  %v383_v63 = vpop.f32.mrb[31].mxu0 }
 0x11d   :  { %v4080_v37 = vpop.eup %4079  ;;  %3844 = vmatprep.mubr.msk.f32.mxu1 %vm625_vm1, %v598_v33  ;;  %v510_v46 = vadd.f32 1.0, %v4078_v35  ;;  %4099 = vpow2.f32 %v3625_v31  ;;  %v4864_v61 = vadd.f32 %v4707_v41, %v383_v63 }
 0x11e   :  { %v4082_v40 = vpop.eup %4081  ;;  %v601_v47 = vmul.f32 %v4080_v37, %v4778_v45  ;;  %4101 = vrcp.f32 %v511_v38  ;;  %3845 = vmatmul.mubr.msk.f32.gmra.mrb[14].mxu1 %vm625_vm1, %v599_v30  ;;  %v3627_v48 = vmul.f32 -1.442695, %v4860_v42 }
 0x11f   :  { %v4084_v50 = vpop.eup %4083  ;;  %v600_v52 = vmul.f32 %v4082_v40, %v4782_v60  ;;  %4103 = vrcp.f32 %v510_v46  ;;  %v3626_v43 = vmul.f32 -1.442695, %v4864_v61 }
 0x120   :  { %v4086_v53 = vpop.eup %4085  ;;  %v513_v54 = vadd.f32 1.0, %v4084_v50  ;;  %4105 = vpow2.f32 %v3624_v39  ;;  %v6770_v50 = vlaneseq }
 0x121   :  { %v4088_v58 = vpop.eup %4087  ;;  %3847 = vmatprep.mubr.msk.f32.mxu1 %vm625_vm1, %v600_v52  ;;  %v512_v41 = vadd.f32 1.0, %v4086_v53  ;;  %4107 = vpow2.f32 %v3627_v48 }
 0x122   :  { %v4090_v45 = vpop.eup %4089  ;;  %4109 = vrcp.f32 %v513_v54  ;;  %3848 = vmatmul.mubr.msk.f32.gmra.mrb[16].mxu1 %vm625_vm1, %v601_v47  ;;  %v603_v9 = vmul.f32 %v4088_v58, %v4790_v8 }
 0x123   :  { %v4092_v59 = vpop.eup %4091  ;;  %4111 = vrcp.f32 %v512_v41  ;;  %v515_v60 = vadd.f32 1.0, %v4090_v45  ;;  %v948_v45 = vand.u32 127, %v6770_v50 }
 0x124   :  { %v4094_v0 = vpop.eup %4093  ;;  %v602_v7 = vmul.f32 %v4092_v59, %v4794_v12  ;;  %4113 = vpow2.f32 %v3626_v43 }
 0x125   :  { %v4096_v1 = vpop.eup %4095  ;;  %4115 = vrcp.f32 %v515_v60  ;;  %v605_v5 = vmul.f32 %v4094_v0, %v4802_v22  ;;  %vm950_vm2 = vcmp.lt.s32.totalorder %v948_v45, 13  ;;  %vm949_vm3 = vcmp.lt.s32.totalorder %v948_v45, 4 }
 0x126   :  { %v4098_v2 = vpop.eup %4097  ;;  %v604_v3 = vmul.f32 %v4096_v1, %v4805_v25  ;;  %3850 = vmatprep.mubr.msk.f32.mxu1 %vm625_vm1, %v602_v7 }
 0x127   :  { %v4100_v4 = vpop.eup %4099  ;;  %v514_v6 = vadd.f32 1.0, %v4098_v2  ;;  %3851 = vmatmul.mubr.msk.f32.gmra.mrb[18].mxu1 %vm625_vm1, %v603_v9 }
 0x128   :  { %v4102_v8 = vpop.eup %4101  ;;  %v517_v49 = vadd.f32 1.0, %v4100_v4  ;;  %3853 = vmatprep.mubr.msk.f32.mxu1 %vm625_vm1, %v604_v3 }
 0x129   :  { %v4104_v10 = vpop.eup %4103  ;;  %4117 = vrcp.f32 %v514_v6  ;;  %v607_v19 = vmul.f32 %v4102_v8, %v4812_v36 }
 0x12a   :  { %v4106_v12 = vpop.eup %4105  ;;  %v606_v11 = vmul.f32 %v4104_v10, %v4816_v44  ;;  %4119 = vrcp.f32 %v517_v49 }
 0x12b   :  { %v4108_v25 = vpop.eup %4107  ;;  %v516_v14 = vadd.f32 1.0, %v4106_v12  ;;  %3854 = vmatmul.mubr.msk.f32.gmra.mrb[20].mxu1 %vm625_vm1, %v605_v5 }
 0x12c   :  { %v4110_v22 = vpop.eup %4109  ;;  %v519_v15 = vadd.f32 1.0, %v4108_v25  ;;  %3856 = vmatprep.mubr.msk.f32.mxu1 %vm625_vm1, %v606_v11 }
 0x12d   :  { %v4112_v17 = vpop.eup %4111  ;;  %4121 = vrcp.f32 %v516_v14  ;;  %v609_v20 = vmul.f32 %v4110_v22, %v4824_v56 }
 0x12e   :  { %v4114_v16 = vpop.eup %4113  ;;  %v608_v18 = vmul.f32 %v4112_v17, %v4828_v62  ;;  %4123 = vrcp.f32 %v519_v15 }
 0x12f   :  { %v518_v44 = vadd.f32 1.0, %v4114_v16  ;;  %3857 = vmatmul.mubr.msk.f32.gmra.mrb[22].mxu1 %vm625_vm1, %v607_v19  ;;  %v4116_v21 = vpop.eup %4115  ;;  %v4498_v19 = vmov 0.0  }
 0x130   :  { %3859 = vmatprep.mubr.msk.f32.mxu1 %vm625_vm1, %v608_v18  ;;  %v611_v57 = vmul.f32 %v4116_v21, %v4836_v51  ;;  %v951_v14 = vsel %vm950_vm2, 1.0, %v4498_v19 }
 0x131   :  { %4125 = vrcp.f32 %v518_v44  ;;  %v4919_v21 = vsel %vm949_vm3, 32.0, %v951_v14 }
 0x133   :  { %v4118_v36 = vpop.eup %4117  ;;  %3860 = vmatmul.mubr.msk.f32.gmra.mrb[24].mxu1 %vm625_vm1, %v609_v20 }
 0x134   :  { %v4120_v23 = vpop.eup %4119  ;;  %v610_v29 = vmul.f32 %v4118_v36, %v4840_v13  ;;  %v4904_v13 = vld [vmem:[%s6765_s4] ss:$0 sm:$0xff]  ;;  %s4500_s4 = smov 126  }
 0x135   :  { %v613_v56 = vmul.f32 %v4120_v23, %v4849_v27 }
 0x136   :  { %3862 = vmatprep.mubr.msk.f32.mxu1 %vm625_vm1, %v610_v29 }
 0x137   :  { %v4122_v62 = vpop.eup %4121  ;;  %3863 = vmatmul.mubr.msk.f32.gmra.mrb[26].mxu1 %vm625_vm1, %v611_v57 }
 0x138   :  { %v4124_v55 = vpop.eup %4123  ;;  %v612_v24 = vmul.f32 %v4122_v62, %v4852_v26 }
 0x139   :  { %v615_v51 = vmul.f32 %v4124_v55, %v4860_v42 }
 0x13a   :  { %3865 = vmatprep.mubr.msk.f32.mxu1 %vm625_vm1, %v612_v24 }
 0x13b   :  { %v4126_v28 = vpop.eup %4125  ;;  %3866 = vmatmul.mubr.msk.f32.gmra.mrb[28].mxu1 %vm625_vm1, %v613_v56 }
 0x13c   :  { %v614_v30 = vmul.f32 %v4126_v28, %v4864_v61 }
 0x13e   :  { %3868 = vmatprep.mubr.msk.f32.mxu1 %vm625_vm1, %v614_v30 }
 0x13f   :  { %3869 = vmatmul.mubr.msk.f32.gmra.mrb[30].mxu1 %vm625_vm1, %v615_v51 }
 0x1d3   :  { %v3825_v27 = vpop.f32.mrb[0].mxu1 }
 0x1d4   :  { %v794_v26 = vadd.f32 %v3825_v27, %v4904_v13  ;;  %v788_v31 = vpop.f32.mrb[1].mxu1 }
 0x1d5   :  { %v789_v32 = vadd.f32 %v4904_v13, %v788_v31 }
 0x1d6   :  { %v3662_v33 = vmul.f32 -1.442695, %v794_v26 }
 0x1d7   :  { %v3661_v34 = vmul.f32 -1.442695, %v789_v32  ;;  %v3828_v35 = vpop.f32.mrb[2].mxu1 }
 0x1d8   :  { %4127 = vpow2.f32 %v3662_v33  ;;  %v804_v38 = vadd.f32 %v3828_v35, %v4904_v13  ;;  %v798_v39 = vpop.f32.mrb[3].mxu1 }
 0x1d9   :  { %4129 = vpow2.f32 %v3661_v34  ;;  %v799_v42 = vadd.f32 %v4904_v13, %v798_v39 }
 0x1da   :  { %v3664_v63 = vmul.f32 -1.442695, %v804_v38 }
 0x1db   :  { %v3663_v37 = vmul.f32 -1.442695, %v799_v42  ;;  %v3831_v46 = vpop.f32.mrb[4].mxu1 }
 0x1dc   :  { %4131 = vpow2.f32 %v3664_v63  ;;  %v814_v61 = vadd.f32 %v3831_v46, %v4904_v13  ;;  %v808_v40 = vpop.f32.mrb[5].mxu1 }
 0x1dd   :  { %4133 = vpow2.f32 %v3663_v37  ;;  %v809_v47 = vadd.f32 %v4904_v13, %v808_v40 }
 0x1de   :  { %v3666_v48 = vmul.f32 -1.442695, %v814_v61 }
 0x1df   :  { %v3665_v52 = vmul.f32 -1.442695, %v809_v47 }
 0x1e0   :  { %4135 = vpow2.f32 %v3666_v48 }
 0x1e1   :  { %4137 = vpow2.f32 %v3665_v52  ;;  %v3834_v53 = vpop.f32.mrb[6].mxu1 }
 0x1e2   :  { %v4128_v54 = vpop.eup %4127  ;;  %v824_v43 = vadd.f32 %v3834_v53, %v4904_v13  ;;  %v818_v58 = vpop.f32.mrb[7].mxu1 }
 0x1e3   :  { %v4130_v41 = vpop.eup %4129  ;;  %v1050_v59 = vadd.f32 1.0, %v4128_v54  ;;  %v819_v9 = vadd.f32 %v4904_v13, %v818_v58 }
 0x1e4   :  { %v1049_v60 = vadd.f32 1.0, %v4130_v41  ;;  %v3668_v0 = vmul.f32 -1.442695, %v824_v43 }
 0x1e5   :  { %4139 = vrcp.f32 %v1050_v59  ;;  %v3667_v7 = vmul.f32 -1.442695, %v819_v9  ;;  %v3837_v1 = vpop.f32.mrb[8].mxu1 }
 0x1e6   :  { %v4132_v2 = vpop.eup %4131  ;;  %4141 = vrcp.f32 %v1049_v60  ;;  %v834_v3 = vadd.f32 %v3837_v1, %v4904_v13  ;;  %v828_v4 = vpop.f32.mrb[9].mxu1 }
 0x1e7   :  { %v4134_v5 = vpop.eup %4133  ;;  %v1052_v6 = vadd.f32 1.0, %v4132_v2  ;;  %4143 = vpow2.f32 %v3668_v0  ;;  %v829_v8 = vadd.f32 %v4904_v13, %v828_v4 }
 0x1e8   :  { %v1051_v49 = vadd.f32 1.0, %v4134_v5  ;;  %4145 = vpow2.f32 %v3667_v7  ;;  %v3670_v10 = vmul.f32 -1.442695, %v834_v3 }
 0x1e9   :  { %4147 = vrcp.f32 %v1052_v6  ;;  %v3669_v12 = vmul.f32 -1.442695, %v829_v8  ;;  %v3840_v11 = vpop.f32.mrb[10].mxu1 }
 0x1ea   :  { %v4136_v25 = vpop.eup %4135  ;;  %4149 = vrcp.f32 %v1051_v49  ;;  %v844_v22 = vadd.f32 %v3840_v11, %v4904_v13  ;;  %v838_v15 = vpop.f32.mrb[11].mxu1 }
 0x1eb   :  { %v4138_v17 = vpop.eup %4137  ;;  %v1054_v16 = vadd.f32 1.0, %v4136_v25  ;;  %4151 = vpow2.f32 %v3670_v10  ;;  %v839_v18 = vadd.f32 %v4904_v13, %v838_v15 }
 0x1ec   :  { %v1053_v20 = vadd.f32 1.0, %v4138_v17  ;;  %4153 = vpow2.f32 %v3669_v12  ;;  %v3672_v44 = vmul.f32 -1.442695, %v844_v22 }
 0x1ed   :  { %4155 = vrcp.f32 %v1054_v16  ;;  %v3671_v36 = vmul.f32 -1.442695, %v839_v18  ;;  %v3843_v57 = vpop.f32.mrb[12].mxu1 }
 0x1ee   :  { %4157 = vrcp.f32 %v1053_v20  ;;  %v854_v23 = vadd.f32 %v3843_v57, %v4904_v13  ;;  %v848_v29 = vpop.f32.mrb[13].mxu1 }
 0x1ef   :  { %v4140_v62 = vpop.eup %4139  ;;  %4159 = vpow2.f32 %v3672_v44  ;;  %v849_v56 = vadd.f32 %v4904_v13, %v848_v29 }
 0x1f0   :  { %v4142_v55 = vpop.eup %4141  ;;  %v4924_v24 = vmul.f32 %v4140_v62, %v4919_v21  ;;  %4161 = vpow2.f32 %v3671_v36  ;;  %v3674_v28 = vmul.f32 -1.442695, %v854_v23 }
 0x1f1   :  { %v4144_v51 = vpop.eup %4143  ;;  %v4927_v30 = vmul.f32 %v4142_v55, %v4919_v21  ;;  %v3673_v27 = vmul.f32 -1.442695, %v849_v56  ;;  %v3846_v26 = vpop.f32.mrb[14].mxu1 }
 0x1f2   :  { %v4146_v31 = vpop.eup %4145  ;;  %1178 = vst [vmem:[#allocation2 + $0x8] sm:$0xff] %v4924_v24  ;;  %v1056_v32 = vadd.f32 1.0, %v4144_v51  ;;  %4163 = vpow2.f32 %v3674_v28  ;;  %2820 = vrot.lane.b32.xlu0 %v4924_v24, %s4499_s3  ;;  %v864_v33 = vadd.f32 %v3846_v26, %v4904_v13  ;;  %v858_v34 = vpop.f32.mrb[15].mxu1  ;;  %v1367_v48 = vmul.f32 0.5, %v4924_v24 }
 0x1f3   :  { %v4148_v35 = vpop.eup %4147  ;;  %1177 = vst [vmem:[#allocation2] sm:$0xff] %v4927_v30  ;;  %v1055_v38 = vadd.f32 1.0, %v4146_v31  ;;  %4165 = vpow2.f32 %v3673_v27  ;;  %v859_v39 = vadd.f32 %v4904_v13, %v858_v34  ;;  %2818 = vrot.lane.b32.xlu1 %v4927_v30, %s4499_s3  ;;  %v1366_v42 = vmul.f32 0.5, %v4927_v30 }
 0x1f4   :  { %v4150_v63 = vpop.eup %4149  ;;  %v4939_v37 = vmul.f32 %v4148_v35, %v4919_v21  ;;  %4167 = vrcp.f32 %v1056_v32  ;;  %v3676_v46 = vmul.f32 -1.442695, %v864_v33 }
 0x1f5   :  { %v4152_v61 = vpop.eup %4151  ;;  %v4942_v40 = vmul.f32 %v4150_v63, %v4919_v21  ;;  %4169 = vrcp.f32 %v1055_v38  ;;  %v3675_v47 = vmul.f32 -1.442695, %v859_v39  ;;  %v3849_v52 = vpop.f32.mrb[16].mxu1 }
 0x1f6   :  { %v4154_v53 = vpop.eup %4153  ;;  %1180 = vst [vmem:[#allocation2 + $0x18] sm:$0xff] %v4939_v37  ;;  %v1058_v54 = vadd.f32 1.0, %v4152_v61  ;;  %4171 = vpow2.f32 %v3676_v46  ;;  %1430 = vrot.lane.b32.xlu0 %v1366_v42, %s4500_s4  ;;  %v874_v43 = vadd.f32 %v3849_v52, %v4904_v13  ;;  %v868_v58 = vpop.f32.mrb[17].mxu1  ;;  %v1369_v19 = vmul.f32 0.5, %v4939_v37 }
 0x1f7   :  { %v4156_v41 = vpop.eup %4155  ;;  %1179 = vst [vmem:[#allocation2 + $0x10] sm:$0xff] %v4942_v40  ;;  %v1057_v45 = vadd.f32 1.0, %v4154_v53  ;;  %4173 = vpow2.f32 %v3675_v47  ;;  %1432 = vrot.lane.b32.xlu1 %v1367_v48, %s4500_s4  ;;  %v869_v59 = vadd.f32 %v4904_v13, %v868_v58  ;;  %v1368_v28 = vmul.f32 0.5, %v4942_v40 }
 0x1f8   :  { %v4158_v9 = vpop.eup %4157  ;;  %v4952_v60 = vmul.f32 %v4156_v41, %v4919_v21  ;;  %4175 = vrcp.f32 %v1058_v54  ;;  %v3678_v0 = vmul.f32 -1.442695, %v874_v43 }
 0x1f9   :  { %v4160_v7 = vpop.eup %4159  ;;  %v4955_v1 = vmul.f32 %v4158_v9, %v4919_v21  ;;  %4177 = vrcp.f32 %v1057_v45  ;;  %v3677_v2 = vmul.f32 -1.442695, %v869_v59 }
 0x1fa   :  { %v4162_v3 = vpop.eup %4161  ;;  %1182 = vst [vmem:[#allocation2 + $0x28] sm:$0xff] %v4952_v60  ;;  %v1060_v4 = vadd.f32 1.0, %v4160_v7  ;;  %4179 = vpow2.f32 %v3678_v0  ;;  %2824 = vrot.lane.b32.xlu0 %v4939_v37, %s4499_s3  ;;  %v3852_v5 = vpop.f32.mrb[18].mxu1  ;;  %v1371_v29 = vmul.f32 0.5, %v4952_v60 }
 0x1fb   :  { %1181 = vst [vmem:[#allocation2 + $0x20] sm:$0xff] %v4955_v1  ;;  %v1059_v6 = vadd.f32 1.0, %v4162_v3  ;;  %4181 = vpow2.f32 %v3677_v2  ;;  %2822 = vrot.lane.b32.xlu1 %v4942_v40, %s4499_s3  ;;  %v884_v8 = vadd.f32 %v3852_v5, %v4904_v13  ;;  %v878_v49 = vpop.f32.mrb[19].mxu1  ;;  %v1370_v2 = vmul.f32 0.5, %v4955_v1 }
 0x1fc   :  { %v4164_v10 = vpop.eup %4163  ;;  %4183 = vrcp.f32 %v1060_v4  ;;  %v879_v12 = vadd.f32 %v4904_v13, %v878_v49 }
 0x1fd   :  { %v4166_v11 = vpop.eup %4165  ;;  %4185 = vrcp.f32 %v1059_v6  ;;  %v1062_v25 = vadd.f32 1.0, %v4164_v10  ;;  %v3680_v14 = vmul.f32 -1.442695, %v884_v8 }
 0x1fe   :  { %v4168_v22 = vpop.eup %4167  ;;  %v1061_v15 = vadd.f32 1.0, %v4166_v11  ;;  %2828 = vrot.lane.b32.xlu0 %v4952_v60, %s4499_s3  ;;  %v3679_v17 = vmul.f32 -1.442695, %v879_v12  ;;  %v3855_v16 = vpop.f32.mrb[20].mxu1 }
 0x1ff   :  { %v4170_v18 = vpop.eup %4169  ;;  %v4969_v20 = vmul.f32 %v4168_v22, %v4919_v21  ;;  %4187 = vrcp.f32 %v1062_v25  ;;  %1436 = vrot.lane.b32.xlu1 %v1369_v19, %s4500_s4  ;;  %v894_v44 = vadd.f32 %v3855_v16, %v4904_v13  ;;  %v888_v36 = vpop.f32.mrb[21].mxu1 }
 0x200   :  { %v4172_v57 = vpop.eup %4171  ;;  %v4974_v23 = vmul.f32 %v4170_v18, %v4919_v21  ;;  %4189 = vrcp.f32 %v1061_v15  ;;  %v889_v62 = vadd.f32 %v4904_v13, %v888_v36 }
 0x201   :  { %v4174_v56 = vpop.eup %4173  ;;  %1184 = vst [vmem:[#allocation2 + $0x38] sm:$0xff] %v4969_v20  ;;  %v1064_v55 = vadd.f32 1.0, %v4172_v57  ;;  %4191 = vpow2.f32 %v3680_v14  ;;  %v3682_v51 = vmul.f32 -1.442695, %v894_v44  ;;  %v1373_v9 = vmul.f32 0.5, %v4969_v20 }
 0x202   :  { %v4176_v27 = vpop.eup %4175  ;;  %1183 = vst [vmem:[#allocation2 + $0x30] sm:$0xff] %v4974_v23  ;;  %v1063_v26 = vadd.f32 1.0, %v4174_v56  ;;  %1440 = vrot.lane.b32.xlu0 %v1371_v29, %s4500_s4  ;;  %4193 = vpow2.f32 %v3679_v17  ;;  %v3681_v31 = vmul.f32 -1.442695, %v889_v62  ;;  %v3858_v32 = vpop.f32.mrb[22].mxu1 }
 0x203   :  { %v4178_v33 = vpop.eup %4177  ;;  %v4983_v34 = vmul.f32 %v4176_v27, %v4919_v21  ;;  %4195 = vrcp.f32 %v1064_v55  ;;  %1434 = vrot.lane.b32.xlu1 %v1368_v28, %s4500_s4  ;;  %v904_v35 = vadd.f32 %v3858_v32, %v4904_v13  ;;  %v898_v38 = vpop.f32.mrb[23].mxu1  ;;  %v1372_v32 = vmul.f32 0.5, %v4974_v23 }
 0x204   :  { %v4180_v39 = vpop.eup %4179  ;;  %v4988_v42 = vmul.f32 %v4178_v33, %v4919_v21  ;;  %4197 = vrcp.f32 %v1063_v26  ;;  %v899_v63 = vadd.f32 %v4904_v13, %v898_v38 }
 0x205   :  { %v4182_v46 = vpop.eup %4181  ;;  %1186 = vst [vmem:[#allocation2 + $0x48] sm:$0xff] %v4983_v34  ;;  %v1066_v61 = vadd.f32 1.0, %v4180_v39  ;;  %4199 = vpow2.f32 %v3682_v51  ;;  %v3684_v47 = vmul.f32 -1.442695, %v904_v35  ;;  %v1375_v51 = vmul.f32 0.5, %v4983_v34 }
 0x206   :  { %v4184_v48 = vpop.eup %4183  ;;  %1185 = vst [vmem:[#allocation2 + $0x40] sm:$0xff] %v4988_v42  ;;  %v1065_v52 = vadd.f32 1.0, %v4182_v46  ;;  %2832 = vrot.lane.b32.xlu0 %v4969_v20, %s4499_s3  ;;  %4201 = vpow2.f32 %v3681_v31  ;;  %v3683_v53 = vmul.f32 -1.442695, %v899_v63  ;;  %v3861_v54 = vpop.f32.mrb[24].mxu1 }
 0x207   :  { %v4186_v43 = vpop.eup %4185  ;;  %v4996_v58 = vmul.f32 %v4184_v48, %v4919_v21  ;;  %4203 = vrcp.f32 %v1066_v61  ;;  %2826 = vrot.lane.b32.xlu1 %v4955_v1, %s4499_s3  ;;  %v914_v41 = vadd.f32 %v3861_v54, %v4904_v13  ;;  %v908_v45 = vpop.f32.mrb[25].mxu1 }
 0x208   :  { %v5002_v59 = vmul.f32 %v4186_v43, %v4919_v21  ;;  %4205 = vrcp.f32 %v1065_v52  ;;  %v909_v0 = vadd.f32 %v4904_v13, %v908_v45 }
 0x209   :  { %v4188_v7 = vpop.eup %4187  ;;  %1188 = vst [vmem:[#allocation2 + $0x58] sm:$0xff] %v4996_v58  ;;  %4207 = vpow2.f32 %v3684_v47  ;;  %v3686_v3 = vmul.f32 -1.442695, %v914_v41 }
 0x20a   :  { %v4190_v4 = vpop.eup %4189  ;;  %1187 = vst [vmem:[#allocation2 + $0x50] sm:$0xff] %v5002_v59  ;;  %v5010_v5 = vmul.f32 %v4188_v7, %v4919_v21  ;;  %1444 = vrot.lane.b32.xlu0 %v1373_v9, %s4500_s4  ;;  %4209 = vpow2.f32 %v3683_v53  ;;  %v3685_v6 = vmul.f32 -1.442695, %v909_v0  ;;  %v3864_v8 = vpop.f32.mrb[26].mxu1 }
 0x20b   :  { %v4192_v49 = vpop.eup %4191  ;;  %v5014_v10 = vmul.f32 %v4190_v4, %v4919_v21  ;;  %1438 = vrot.lane.b32.xlu1 %v1370_v2, %s4500_s4  ;;  %4211 = vpow2.f32 %v3686_v3  ;;  %v924_v12 = vadd.f32 %v3864_v8, %v4904_v13  ;;  %v918_v11 = vpop.f32.mrb[27].mxu1  ;;  %v1374_v8 = vmul.f32 0.5, %v4988_v42 }
 0x20c   :  { %v4194_v25 = vpop.eup %4193  ;;  %1190 = vst [vmem:[#allocation2 + $0x68] sm:$0xff] %v5010_v5  ;;  %v1068_v19 = vadd.f32 1.0, %v4192_v49  ;;  %4213 = vpow2.f32 %v3685_v6  ;;  %v919_v14 = vadd.f32 %v4904_v13, %v918_v11 }
 0x20d   :  { %v4196_v22 = vpop.eup %4195  ;;  %1189 = vst [vmem:[#allocation2 + $0x60] sm:$0xff] %v5014_v10  ;;  %v1067_v15 = vadd.f32 1.0, %v4194_v25  ;;  %v3688_v17 = vmul.f32 -1.442695, %v924_v12 }
 0x20e   :  { %v4198_v16 = vpop.eup %4197  ;;  %v5022_v18 = vmul.f32 %v4196_v22, %v4919_v21  ;;  %4215 = vrcp.f32 %v1068_v19  ;;  %2836 = vrot.lane.b32.xlu0 %v4983_v34, %s4499_s3  ;;  %v3687_v44 = vmul.f32 -1.442695, %v919_v14  ;;  %v3867_v36 = vpop.f32.mrb[28].mxu1 }
 0x20f   :  { %v4200_v57 = vpop.eup %4199  ;;  %v5027_v29 = vmul.f32 %v4198_v16, %v4919_v21  ;;  %4217 = vrcp.f32 %v1067_v15  ;;  %2830 = vrot.lane.b32.xlu1 %v4974_v23, %s4499_s3  ;;  %v934_v62 = vadd.f32 %v3867_v36, %v4904_v13  ;;  %v928_v56 = vpop.f32.mrb[29].mxu1 }
 0x210   :  { %v4202_v55 = vpop.eup %4201  ;;  %1192 = vst [vmem:[#allocation2 + $0x78] sm:$0xff] %v5022_v18  ;;  %v1070_v28 = vadd.f32 1.0, %v4200_v57  ;;  %4219 = vpow2.f32 %v3688_v17  ;;  %v929_v27 = vadd.f32 %v4904_v13, %v928_v56 }
 0x211   :  { %v4204_v26 = vpop.eup %4203  ;;  %1191 = vst [vmem:[#allocation2 + $0x70] sm:$0xff] %v5027_v29  ;;  %v1069_v31 = vadd.f32 1.0, %v4202_v55  ;;  %4221 = vpow2.f32 %v3687_v44  ;;  %v3690_v33 = vmul.f32 -1.442695, %v934_v62  ;;  %v1379_v62 = vmul.f32 0.5, %v5010_v5 }
 0x212   :  { %v4206_v35 = vpop.eup %4205  ;;  %v5038_v38 = vmul.f32 %v4204_v26, %v4919_v21  ;;  %4223 = vrcp.f32 %v1070_v28  ;;  %1448 = vrot.lane.b32.xlu0 %v1375_v51, %s4500_s4  ;;  %v3689_v39 = vmul.f32 -1.442695, %v929_v27  ;;  %v3870_v63 = vpop.f32.mrb[30].mxu1  ;;  %v1376_v51 = vmul.f32 0.5, %v5002_v59 }
 0x213   :  { %v4208_v46 = vpop.eup %4207  ;;  %v5042_v61 = vmul.f32 %v4206_v35, %v4919_v21  ;;  %4225 = vrcp.f32 %v1069_v31  ;;  %1442 = vrot.lane.b32.xlu1 %v1372_v32, %s4500_s4  ;;  %v944_v47 = vadd.f32 %v3870_v63, %v4904_v13  ;;  %v938_v48 = vpop.f32.mrb[31].mxu1 }
 0x214   :  { %v4210_v52 = vpop.eup %4209  ;;  %1194 = vst [vmem:[#allocation2 + $0x88] sm:$0xff] %v5038_v38  ;;  %v1072_v53 = vadd.f32 1.0, %v4208_v46  ;;  %4227 = vpow2.f32 %v3690_v33  ;;  %v939_v54 = vadd.f32 %v4904_v13, %v938_v48  ;;  %v1377_v13 = vmul.f32 0.5, %v4996_v58 }
 0x215   :  { %v4212_v43 = vpop.eup %4211  ;;  %1193 = vst [vmem:[#allocation2 + $0x80] sm:$0xff] %v5042_v61  ;;  %v1071_v41 = vadd.f32 1.0, %v4210_v52  ;;  %4229 = vpow2.f32 %v3689_v39  ;;  %v3692_v0 = vmul.f32 -1.442695, %v944_v47 }
 0x216   :  { %v4214_v45 = vpop.eup %4213  ;;  %4231 = vrcp.f32 %v1072_v53  ;;  %2840 = vrot.lane.b32.xlu0 %v4996_v58, %s4499_s3  ;;  %v1074_v9 = vadd.f32 1.0, %v4212_v43  ;;  %v3691_v2 = vmul.f32 -1.442695, %v939_v54  ;;  %v1381_v53 = vmul.f32 0.5, %v5022_v18 }
 0x217   :  { %4233 = vrcp.f32 %v1071_v41  ;;  %2834 = vrot.lane.b32.xlu1 %v4988_v42, %s4499_s3  ;;  %v1073_v7 = vadd.f32 1.0, %v4214_v45  ;;  %v1378_v43 = vmul.f32 0.5, %v5014_v10 }
 0x218   :  { %v4216_v3 = vpop.eup %4215  ;;  %4235 = vrcp.f32 %v1074_v9 }
 0x219   :  { %v4218_v4 = vpop.eup %4217  ;;  %v5055_v6 = vmul.f32 %v4216_v3, %v4919_v21  ;;  %4237 = vrcp.f32 %v1073_v7  ;;  %v1383_v7 = vmul.f32 0.5, %v5038_v38  ;;  %v1380_v3 = vmul.f32 0.5, %v5027_v29 }
 0x21a   :  { %v4220_v49 = vpop.eup %4219  ;;  %v5059_v12 = vmul.f32 %v4218_v4, %v4919_v21  ;;  %1452 = vrot.lane.b32.xlu0 %v1377_v13, %s4500_s4  ;;  %4239 = vpow2.f32 %v3692_v0 }
 0x21b   :  { %v4222_v11 = vpop.eup %4221  ;;  %1196 = vst [vmem:[#allocation2 + $0x98] sm:$0xff] %v5055_v6  ;;  %1446 = vrot.lane.b32.xlu1 %v1374_v8, %s4500_s4  ;;  %v1076_v25 = vadd.f32 1.0, %v4220_v49  ;;  %4241 = vpow2.f32 %v3691_v2  ;;  %v1385_v49 = vmul.f32 0.5, %v5055_v6 }
 0x21c   :  { %v4224_v19 = vpop.eup %4223  ;;  %1195 = vst [vmem:[#allocation2 + $0x90] sm:$0xff] %v5059_v12  ;;  %v1075_v14 = vadd.f32 1.0, %v4222_v11  ;;  %v1382_v11 = vmul.f32 0.5, %v5042_v61 }
 0x21d   :  { %v4226_v22 = vpop.eup %4225  ;;  %v5066_v15 = vmul.f32 %v4224_v19, %v4919_v21  ;;  %4243 = vrcp.f32 %v1076_v25  ;;  %v1384_v25 = vmul.f32 0.5, %v5059_v12 }
 0x21e   :  { %v4228_v17 = vpop.eup %4227  ;;  %v5069_v16 = vmul.f32 %v4226_v22, %v4919_v21  ;;  %2844 = vrot.lane.b32.xlu0 %v5010_v5, %s4499_s3  ;;  %4245 = vrcp.f32 %v1075_v14 }
 0x21f   :  { %v4230_v44 = vpop.eup %4229  ;;  %1198 = vst [vmem:[#allocation2 + $0xa8] sm:$0xff] %v5066_v15  ;;  %2838 = vrot.lane.b32.xlu1 %v5002_v59, %s4499_s3  ;;  %v1078_v36 = vadd.f32 1.0, %v4228_v17 }
 0x220   :  { %v4232_v57 = vpop.eup %4231  ;;  %1197 = vst [vmem:[#allocation2 + $0xa0] sm:$0xff] %v5069_v16  ;;  %v1077_v56 = vadd.f32 1.0, %v4230_v44  ;;  %v1386_v14 = vmul.f32 0.5, %v5069_v16 }
 0x221   :  { %v4234_v55 = vpop.eup %4233  ;;  %v5079_v28 = vmul.f32 %v4232_v57, %v4919_v21  ;;  %4247 = vrcp.f32 %v1078_v36 }
 0x222   :  { %v4236_v27 = vpop.eup %4235  ;;  %v5083_v26 = vmul.f32 %v4234_v55, %v4919_v21  ;;  %1456 = vrot.lane.b32.xlu0 %v1379_v62, %s4500_s4  ;;  %4249 = vrcp.f32 %v1077_v56 }
 0x223   :  { %v4238_v31 = vpop.eup %4237  ;;  %1200 = vst [vmem:[#allocation2 + $0xb8] sm:$0xff] %v5079_v28  ;;  %v5088_v32 = vmul.f32 %v4236_v27, %v4919_v21  ;;  %1450 = vrot.lane.b32.xlu1 %v1376_v51, %s4500_s4  ;;  %v1389_v19 = vmul.f32 0.5, %v5079_v28 }
 0x224   :  { %v4240_v33 = vpop.eup %4239  ;;  %1199 = vst [vmem:[#allocation2 + $0xb0] sm:$0xff] %v5083_v26  ;;  %v5093_v35 = vmul.f32 %v4238_v31, %v4919_v21  ;;  %v1388_v17 = vmul.f32 0.5, %v5083_v26 }
 0x225   :  { %v4242_v39 = vpop.eup %4241  ;;  %1202 = vst [vmem:[#allocation2 + $0xc8] sm:$0xff] %v5088_v32  ;;  %v1080_v63 = vadd.f32 1.0, %v4240_v33  ;;  %v1391_v22 = vmul.f32 0.5, %v5088_v32 }
 0x226   :  { %1201 = vst [vmem:[#allocation2 + $0xc0] sm:$0xff] %v5093_v35  ;;  %2848 = vrot.lane.b32.xlu0 %v5022_v18, %s4499_s3  ;;  %v1079_v46 = vadd.f32 1.0, %v4242_v39  ;;  %v1390_v36 = vmul.f32 0.5, %v5093_v35 }
 0x227   :  { %v4244_v47 = vpop.eup %4243  ;;  %2842 = vrot.lane.b32.xlu1 %v5014_v10, %s4499_s3  ;;  %4251 = vrcp.f32 %v1080_v63 }
 0x228   :  { %v4246_v48 = vpop.eup %4245  ;;  %v5102_v52 = vmul.f32 %v4244_v47, %v4919_v21  ;;  %4253 = vrcp.f32 %v1079_v46 }
 0x229   :  { %v5106_v54 = vmul.f32 %v4246_v48, %v4919_v21 }
 0x22a   :  { %1204 = vst [vmem:[#allocation2 + $0xd8] sm:$0xff] %v5102_v52  ;;  %1460 = vrot.lane.b32.xlu0 %v1381_v53, %s4500_s4  ;;  %v1393_v44 = vmul.f32 0.5, %v5102_v52 }
 0x22b   :  { %v4248_v41 = vpop.eup %4247  ;;  %1203 = vst [vmem:[#allocation2 + $0xd0] sm:$0xff] %v5106_v54  ;;  %1454 = vrot.lane.b32.xlu1 %v1378_v43, %s4500_s4  ;;  %v1392_v62 = vmul.f32 0.5, %v5106_v54 }
 0x22c   :  { %v4250_v45 = vpop.eup %4249  ;;  %v5114_v9 = vmul.f32 %v4248_v41, %v4919_v21 }
 0x22d   :  { %v5117_v0 = vmul.f32 %v4250_v45, %v4919_v21 }
 0x22e   :  { %1206 = vst [vmem:[#allocation2 + $0xe8] sm:$0xff] %v5114_v9  ;;  %2852 = vrot.lane.b32.xlu0 %v5038_v38, %s4499_s3  ;;  %v1395_v57 = vmul.f32 0.5, %v5114_v9 }
 0x22f   :  { %1205 = vst [vmem:[#allocation2 + $0xe0] sm:$0xff] %v5117_v0  ;;  %2846 = vrot.lane.b32.xlu1 %v5027_v29, %s4499_s3  ;;  %v1394_v31 = vmul.f32 0.5, %v5117_v0 }
 0x231   :  { %v4252_v2 = vpop.eup %4251 }
 0x232   :  { %v4254_v13 = vpop.eup %4253  ;;  %v5128_v4 = vmul.f32 %v4252_v2, %v4919_v21  ;;  %1464 = vrot.lane.b32.xlu0 %v1383_v7, %s4500_s4 }
 0x233   :  { %v5132_v8 = vmul.f32 %v4254_v13, %v4919_v21  ;;  %1458 = vrot.lane.b32.xlu1 %v1380_v3, %s4500_s4  ;;  %v1387_v21 = vmul.f32 0.5, %v5066_v15 }
 0x234   :  { %1208 = vst [vmem:[#allocation2 + $0xf8] sm:$0xff] %v5128_v4 }
 0x235   :  { %1207 = vst [vmem:[#allocation2 + $0xf0] sm:$0xff] %v5132_v8  ;;  %v1396_v47 = vmul.f32 0.5, %v5132_v8 }
 0x236   :  { %2856 = vrot.lane.b32.xlu0 %v5055_v6, %s4499_s3 }
 0x237   :  { %2850 = vrot.lane.b32.xlu1 %v5042_v61, %s4499_s3 }
 0x23a   :  { %1468 = vrot.lane.b32.xlu0 %v1385_v49, %s4500_s4 }
 0x23b   :  { %1462 = vrot.lane.b32.xlu1 %v1382_v11, %s4500_s4 }
 0x23e   :  { %2860 = vrot.lane.b32.xlu0 %v5066_v15, %s4499_s3 }
 0x23f   :  { %2854 = vrot.lane.b32.xlu1 %v5059_v12, %s4499_s3 }
 0x242   :  { %1472 = vrot.lane.b32.xlu0 %v1387_v21, %s4500_s4 }
 0x243   :  { %1466 = vrot.lane.b32.xlu1 %v1384_v25, %s4500_s4 }
 0x246   :  { %2864 = vrot.lane.b32.xlu0 %v5079_v28, %s4499_s3 }
 0x247   :  { %2858 = vrot.lane.b32.xlu1 %v5069_v16, %s4499_s3 }
 0x24a   :  { %1476 = vrot.lane.b32.xlu0 %v1389_v19, %s4500_s4 }
 0x24b   :  { %1470 = vrot.lane.b32.xlu1 %v1386_v14, %s4500_s4 }
 0x24e   :  { %2868 = vrot.lane.b32.xlu0 %v5088_v32, %s4499_s3 }
 0x24f   :  { %2862 = vrot.lane.b32.xlu1 %v5083_v26, %s4499_s3 }
 0x252   :  { %1480 = vrot.lane.b32.xlu0 %v1391_v22, %s4500_s4 }
 0x253   :  { %1474 = vrot.lane.b32.xlu1 %v1388_v17, %s4500_s4 }
 0x256   :  { %2872 = vrot.lane.b32.xlu0 %v5102_v52, %s4499_s3 }
 0x257   :  { %2866 = vrot.lane.b32.xlu1 %v5093_v35, %s4499_s3 }
 0x25a   :  { %1484 = vrot.lane.b32.xlu0 %v1393_v44, %s4500_s4 }
 0x25b   :  { %1478 = vrot.lane.b32.xlu1 %v1390_v36, %s4500_s4 }
 0x25e   :  { %2876 = vrot.lane.b32.xlu0 %v5114_v9, %s4499_s3 }
 0x25f   :  { %2870 = vrot.lane.b32.xlu1 %v5106_v54, %s4499_s3 }
 0x262   :  { %1488 = vrot.lane.b32.xlu0 %v1395_v57, %s4500_s4 }
 0x263   :  { %1482 = vrot.lane.b32.xlu1 %v1392_v62, %s4500_s4 }
 0x264   :  { %v5185_v56 = vpop.permute.xlu0 %2820 }
 0x265   :  { %v5187_v55 = vpop.permute.xlu1 %2818 }
 0x266   :  { %2880 = vrot.lane.b32.xlu0 %v5128_v4, %s4499_s3 }
 0x267   :  { %2874 = vrot.lane.b32.xlu1 %v5117_v0, %s4499_s3 }
 0x268   :  { %v5193_v51 = vpop.permute.xlu0 %1430 }
 0x269   :  { %v5195_v27 = vpop.permute.xlu1 %1432 }
 0x26b   :  { %1486 = vrot.lane.b32.xlu1 %v1394_v31, %s4500_s4 }
 0x26c   :  { %v5199_v33 = vpop.permute.xlu0 %2824 }
 0x26d   :  { %v5201_v39 = vpop.permute.xlu1 %2822 }
 0x26f   :  { %2878 = vrot.lane.b32.xlu1 %v5132_v8, %s4499_s3 }
 0x270   :  { %v5205_v63 = vpop.permute.xlu0 %2828 }
 0x271   :  { %v5207_v46 = vpop.permute.xlu1 %1436 }
 0x273   :  { %1490 = vrot.lane.b32.xlu1 %v1396_v47, %s4500_s4 }
 0x274   :  { %v5211_v48 = vpop.permute.xlu0 %1440 }
 0x275   :  { %v5213_v53 = vpop.permute.xlu1 %1434 }
 0x278   :  { %v5215_v43 = vpop.permute.xlu0 %2832 }
 0x279   :  { %v5217_v41 = vpop.permute.xlu1 %2826 }
 0x27c   :  { %v5219_v45 = vpop.permute.xlu0 %1444 }
 0x27d   :  { %v5221_v7 = vpop.permute.xlu1 %1438 }
 0x280   :  { %v5223_v2 = vpop.permute.xlu0 %2836 }
 0x281   :  { %v5225_v3 = vpop.permute.xlu1 %2830 }
 0x284   :  { %1209 = vxpose.xlu0.b32.start [1/16] (narrow) %v4927_v30, 16  ;;  %v5228_v13 = vpop.permute.xlu0 %1448 }
 0x285   :  { %v5233_v11 = vpop.permute.xlu1 %1442 }
 0x288   :  { %1210 = vxpose.xlu0.b32.cont [2/16] (narrow) %v4924_v24, 16  ;;  %v5231_v49 = vpop.permute.xlu0 %2840 }
 0x289   :  { %v5238_v25 = vpop.permute.xlu1 %2834 }
 0x28c   :  { %1211 = vxpose.xlu0.b32.cont [3/16] (narrow) %v4942_v40, 16  ;;  %v5236_v21 = vpop.permute.xlu0 %1452 }
 0x28d   :  { %v5244_v14 = vpop.permute.xlu1 %1446 }
 0x290   :  { %1212 = vxpose.xlu0.b32.cont [4/16] (narrow) %v4939_v37, 16  ;;  %v5241_v19 = vpop.permute.xlu0 %2844 }
 0x291   :  { %v5249_v17 = vpop.permute.xlu1 %2838 }
 0x294   :  { %1213 = vxpose.xlu0.b32.cont [5/16] (narrow) %v4955_v1, 16  ;;  %v5247_v22 = vpop.permute.xlu0 %1456 }
 0x295   :  { %v5257_v36 = vpop.permute.xlu1 %1450 }
 0x298   :  { %1214 = vxpose.xlu0.b32.cont [6/16] (narrow) %v4952_v60, 16  ;;  %v5253_v44 = vpop.permute.xlu0 %2848 }
 0x299   :  { %v5263_v62 = vpop.permute.xlu1 %2842 }
 0x29c   :  { %1241 = vxpose.xlu1.b32.start [1/16] (narrow) %v5042_v61, 16  ;;  %1215 = vxpose.xlu0.b32.cont [7/16] (narrow) %v4974_v23, 16  ;;  %v5261_v57 = vpop.permute.xlu0 %1460 }
 0x2a0   :  { %1242 = vxpose.xlu1.b32.cont [2/16] (narrow) %v5038_v38, 16  ;;  %1216 = vxpose.xlu0.b32.cont [8/16] (narrow) %v4969_v20, 16  ;;  %v5267_v61 = vpop.permute.xlu0 %2852  ;;  %v5271_v38 = vpop.permute.xlu1 %1454 }
 0x2a1   :  { %6791 = vst [vmem:[#allocation12_spill] sm:$0xff] %v5267_v61 }
 0x2a4   :  { %1243 = vxpose.xlu1.b32.cont [3/16] (narrow) %v5059_v12, 16  ;;  %1217 = vxpose.xlu0.b32.cont [9/16] (narrow) %v4988_v42, 16  ;;  %v5275_v12 = vpop.permute.xlu0 %1464  ;;  %v5277_v31 = vpop.permute.xlu1 %2846 }
 0x2a8   :  { %1244 = vxpose.xlu1.b32.cont [4/16] (narrow) %v5055_v6, 16  ;;  %1218 = vxpose.xlu0.b32.cont [10/16] (narrow) %v4983_v34, 16  ;;  %v5281_v6 = vpop.permute.xlu0 %2856 }
 0x2a9   :  { %6792 = vst [vmem:[#allocation13_spill] sm:$0xff] %v5281_v6 }
 0x2ac   :  { %1245 = vxpose.xlu1.b32.cont [5/16] (narrow) %v5069_v16, 16  ;;  %1219 = vxpose.xlu0.b32.cont [11/16] (narrow) %v5002_v59, 16  ;;  %v5285_v16 = vpop.permute.xlu1 %1458 }
 0x2b0   :  { %1246 = vxpose.xlu1.b32.cont [6/16] (narrow) %v5066_v15, 16  ;;  %1220 = vxpose.xlu0.b32.cont [12/16] (narrow) %v4996_v58, 16  ;;  %v5289_v15 = vpop.permute.xlu0 %1468  ;;  %v5291_v47 = vpop.permute.xlu1 %2850 }
 0x2b1   :  { %6793 = vst [vmem:[#allocation14_spill] sm:$0xff] %v5289_v15 }
 0x2b4   :  { %1247 = vxpose.xlu1.b32.cont [7/16] (narrow) %v5083_v26, 16  ;;  %1221 = vxpose.xlu0.b32.cont [13/16] (narrow) %v5014_v10, 16  ;;  %v5295_v26 = vpop.permute.xlu0 %2860 }
 0x2b5   :  { %6794 = vst [vmem:[#allocation15_spill] sm:$0xff] %v5295_v26 }
 0x2b8   :  { %1248 = vxpose.xlu1.b32.cont [8/16] (narrow) %v5079_v28, 16  ;;  %1222 = vxpose.xlu0.b32.cont [14/16] (narrow) %v5010_v5, 16  ;;  %v5298_v28 = vpop.permute.xlu1 %1462  ;;  %v5301_v50 = vpop.permute.xlu0 %1472 }
 0x2b9   :  { %6795 = vst [vmem:[#allocation16_spill] sm:$0xff] %v5301_v50 }
 0x2bc   :  { %1249 = vxpose.xlu1.b32.cont [9/16] (narrow) %v5093_v35, 16  ;;  %1223 = vxpose.xlu0.b32.cont [15/16] (narrow) %v5027_v29, 16  ;;  %v5303_v35 = vpop.permute.xlu1 %2854  ;;  %v5306_v29 = vpop.permute.xlu0 %2864 }
 0x2bd   :  { %6796 = vst [vmem:[#allocation17_spill] sm:$0xff] %v5303_v35  ;;  %6797 = vst [vmem:[#allocation18_spill] sm:$0xff] %v5306_v29 }
 0x2c0   :  { %1250 = vxpose.xlu1.b32.cont [10/16] (narrow) %v5088_v32, 16  ;;  %1224 = vxpose.xlu0.b32.end [16/16] (narrow) %v5022_v18, 16  ;;  %v5309_v32 = vpop.permute.xlu1 %1466  ;;  %v5312_v18 = vpop.permute.xlu0 %1476 }
 0x2c1   :  { %6798 = vst [vmem:[#allocation19_spill] sm:$0xff] %v5309_v32  ;;  %6799 = vst [vmem:[#allocation20_spill] sm:$0xff] %v5312_v18 }
 0x2c4   :  { %1251 = vxpose.xlu1.b32.cont [11/16] (narrow) %v5106_v54, 16  ;;  %v5314_v54 = vpop.permute.xlu1 %2858 }
 0x2c5   :  { %6800 = vst [vmem:[#allocation21_spill] sm:$0xff] %v5314_v54  ;;  %v6821_v54 = vlaneseq }
 0x2c7   :  { %vm5442_vm8 = vcmp.lt.s32.totalorder %v6821_v54, 256 }
 0x2c8   :  { %1252 = vxpose.xlu1.b32.cont [12/16] (narrow) %v5102_v52, 16  ;;  %v5317_v52 = vpop.permute.xlu0 %2868  ;;  %v5319_v26 = vpop.permute.xlu1 %1470 }
 0x2c9   :  { %6801 = vst [vmem:[#allocation22_spill] sm:$0xff] %v5317_v52  ;;  %6802 = vst [vmem:[#allocation23_spill] sm:$0xff] %v5319_v26  ;;  %v2915_v52 = vmul.f32 %v5185_v56, %v4924_v24  ;;  %v1527_v56 = vsub.f32 %v4924_v24, %v5195_v27 }
 0x2cc   :  { %1253 = vxpose.xlu1.b32.cont [13/16] (narrow) %v5117_v0, 16  ;;  %v5321_v50 = vpop.permute.xlu0 %1480  ;;  %v5323_v0 = vpop.permute.xlu1 %2862 }
 0x2cd   :  { %6803 = vst [vmem:[#allocation24_spill] sm:$0xff] %v5321_v50  ;;  %6804 = vst [vmem:[#allocation25_spill] sm:$0xff] %v5323_v0  ;;  %v6776_v0 = vmov 0  }
 0x2d0   :  { %1254 = vxpose.xlu1.b32.cont [14/16] (narrow) %v5114_v9, 16  ;;  %v1397_v9 = vmul.f32 0.5, %v5128_v4  ;;  %v5326_v29 = vpop.permute.xlu0 %2872  ;;  %v5328_v6 = vpop.permute.xlu1 %1474 }
 0x2d1   :  { %6805 = vst [vmem:[#allocation26_spill] sm:$0xff] %v5326_v29  ;;  %6806 = vst [vmem:[#allocation27_spill] sm:$0xff] %v5328_v6  ;;  %v6819_v6 = vmov 2  }
 0x2d4   :  { %1255 = vxpose.xlu1.b32.cont [15/16] (narrow) %v5132_v8, 16  ;;  %v6778_v8 = vmov 2   ;;  %v5334_v18 = vpop.permute.xlu0 %1484  ;;  %v5336_v50 = vpop.permute.xlu1 %2866 }
 0x2d5   :  { %6807 = vst [vmem:[#allocation28_spill] sm:$0xff] %v5334_v18  ;;  %6808 = vst [vmem:[#allocation29_spill] sm:$0xff] %v5336_v50  ;;  %v6781_v18 = vmov 1  }
 0x2d8   :  { %1256 = vxpose.xlu1.b32.end [16/16] (narrow) %v5128_v4, 16  ;;  %v1559_v4 = vadd.f32 %v5195_v27, %v4924_v24  ;;  %v5341_v29 = vpop.permute.xlu0 %2876  ;;  %v1558_v24 = vadd.f32 %v5193_v51, %v4927_v30 }
 0x2d9   :  { %6809 = vst [vmem:[#allocation30_spill] sm:$0xff] %v5341_v29 }
 0x2dc   :  { %v5353_v50 = vpop.permute.xlu0 %1488 }
 0x2dd   :  { %6811 = vst [vmem:[#allocation32_spill] sm:$0xff] %v5353_v50 }
 0x2e0   :  { %v5361_v27 = vpop.permute.xlu0 %2880 }
 0x2e1   :  { %6814 = vst [vmem:[#allocation34_spill] sm:$0xff] %v5361_v27  ;;  %v6817_v27 = vmov 1  }
 0x2e9   :  { %1492 = vrot.lane.b32.xlu0 %v1397_v9, %s4500_s4  ;;  %v2914_v9 = vmul.f32 %v5187_v55, %v4927_v30  ;;  %v6813_v55 = vmov 0  }
 0x2ea   :  { %3902 = vset.pattern.permute.xlu0 %v6778_v8 }
 0x2ed   :  { %2959 = vperm.xlu0 %3902, %v2915_v52   ;;  %v5347_v52 = vpop.permute.xlu1 %1478 }
 0x2ee   :  { %6810 = vst [vmem:[#allocation31_spill] sm:$0xff] %v5347_v52 }
 0x2f1   :  { %3904 = vset.pattern.permute.xlu0 %v6776_v0  ;;  %v1526_v0 = vsub.f32 %v4927_v30, %v5193_v51  ;;  %v5355_v29 = vpop.permute.xlu1 %2870  ;;  %v1529_v30 = vsub.f32 %v4939_v37, %v5207_v46 }
 0x2f2   :  { %1609 = vperm.xlu0 %3904, %v1559_v4   ;;  %6812 = vst [vmem:[#allocation33_spill] sm:$0xff] %v5355_v29 }
 0x2f6   :  { %3903 = vset.pattern.permute.xlu1 %v6778_v8  ;;  %3907 = vset.pattern.permute.xlu0 %v6781_v18  ;;  %v1561_v8 = vadd.f32 %v5207_v46, %v4939_v37  ;;  %v2917_v46 = vmul.f32 %v5199_v33, %v4939_v37  ;;  %v5396_v37 = vshrl.u32 %v6821_v54, 7 }
 0x2f7   :  { %2954 = vperm.xlu1 %3903, %v2914_v9   ;;  %2399 = vperm.xlu0 %3907, %v1527_v56   ;;  %v5365_v9 = vpop.permute.xlu1 %1482 }
 0x2f8   :  { %6815 = vst [vmem:[#allocation35_spill] sm:$0xff] %v5365_v9 }
 0x2fb   :  { %3905 = vset.pattern.permute.xlu1 %v6813_v55  ;;  %3909 = vset.pattern.permute.xlu0 %v6813_v55  ;;  %v5374_v51 = vpop.permute.xlu1 %2874 }
 0x2fc   :  { %1841 = vperm.xlu1 %3905, %v1527_v56   ;;  %1836 = vperm.xlu0 %3909, %v1526_v0   ;;  %6816 = vst [vmem:[#allocation36_spill] sm:$0xff] %v5374_v51 }
 0x2ff   :  { %v5382_v52 = vpop.permute.xlu1 %1486 }
 0x300   :  { %3906 = vset.pattern.permute.xlu1 %v6781_v18  ;;  %3910 = vset.pattern.permute.xlu0 %v6781_v18  ;;  %6818 = vst [vmem:[#allocation37_spill] sm:$0xff] %v5382_v52 }
 0x301   :  { %2199 = vperm.xlu1 %3906, %v1559_v4   ;;  %2195 = vperm.xlu0 %3910, %v1558_v24  }
 0x303   :  { %v5393_v52 = vpop.permute.xlu1 %2878 }
 0x304   :  { %v5369_v50 = vpop.trf.xlu0  ;;  %6820 = vst [vmem:[#allocation38_spill] sm:$0xff] %v5393_v52 }
 0x305   :  { %3908 = vset.pattern.permute.xlu1 %v6813_v55  ;;  %2207 = vperm.xlu0 %3910, %v1561_v8   ;;  %v1277_v4 = vsel %vm1276_vm4, %v5369_v50, -inf }
 0x306   :  { %1604 = vperm.xlu1 %3908, %v1558_v24   ;;  %v1528_v24 = vsub.f32 %v4942_v40, %v5213_v53 }
 0x308   :  { %v1226_v56 = vpop.trf.xlu0 }
 0x309   :  { %2407 = vperm.xlu0 %3910, %v1529_v30   ;;  %v1279_v18 = vsel %vm1278_vm5, %v1226_v56, -inf }
 0x30a   :  { %3911 = vset.pattern.permute.xlu1 %v6817_v27  ;;  %v1280_v9 = vmax.f32 %v1277_v4, %v1279_v18  ;;  %v2918_v18 = vmul.f32 %v5217_v41, %v4955_v1 }
 0x30b   :  { %2395 = vperm.xlu1 %3911, %v1526_v0   ;;  %v2916_v0 = vmul.f32 %v5201_v39, %v4942_v40  ;;  %v5406_v39 = vpop.permute.xlu1 %1490 }
 0x30c   :  { %v1281_v29 = vrot.slane %v1280_v9, 4  ;;  %6822 = vst [vmem:[#allocation39_spill] sm:$0xff] %v5406_v39 }
 0x30d   :  { %3914 = vset.pattern.permute.xlu0 %v6813_v55 }
 0x30e   :  { %1846 = vperm.xlu0 %3914, %v1528_v24   ;;  %v1282_v51 = vmax.f32 %v1280_v9, %v1281_v29  ;;  %v1275_v29 = vcvt.s32.f32 %v5396_v37  ;;  %v5401_v9 = vadd.f32 %v5211_v48, %v4952_v60 }
 0x30f   :  { %3912 = vset.pattern.permute.xlu1 %v6819_v6 }
 0x310   :  { %2969 = vperm.xlu1 %3912, %v2917_v46   ;;  %v1283_v26 = vrot.slane %v1282_v51, 2 }
 0x312   :  { %3917 = vset.pattern.permute.xlu0 %v6819_v6  ;;  %v1284_v4 = vmax.f32 %v1282_v51, %v1283_v26  ;;  %v1301_v26 = vrot.slane %v1275_v29, 3  ;;  %v5410_v51 = vsub.f32 %v4952_v60, %v5211_v48 }
 0x313   :  { %2974 = vperm.xlu0 %3917, %v2918_v18  }
 0x314   :  { %2964 = vperm.xlu1 %3912, %v2916_v0   ;;  %v1285_v33 = vrot.slane %v1284_v4, 1 }
 0x316   :  { %v1286_v41 = vmax.f32 %v1284_v4, %v1285_v33  ;;  %v1560_v4 = vadd.f32 %v5213_v53, %v4942_v40  ;;  %v4504_v40 = vmov 1966171168  }
 0x317   :  { %3919 = vset.pattern.permute.xlu0 %v6817_v27  ;;  %v1329_v53 = vunpack.c.l.s4 %v4504_v40  ;;  %v2920_v40 = vmul.f32 %v5225_v3, %v4974_v23  ;;  %v2919_v3 = vmul.f32 %v5205_v63, %v4952_v60 }
 0x318   :  { %3913 = vset.pattern.permute.xlu1 %v6813_v55  ;;  %2215 = vperm.xlu0 %3919, %v5401_v9   ;;  %vm1296_vm6 = vcmp.ge.f32.partialorder %v5369_v50, %v1286_v41  ;;  %vm1298_vm7 = vcmp.ge.f32.partialorder %v1226_v56, %v1286_v41  ;;  %v1530_v41 = vsub.f32 %v4955_v1, %v5221_v7 }
 0x319   :  { %1619 = vperm.xlu1 %3913, %v1561_v8   ;;  %v1303_v46 = vsel %vm1296_vm6, %v1301_v26, 8.0  ;;  %v1305_v18 = vsel %vm1298_vm7, %v1301_v26, 8.0  ;;  %v5420_v8 = vadd.f32 %v5221_v7, %v4955_v1  ;;  %v1330_v32 = vunpack.c.0.s8 %v1329_v53 }
 0x31a   :  { %v1307_v48 = vsel %vm1276_vm4, %v1303_v46, inf  ;;  %v1308_v56 = vsel %vm1278_vm5, %v1305_v18, inf }
 0x31b   :  { %v1309_v52 = vmin.f32 %v1307_v48, %v1308_v56  ;;  %v5435_v15 = vsub.s32 %v1330_v32, %v5396_v37  ;;  %v2923_v48 = vmul.f32 %v5223_v2, %v4983_v34 }
 0x31c   :  { %2415 = vperm.xlu0 %3919, %v5410_v51   ;;  %v5414_v0 = vpop.trf.xlu1 }
 0x31d   :  { %1851 = vperm.xlu1 %3913, %v1529_v30   ;;  %v1287_v30 = vsel %vm1276_vm4, %v5414_v0, -inf  ;;  %v1349_v46 = vcombine.high %v5369_v50, %v5414_v0  ;;  %v1310_v61 = vrot.slane %v1309_v52, 4 }
 0x31f   :  { %v1356_v1 = vrot.slane %v1349_v46, %v5435_v15  ;;  %v1564_v46 = vadd.f32 %v5233_v11, %v4974_v23 }
 0x320   :  { %3920 = vset.pattern.permute.xlu0 %v6813_v55  ;;  %v1258_v33 = vpop.trf.xlu1 }
 0x321   :  { %1614 = vperm.xlu1 %3913, %v1560_v4   ;;  %1624 = vperm.xlu0 %3920, %v5420_v8   ;;  %v1288_v29 = vsel %vm1278_vm5, %v1258_v33, -inf  ;;  %v1363_v32 = vrot.slane %v1356_v1, %v5435_v15 }
 0x322   :  { %v1289_v39 = vmax.f32 %v1287_v30, %v1288_v29 }
 0x323   :  { %1365 = vst.msk [vmem:[#allocation6] sm:$0x3] %vm5442_vm8, %v1363_v32 }
 0x324   :  { %v1290_v18 = vrot.slane %v1289_v39, 4 }
 0x325   :  { %3915 = vset.pattern.permute.xlu1 %v6817_v27  ;;  %1856 = vperm.xlu0 %3920, %v1530_v41  }
 0x326   :  { %2203 = vperm.xlu1 %3915, %v1560_v4   ;;  %v1291_v35 = vmax.f32 %v1289_v39, %v1290_v18  ;;  %v1311_v4 = vmin.f32 %v1309_v52, %v1310_v61  ;;  %v1533_v61 = vsub.f32 %v4969_v20, %v5219_v45 }
 0x328   :  { %v1292_v7 = vrot.slane %v1291_v35, 2  ;;  %v1312_v39 = vrot.slane %v1311_v4, 2 }
 0x329   :  { %3923 = vset.pattern.permute.xlu0 %v6819_v6 }
 0x32a   :  { %2403 = vperm.xlu1 %3915, %v1528_v24   ;;  %2984 = vperm.xlu0 %3923, %v2920_v40   ;;  %v1293_v56 = vmax.f32 %v1291_v35, %v1292_v7  ;;  %v1565_v24 = vadd.f32 %v5219_v45, %v4969_v20  ;;  %v1313_v60 = vmin.f32 %v1311_v4, %v1312_v39  ;;  %v1591_v39 = vmul.f32 0.5, %v5414_v0 }
 0x32b   :  { %v2922_v7 = vmul.f32 %v5238_v25, %v4988_v42 }
 0x32c   :  { %v1294_v54 = vrot.slane %v1293_v56, 1 }
 0x32e   :  { %3916 = vset.pattern.permute.xlu1 %v6819_v6  ;;  %3925 = vset.pattern.permute.xlu0 %v6817_v27  ;;  %v1295_v30 = vmax.f32 %v1293_v56, %v1294_v54 }
 0x32f   :  { %2979 = vperm.xlu1 %3916, %v2919_v3   ;;  %2223 = vperm.xlu0 %3925, %v1565_v24   ;;  %v1567_v3 = vadd.f32 %v5228_v13, %v4983_v34 }
 0x330   :  { %vm1297_vm9 = vcmp.ge.f32.partialorder %v5414_v0, %v1295_v30  ;;  %vm1299_vm10 = vcmp.ge.f32.partialorder %v1258_v33, %v1295_v30  ;;  %v1314_v33 = vrot.slane %v1313_v60, 1 }
 0x331   :  { %v1304_v63 = vsel %vm1297_vm9, %v1301_v26, 8.0  ;;  %v1306_v35 = vsel %vm1299_vm10, %v1301_v26, 8.0  ;;  %v1532_v26 = vsub.f32 %v4974_v23, %v5233_v11  ;;  %v2921_v11 = vmul.f32 %v5215_v43, %v4969_v20 }
 0x332   :  { %v1316_v52 = vsel %vm1276_vm4, %v1304_v63, inf  ;;  %v1317_v29 = vsel %vm1278_vm5, %v1306_v35, inf  ;;  %v1315_v40 = vmin.f32 %v1313_v60, %v1314_v33  ;;  %v1566_v43 = vadd.f32 %v5244_v14, %v4988_v42 }
 0x333   :  { %3918 = vset.pattern.permute.xlu1 %v6813_v55  ;;  %2423 = vperm.xlu0 %3925, %v1533_v61   ;;  %v1318_v53 = vmin.f32 %v1316_v52, %v1317_v29  ;;  %v1595_v63 = vrot.slane %v1591_v39, 2  ;;  %v1764_v35 = vsub.s32 0, %v5396_v37  ;;  %v2324_v33 = vsub.s32 1, %v5396_v37 }
 0x334   :  { %1629 = vperm.xlu1 %3918, %v5401_v9   ;;  %v3883_v4 = vtrunc.f32 %v1315_v40 }
 0x335   :  { %v1319_v45 = vrot.slane %v1318_v53, 4 }
 0x336   :  { %v3884_v56 = vcvt.f32.s32 %v3883_v4 }
 0x337   :  { %3926 = vset.pattern.permute.xlu0 %v6813_v55  ;;  %v1320_v18 = vmin.f32 %v1318_v53, %v1319_v45  ;;  %v1601_v45 = vadd.f32 %v1595_v63, %v5414_v0 }
 0x338   :  { %1861 = vperm.xlu1 %3918, %v5410_v51   ;;  %1634 = vperm.xlu0 %3926, %v1564_v46  }
 0x339   :  { %v1321_v9 = vrot.slane %v1320_v18, 2  ;;  %v5558_v40 = vrot.slane %v1601_v45, %v1764_v35 }
 0x33b   :  { %v1322_v1 = vmin.f32 %v1320_v18, %v1321_v9  ;;  %v5553_v18 = vadd.f32 %v5271_v38, %v5014_v10 }
 0x33c   :  { %3921 = vset.pattern.permute.xlu1 %v6817_v27  ;;  %1866 = vperm.xlu0 %3926, %v1532_v26  }
 0x33d   :  { %2211 = vperm.xlu1 %3921, %v5420_v8   ;;  %v1323_v32 = vrot.slane %v1322_v1, 1 }
 0x33f   :  { %v1324_v51 = vmin.f32 %v1322_v1, %v1323_v32  ;;  %v2947_v1 = vrot.slane %v5414_v0, 1 }
 0x340   :  { %3929 = vset.pattern.permute.xlu0 %v6819_v6 }
 0x341   :  { %2411 = vperm.xlu1 %3921, %v1530_v41   ;;  %2994 = vperm.xlu0 %3929, %v2922_v7   ;;  %v3885_v23 = vtrunc.f32 %v1324_v51  ;;  %v1535_v41 = vsub.f32 %v4983_v34, %v5228_v13  ;;  %v1534_v13 = vsub.f32 %v4988_v42, %v5244_v14  ;;  %v1537_v42 = vsub.f32 %v4996_v58, %v5236_v21 }
 0x342   :  { %v5506_v14 = vadd.f32 %v5257_v36, %v5002_v59  ;;  %v5512_v34 = vsub.f32 %v5002_v59, %v5257_v36  ;;  %v4383_v36 = vld [vmem:[#allocation2 + $0x58] sm:$0xff] }
 0x343   :  { %v3886_v25 = vcvt.f32.s32 %v3885_v23  ;;  %v2925_v30 = vmul.f32 %v4383_v36, %v5231_v49 }
 0x345   :  { %3922 = vset.pattern.permute.xlu1 %v6819_v6  ;;  %3931 = vset.pattern.permute.xlu0 %v6817_v27  ;;  %v1327_v8 = vcombine.low %v3884_v56, %v3886_v25 }
 0x346   :  { %2989 = vperm.xlu1 %3922, %v2921_v11   ;;  %2231 = vperm.xlu0 %3931, %v1567_v3  }
 0x347   :  { %v1334_v54 = vrot.slane %v1327_v8, %v5435_v15  ;;  %v2951_v8 = vmul.f32 %v2947_v1, %v5414_v0  ;;  %v4386_v1 = vld [vmem:[#allocation2 + $0x68] sm:$0xff] }
 0x349   :  { %v1341_v20 = vrot.slane %v1334_v54, %v5435_v15  ;;  %v2924_v15 = vmul.f32 %v5249_v17, %v5002_v59  ;;  %v1590_v17 = vmul.f32 0.5, %v5369_v50 }
 0x34a   :  { %3924 = vset.pattern.permute.xlu1 %v6813_v55  ;;  %2431 = vperm.xlu0 %3931, %v1535_v41  }
 0x34b   :  { %1639 = vperm.xlu1 %3924, %v1565_v24   ;;  %1346 = vst.msk [vmem:[#allocation4] sm:$0x3] %vm5442_vm8, %v1341_v20  ;;  %v1569_v24 = vadd.f32 %v5236_v21, %v4996_v58  ;;  %v2926_v21 = vmul.f32 %v5263_v62, %v5014_v10  ;;  %v1594_v60 = vrot.slane %v1590_v17, 2  ;;  %v5535_v62 = vsub.f32 %v5010_v5, %v5247_v22  ;;  %v4384_v20 = vld [vmem:[#allocation2 + $0x60] sm:$0xff] }
 0x34c   :  { %v5570_v10 = vrot.slane %v1601_v45, %v2324_v33 }
 0x34d   :  { %v1598_v29 = vsub.f32 %v5369_v50, %v1594_v60  ;;  %v1600_v53 = vadd.f32 %v1594_v60, %v5369_v50 }
 0x34e   :  { %3932 = vset.pattern.permute.xlu0 %v6813_v55 }
 0x34f   :  { %1871 = vperm.xlu1 %3924, %v1533_v61   ;;  %1644 = vperm.xlu0 %3932, %v1566_v43   ;;  %v5528_v61 = vadd.f32 %v5247_v22, %v5010_v5  ;;  %v5547_v5 = vrot.slane %v1598_v29, %v1764_v35  ;;  %v5556_v9 = vrot.slane %v1600_v53, %v1764_v35 }
 0x350   :  { %v5563_v4 = vrot.slane %v1600_v53, %v2324_v33  ;;  %v5565_v51 = vrot.slane %v1598_v29, %v2324_v33 }
 0x353   :  { %3927 = vset.pattern.permute.xlu1 %v6817_v27  ;;  %1876 = vperm.xlu0 %3932, %v1534_v13  }
 0x354   :  { %2219 = vperm.xlu1 %3927, %v1564_v46   ;;  %v1599_v46 = vsub.f32 %v5414_v0, %v1595_v63 }
 0x356   :  { %v5549_v22 = vrot.slane %v1599_v46, %v1764_v35  ;;  %v5567_v56 = vrot.slane %v1599_v46, %v2324_v33 }
 0x357   :  { %3935 = vset.pattern.permute.xlu0 %v6819_v6 }
 0x358   :  { %2419 = vperm.xlu1 %3927, %v1532_v26   ;;  %3004 = vperm.xlu0 %3935, %v2924_v15   ;;  %v2946_v26 = vrot.slane %v5369_v50, 1 }
 0x35a   :  { %v2950_v25 = vmul.f32 %v2946_v26, %v5369_v50 }
 0x35b   :  { %v5514_v2 = vpop.permute.xlu0 %1492 }
 0x35c   :  { %3928 = vset.pattern.permute.xlu1 %v6819_v6  ;;  %3937 = vset.pattern.permute.xlu0 %v6817_v27 }
 0x35d   :  { %2999 = vperm.xlu1 %3928, %v2923_v48   ;;  %2239 = vperm.xlu0 %3937, %v1569_v24  }
 0x361   :  { %3930 = vset.pattern.permute.xlu1 %v6813_v55  ;;  %2439 = vperm.xlu0 %3937, %v1537_v42  }
 0x362   :  { %1649 = vperm.xlu1 %3930, %v1567_v3   ;;  %v3114_v3 = vsub.s32 2, %v5396_v37 }
 0x365   :  { %3938 = vset.pattern.permute.xlu0 %v6813_v55 }
 0x366   :  { %1881 = vperm.xlu1 %3930, %v1535_v41   ;;  %1654 = vperm.xlu0 %3938, %v5506_v14  }
 0x36a   :  { %3933 = vset.pattern.permute.xlu1 %v6817_v27  ;;  %1886 = vperm.xlu0 %3938, %v5512_v34  }
 0x36b   :  { %2227 = vperm.xlu1 %3933, %v1566_v43   ;;  %v5581_v43 = vsub.f32 %v4384_v20, %v5271_v38  ;;  %v5590_v38 = vrot.slane %v2950_v25, %v3114_v3 }
 0x36c   :  { %v5518_v58 = vpop.permute.xlu0 %2959 }
 0x36e   :  { %3941 = vset.pattern.permute.xlu0 %v6819_v6 }
 0x36f   :  { %2427 = vperm.xlu1 %3933, %v1534_v13   ;;  %3014 = vperm.xlu0 %3941, %v2926_v21   ;;  %v5592_v21 = vrot.slane %v2951_v8, %v3114_v3 }
 0x371   :  { %v1610_v59 = vpop.permute.xlu0 %1609  ;;  %v3123_v53 = vadd.f32 %v5592_v21, %v5518_v58 }
 0x372   :  { %v1772_v41 = vmin.f32 %v1610_v59, %v5556_v9  ;;  %v1773_v54 = vmin.f32 %v1610_v59, %v5558_v40  ;;  %v5594_v59 = vld [vmem:[#allocation2 + $0x70] sm:$0xff] }
 0x373   :  { %3934 = vset.pattern.permute.xlu1 %v6819_v6  ;;  %3943 = vset.pattern.permute.xlu0 %v6817_v27  ;;  %v2928_v36 = vmul.f32 %v5594_v59, %v5277_v31 }
 0x374   :  { %3009 = vperm.xlu1 %3934, %v2925_v30   ;;  %2247 = vperm.xlu0 %3943, %v5528_v61  }
 0x376   :  { %v5538_v49 = vpop.permute.xlu1 %2954  ;;  %v2400_v52 = vpop.permute.xlu0 %2399 }
 0x377   :  { %v2532_v13 = vmax.f32 %v2400_v52, %v5565_v51  ;;  %v2533_v15 = vmax.f32 %v2400_v52, %v5567_v56 }
 0x378   :  { %3936 = vset.pattern.permute.xlu1 %v6813_v55  ;;  %2447 = vperm.xlu0 %3943, %v5535_v62  }
 0x379   :  { %1659 = vperm.xlu1 %3936, %v1569_v24  }
 0x37b   :  { %v1842_v7 = vpop.permute.xlu1 %1841  ;;  %v5561_v32 = vpop.permute.xlu0 %1836 }
 0x37c   :  { %3944 = vset.pattern.permute.xlu0 %v6813_v55  ;;  %v2004_v23 = vmax.f32 %v1842_v7, %v5547_v5  ;;  %v2005_v11 = vmax.f32 %v1842_v7, %v5549_v22  ;;  %v2927_v7 = vmul.f32 %v4386_v1, %v5241_v19  ;;  %v2002_v3 = vmax.f32 %v5561_v32, %v5547_v5 }
 0x37d   :  { %1891 = vperm.xlu1 %3936, %v1537_v42   ;;  %1664 = vperm.xlu0 %3944, %v5553_v18   ;;  %v2003_v25 = vmax.f32 %v5561_v32, %v5549_v22 }
 0x37e   :  { %v2068_v42 = vsub.f32 %v1772_v41, %v2004_v23  ;;  %v2069_v37 = vsub.f32 %v1773_v54, %v2005_v11  ;;  %v5614_v11 = vld [vmem:[#allocation2 + $0x78] sm:$0xff] }
 0x380   :  { %v2200_v48 = vpop.permute.xlu1 %2199  ;;  %v2196_v24 = vpop.permute.xlu0 %2195  ;;  %v2132_v60 = vmax.f32 %v2068_v42, 0.0  ;;  %v2133_v63 = vmax.f32 %v2069_v37, 0.0  ;;  %v5635_v37 = vsub.f32 %v5614_v11, %v5261_v57 }
 0x381   :  { %v2332_v50 = vmin.f32 %v2200_v48, %v5563_v4  ;;  %v2333_v0 = vmin.f32 %v2200_v48, %v5570_v10  ;;  %3939 = vset.pattern.permute.xlu1 %v6817_v27  ;;  %1896 = vperm.xlu0 %3944, %v5581_v43   ;;  %v2330_v54 = vmin.f32 %v2196_v24, %v5563_v4 }
 0x382   :  { %2235 = vperm.xlu1 %3939, %v5506_v14   ;;  %v3122_v14 = vadd.f32 %v5590_v38, %v5518_v58  ;;  %v5618_v58 = vadd.f32 %v5614_v11, %v5261_v57  ;;  %v2331_v20 = vmin.f32 %v2196_v24, %v5570_v10  ;;  %v3121_v57 = vadd.f32 %v5592_v21, %v5538_v49 }
 0x383   :  { %v2596_v17 = vsub.f32 %v2332_v50, %v2532_v13  ;;  %v2597_v39 = vsub.f32 %v2333_v0, %v2533_v15 }
 0x384   :  { %v5598_v30 = vpop.permute.xlu0 %2207 }
 0x385   :  { %v2660_v35 = vmax.f32 %v2596_v17, 0.0  ;;  %v2661_v52 = vmax.f32 %v2597_v39, 0.0  ;;  %v1605_v29 = vpop.permute.xlu1 %1604  ;;  %3947 = vset.pattern.permute.xlu0 %v6819_v6 }
 0x386   :  { %2435 = vperm.xlu1 %3939, %v5512_v34   ;;  %3024 = vperm.xlu0 %3947, %v2928_v36   ;;  %v1770_v31 = vmin.f32 %v1605_v29, %v5556_v9  ;;  %v1771_v33 = vmin.f32 %v1605_v29, %v5558_v40 }
 0x387   :  { %v2724_v46 = vmul.f32 %v2660_v35, %v2132_v60  ;;  %v5606_v45 = vmul.f32 %v2661_v52, %v2133_v63  ;;  %v3120_v63 = vadd.f32 %v5590_v38, %v5538_v49 }
 0x388   :  { %v5610_v26 = vpop.permute.xlu0 %2407  ;;  %v2066_v13 = vsub.f32 %v1770_v31, %v2002_v3  ;;  %v2067_v15 = vsub.f32 %v1771_v33, %v2003_v25 }
 0x389   :  { %v3186_v34 = vsub.f32 %v3122_v14, %v2724_v46  ;;  %v3187_v23 = vsub.f32 %v3123_v53, %v5606_v45  ;;  %v5652_v14 = vadd.f32 %v5594_v59, %v5285_v16  ;;  %v2536_v25 = vmax.f32 %v5610_v26, %v5565_v51 }
 0x38a   :  { %v2396_v8 = vpop.permute.xlu1 %2395  ;;  %3940 = vset.pattern.permute.xlu1 %v6819_v6  ;;  %3949 = vset.pattern.permute.xlu0 %v6817_v27  ;;  %v2130_v17 = vmax.f32 %v2066_v13, 0.0  ;;  %v2131_v39 = vmax.f32 %v2067_v15, 0.0 }
 0x38b   :  { %v3250_v41 = vadd.f32 1e-06, %v3186_v34  ;;  %v3251_v19 = vadd.f32 1e-06, %v3187_v23  ;;  %3019 = vperm.xlu1 %3940, %v2927_v7   ;;  %v2530_v48 = vmax.f32 %v2396_v8, %v5565_v51  ;;  %v2531_v42 = vmax.f32 %v2396_v8, %v5567_v56  ;;  %2255 = vperm.xlu0 %3949, %v5618_v58  }
 0x38c   :  { %v5662_v7 = vsub.f32 %v5594_v59, %v5285_v16  ;;  %v2537_v8 = vmax.f32 %v5610_v26, %v5567_v56  ;;  %v2336_v16 = vmin.f32 %v5598_v30, %v5563_v4  ;;  %v2337_v59 = vmin.f32 %v5598_v30, %v5570_v10  ;;  %v5680_v26 = vld [vmem:[#allocation2 + $0x80] sm:$0xff] }
 0x38d   :  { %4255 = vrcp.f32 %v3250_v41  ;;  %v5631_v32 = vpop.permute.xlu0 %1846  ;;  %v2594_v24 = vsub.f32 %v2330_v54, %v2530_v48  ;;  %v2595_v50 = vsub.f32 %v2331_v20, %v2531_v42 }
 0x38e   :  { %4257 = vrcp.f32 %v3251_v19  ;;  %v2600_v19 = vsub.f32 %v2336_v16, %v2536_v25  ;;  %v2601_v54 = vsub.f32 %v2337_v59, %v2537_v8 }
 0x38f   :  { %v5637_v0 = vpop.permute.xlu1 %2969  ;;  %3942 = vset.pattern.permute.xlu1 %v6813_v55  ;;  %v2658_v36 = vmax.f32 %v2594_v24, 0.0  ;;  %v2659_v60 = vmax.f32 %v2595_v50, 0.0  ;;  %2455 = vperm.xlu0 %3949, %v5635_v37  }
 0x390   :  { %1669 = vperm.xlu1 %3942, %v5528_v61  }
 0x391   :  { %v2722_v35 = vmul.f32 %v2658_v36, %v2130_v17  ;;  %v5646_v52 = vmul.f32 %v2659_v60, %v2131_v39  ;;  %v2664_v17 = vmax.f32 %v2600_v19, 0.0  ;;  %v2665_v39 = vmax.f32 %v2601_v54, 0.0 }
 0x392   :  { %v5648_v29 = vpop.permute.xlu0 %2974 }
 0x393   :  { %v5654_v53 = vpop.permute.xlu1 %2964  ;;  %v3184_v31 = vsub.f32 %v3120_v63, %v2722_v35  ;;  %v3185_v61 = vsub.f32 %v3121_v57, %v5646_v52  ;;  %3950 = vset.pattern.permute.xlu0 %v6813_v55  ;;  %v5694_v57 = vld [vmem:[#allocation2 + $0x88] sm:$0xff] }
 0x394   :  { %1901 = vperm.xlu1 %3942, %v5535_v62   ;;  %1674 = vperm.xlu0 %3950, %v5652_v14  }
 0x395   :  { %v3248_v49 = vadd.f32 1e-06, %v3184_v31  ;;  %v3249_v33 = vadd.f32 1e-06, %v3185_v61  ;;  %v5698_v31 = vadd.f32 %v5694_v57, %v5275_v12  ;;  %v3127_v61 = vadd.f32 %v5592_v21, %v5637_v0 }
 0x397   :  { %v4256_v1 = vpop.eup %4255  ;;  %v5664_v34 = vpop.permute.xlu0 %2215  ;;  %4259 = vrcp.f32 %v3248_v49 }
 0x398   :  { %v4258_v23 = vpop.eup %4257  ;;  %v3378_v3 = vmul.f32 %v4256_v1, %v2724_v46  ;;  %v1620_v62 = vpop.permute.xlu1 %1619  ;;  %4261 = vrcp.f32 %v3249_v33  ;;  %3945 = vset.pattern.permute.xlu1 %v6817_v27  ;;  %1906 = vperm.xlu0 %3950, %v5662_v7  }
 0x399   :  { %v3379_v41 = vmul.f32 %v4258_v23, %v5606_v45  ;;  %2243 = vperm.xlu1 %3945, %v5553_v18   ;;  %v2930_v45 = vmul.f32 %v5680_v26, %v5291_v47  ;;  %v1776_v13 = vmin.f32 %v1620_v62, %v5556_v9  ;;  %v1777_v15 = vmin.f32 %v1620_v62, %v5558_v40 }
 0x39a   :  { %3442 = vst [vmem:[#allocation7 + $0x10] sm:$0xff] %v3378_v3  ;;  %v2929_v47 = vmul.f32 %v5614_v11, %v5253_v44 }
 0x39b   :  { %3443 = vst [vmem:[#allocation7 + $0x18] sm:$0xff] %v3379_v41  ;;  %v5678_v46 = vpop.permute.xlu0 %2415  ;;  %v2007_v41 = vmax.f32 %v5631_v32, %v5549_v22 }
 0x39c   :  { %v1852_v20 = vpop.permute.xlu1 %1851  ;;  %3953 = vset.pattern.permute.xlu0 %v6819_v6 }
 0x39d   :  { %v2008_v48 = vmax.f32 %v1852_v20, %v5547_v5  ;;  %v2009_v30 = vmax.f32 %v1852_v20, %v5549_v22  ;;  %2443 = vperm.xlu1 %3945, %v5581_v43   ;;  %3034 = vperm.xlu0 %3953, %v2930_v45   ;;  %v3126_v43 = vadd.f32 %v5590_v38, %v5637_v0 }
 0x39e   :  { %v5717_v0 = vsub.f32 %v5694_v57, %v5275_v12 }
 0x39f   :  { %v2072_v18 = vsub.f32 %v1776_v13, %v2008_v48  ;;  %v2073_v42 = vsub.f32 %v1777_v15, %v2009_v30  ;;  %v5734_v48 = vadd.f32 %v5680_v26, %v5298_v28 }
 0x3a0   :  { %v1615_v24 = vpop.permute.xlu1 %1614  ;;  %v5692_v50 = vpop.permute.xlu0 %1624 }
 0x3a1   :  { %v2136_v36 = vmax.f32 %v2072_v18, 0.0  ;;  %v2137_v60 = vmax.f32 %v2073_v42, 0.0  ;;  %v4260_v63 = vpop.eup %4259  ;;  %3946 = vset.pattern.permute.xlu1 %v6819_v6  ;;  %3955 = vset.pattern.permute.xlu0 %v6817_v27  ;;  %v1774_v8 = vmin.f32 %v1615_v24, %v5556_v9 }
 0x3a2   :  { %v4262_v44 = vpop.eup %4261  ;;  %v3376_v11 = vmul.f32 %v4260_v63, %v2722_v35  ;;  %3029 = vperm.xlu1 %3946, %v2929_v47   ;;  %2263 = vperm.xlu0 %3955, %v5698_v31   ;;  %v1775_v35 = vmin.f32 %v1615_v24, %v5558_v40  ;;  %v3125_v63 = vadd.f32 %v5592_v21, %v5654_v53 }
 0x3a3   :  { %v2728_v49 = vmul.f32 %v2664_v17, %v2136_v36  ;;  %v5706_v33 = vmul.f32 %v2665_v39, %v2137_v60  ;;  %v3377_v1 = vmul.f32 %v4262_v44, %v5646_v52  ;;  %v2006_v52 = vmax.f32 %v5631_v32, %v5547_v5 }
 0x3a4   :  { %v5710_v23 = vpop.permute.xlu0 %1856  ;;  %3440 = vst [vmem:[#allocation7] sm:$0xff] %v3376_v11  ;;  %v2071_v19 = vsub.f32 %v1775_v35, %v2007_v41  ;;  %v5743_v36 = vsub.f32 %v5680_v26, %v5298_v28  ;;  %v3124_v60 = vadd.f32 %v5590_v38, %v5654_v53  ;;  %v2540_v53 = vmax.f32 %v5678_v46, %v5565_v51 }
 0x3a5   :  { %v3190_v3 = vsub.f32 %v3126_v43, %v2728_v49  ;;  %v3191_v25 = vsub.f32 %v3127_v61, %v5706_v33  ;;  %v2204_v62 = vpop.permute.xlu1 %2203  ;;  %3441 = vst [vmem:[#allocation7 + $0x8] sm:$0xff] %v3377_v1  ;;  %v2070_v45 = vsub.f32 %v1774_v8, %v2006_v52  ;;  %v2541_v61 = vmax.f32 %v5678_v46, %v5567_v56  ;;  %v6825_v8 = vld [vmem:[#allocation17_spill] sm:$0xff] }
 0x3a6   :  { %3948 = vset.pattern.permute.xlu1 %v6813_v55  ;;  %2463 = vperm.xlu0 %3955, %v5717_v0   ;;  %v2334_v12 = vmin.f32 %v2204_v62, %v5563_v4  ;;  %v2335_v13 = vmin.f32 %v2204_v62, %v5570_v10  ;;  %v2135_v42 = vmax.f32 %v2071_v19, 0.0  ;;  %v2340_v41 = vmin.f32 %v5664_v34, %v5563_v4 }
 0x3a7   :  { %v3254_v16 = vadd.f32 1e-06, %v3190_v3  ;;  %v3255_v59 = vadd.f32 1e-06, %v3191_v25  ;;  %1679 = vperm.xlu1 %3948, %v5618_v58   ;;  %v2134_v18 = vmax.f32 %v2070_v45, 0.0  ;;  %v5764_v25 = vld [vmem:[#allocation2 + $0x90] sm:$0xff] }
 0x3a8   :  { %v2604_v46 = vsub.f32 %v2340_v41, %v2540_v53  ;;  %v1778_v53 = vmin.f32 %v5692_v50, %v5556_v9 }
 0x3a9   :  { %4263 = vrcp.f32 %v3254_v16  ;;  %v2404_v54 = vpop.permute.xlu1 %2403  ;;  %v5727_v20 = vpop.permute.xlu0 %2984  ;;  %v2341_v16 = vmin.f32 %v5664_v34, %v5570_v10 }
 0x3aa   :  { %4265 = vrcp.f32 %v3255_v59  ;;  %v2534_v32 = vmax.f32 %v2404_v54, %v5565_v51  ;;  %v2535_v15 = vmax.f32 %v2404_v54, %v5567_v56  ;;  %3956 = vset.pattern.permute.xlu0 %v6813_v55 }
 0x3ab   :  { %1911 = vperm.xlu1 %3948, %v5635_v37   ;;  %1684 = vperm.xlu0 %3956, %v5734_v48   ;;  %v2605_v45 = vsub.f32 %v2341_v16, %v2541_v61  ;;  %v1779_v61 = vmin.f32 %v5692_v50, %v5558_v40 }
 0x3ac   :  { %v2598_v58 = vsub.f32 %v2334_v12, %v2534_v32  ;;  %v2599_v30 = vsub.f32 %v2335_v13, %v2535_v15  ;;  %v6826_v13 = vld [vmem:[#allocation12_spill] sm:$0xff]  ;;  %v6827_v15 = vld [vmem:[#allocation14_spill] sm:$0xff] }
 0x3ad   :  { %v2931_v32 = vmul.f32 %v5694_v57, %v6826_v13 }
 0x3ae   :  { %v2662_v47 = vmax.f32 %v2598_v58, 0.0  ;;  %v2663_v24 = vmax.f32 %v2599_v30, 0.0  ;;  %v2980_v17 = vpop.permute.xlu1 %2979  ;;  %v5739_v39 = vpop.permute.xlu0 %2223 }
 0x3af   :  { %3951 = vset.pattern.permute.xlu1 %v6817_v27  ;;  %1916 = vperm.xlu0 %3956, %v5743_v36  }
 0x3b0   :  { %v5749_v37 = vmul.f32 %v2662_v47, %v2134_v18  ;;  %v5751_v43 = vmul.f32 %v2663_v24, %v2135_v42  ;;  %2251 = vperm.xlu1 %3951, %v5652_v14   ;;  %v2932_v14 = vmul.f32 %v5764_v25, %v6825_v8  ;;  %v2668_v42 = vmax.f32 %v2604_v46, 0.0 }
 0x3b1   :  { %v2010_v47 = vmax.f32 %v5710_v23, %v5547_v5  ;;  %v2669_v24 = vmax.f32 %v2605_v45, 0.0 }
 0x3b2   :  { %v3188_v44 = vsub.f32 %v3124_v60, %v5749_v37  ;;  %v3189_v28 = vsub.f32 %v3125_v63, %v5751_v43  ;;  %v5758_v26 = vpop.permute.xlu0 %2423  ;;  %v2011_v60 = vmax.f32 %v5710_v23, %v5549_v22 }
 0x3b3   :  { %v4264_v11 = vpop.eup %4263  ;;  %v1630_v1 = vpop.permute.xlu1 %1629  ;;  %3959 = vset.pattern.permute.xlu0 %v6819_v6 }
 0x3b4   :  { %v4266_v3 = vpop.eup %4265  ;;  %v3382_v35 = vmul.f32 %v4264_v11, %v2728_v49  ;;  %v3252_v62 = vadd.f32 1e-06, %v3188_v44  ;;  %v3253_v52 = vadd.f32 1e-06, %v3189_v28  ;;  %2451 = vperm.xlu1 %3951, %v5662_v7   ;;  %3044 = vperm.xlu0 %3959, %v2932_v14   ;;  %v1780_v12 = vmin.f32 %v1630_v1, %v5556_v9  ;;  %v5783_v7 = vld [vmem:[#allocation2 + $0x98] sm:$0xff] }
 0x3b5   :  { %v3383_v59 = vmul.f32 %v4266_v3, %v5706_v33  ;;  %v1781_v34 = vmin.f32 %v1630_v1, %v5558_v40  ;;  %v5787_v58 = vadd.f32 %v5783_v7, %v6827_v15  ;;  %v5800_v11 = vsub.f32 %v5783_v7, %v6827_v15 }
 0x3b6   :  { %3446 = vst [vmem:[#allocation7 + $0x30] sm:$0xff] %v3382_v35  ;;  %4267 = vrcp.f32 %v3252_v62  ;;  %v3130_v1 = vadd.f32 %v5590_v38, %v2980_v17  ;;  %v3131_v3 = vadd.f32 %v5592_v21, %v2980_v17  ;;  %v2074_v14 = vsub.f32 %v1778_v53, %v2010_v47 }
 0x3b7   :  { %3447 = vst [vmem:[#allocation7 + $0x38] sm:$0xff] %v3383_v59  ;;  %4269 = vrcp.f32 %v3253_v52  ;;  %v1862_v49 = vpop.permute.xlu1 %1861  ;;  %v5775_v19 = vpop.permute.xlu0 %1634  ;;  %v2075_v62 = vsub.f32 %v1779_v61, %v2011_v60  ;;  %v3128_v60 = vadd.f32 %v5590_v38, %v5648_v29  ;;  %v2544_v61 = vmax.f32 %v5758_v26, %v5565_v51 }
 0x3b8   :  { %v2012_v33 = vmax.f32 %v1862_v49, %v5547_v5  ;;  %v2013_v54 = vmax.f32 %v1862_v49, %v5549_v22  ;;  %3952 = vset.pattern.permute.xlu1 %v6819_v6  ;;  %3961 = vset.pattern.permute.xlu0 %v6817_v27 }
 0x3b9   :  { %3039 = vperm.xlu1 %3952, %v2931_v32   ;;  %2271 = vperm.xlu0 %3961, %v5787_v58  }
 0x3ba   :  { %v2076_v30 = vsub.f32 %v1780_v12, %v2012_v33  ;;  %v2077_v18 = vsub.f32 %v1781_v34, %v2013_v54  ;;  %v6828_v34 = vld [vmem:[#allocation19_spill] sm:$0xff] }
 0x3bb   :  { %v5794_v57 = vpop.permute.xlu0 %1866  ;;  %v5826_v33 = vadd.f32 %v5764_v25, %v6828_v34 }
 0x3bc   :  { %v2140_v63 = vmax.f32 %v2076_v30, 0.0  ;;  %v2141_v44 = vmax.f32 %v2077_v18, 0.0  ;;  %v2212_v28 = vpop.permute.xlu1 %2211  ;;  %v2139_v30 = vmax.f32 %v2075_v62, 0.0 }
 0x3bd   :  { %3954 = vset.pattern.permute.xlu1 %v6813_v55  ;;  %2471 = vperm.xlu0 %3961, %v5800_v11   ;;  %v2338_v50 = vmin.f32 %v2212_v28, %v5563_v4  ;;  %v2339_v45 = vmin.f32 %v2212_v28, %v5570_v10 }
 0x3be   :  { %v5808_v8 = vmul.f32 %v2668_v42, %v2140_v63  ;;  %v5810_v23 = vmul.f32 %v2669_v24, %v2141_v44  ;;  %1689 = vperm.xlu1 %3954, %v5698_v31   ;;  %v5836_v24 = vsub.f32 %v5764_v25, %v6828_v34  ;;  %v3129_v63 = vadd.f32 %v5592_v21, %v5648_v29 }
 0x3bf   :  { %v2545_v29 = vmax.f32 %v5758_v26, %v5567_v56 }
 0x3c0   :  { %v4268_v35 = vpop.eup %4267  ;;  %v3194_v52 = vsub.f32 %v3130_v1, %v5808_v8  ;;  %v3195_v41 = vsub.f32 %v3131_v3, %v5810_v23  ;;  %v2412_v17 = vpop.permute.xlu1 %2411  ;;  %v5857_v3 = vld [vmem:[#allocation2 + $0xa0] sm:$0xff] }
 0x3c1   :  { %v5818_v16 = vpop.permute.xlu0 %2994  ;;  %v4270_v59 = vpop.eup %4269  ;;  %v3380_v46 = vmul.f32 %v4268_v35, %v5749_v37  ;;  %v2538_v49 = vmax.f32 %v2412_v17, %v5565_v51  ;;  %v2539_v12 = vmax.f32 %v2412_v17, %v5567_v56  ;;  %3962 = vset.pattern.permute.xlu0 %v6813_v55  ;;  %v2138_v37 = vmax.f32 %v2074_v14, 0.0  ;;  %v6829_v14 = vld [vmem:[#allocation21_spill] sm:$0xff] }
 0x3c2   :  { %v3381_v54 = vmul.f32 %v4270_v59, %v5751_v43  ;;  %v3258_v13 = vadd.f32 1e-06, %v3194_v52  ;;  %v3259_v31 = vadd.f32 1e-06, %v3195_v41  ;;  %1921 = vperm.xlu1 %3954, %v5717_v0   ;;  %1694 = vperm.xlu0 %3962, %v5826_v33   ;;  %v2934_v35 = vmul.f32 %v5857_v3, %v6829_v14 }
 0x3c3   :  { %3444 = vst [vmem:[#allocation7 + $0x20] sm:$0xff] %v3380_v46  ;;  %v2602_v32 = vsub.f32 %v2338_v50, %v2538_v49  ;;  %v2603_v15 = vsub.f32 %v2339_v45, %v2539_v12  ;;  %v2344_v41 = vmin.f32 %v5739_v39, %v5563_v4 }
 0x3c4   :  { %3445 = vst [vmem:[#allocation7 + $0x28] sm:$0xff] %v3381_v54  ;;  %4271 = vrcp.f32 %v3258_v13 }
 0x3c5   :  { %4273 = vrcp.f32 %v3259_v31  ;;  %v2666_v18 = vmax.f32 %v2602_v32, 0.0  ;;  %v2667_v42 = vmax.f32 %v2603_v15, 0.0  ;;  %v2990_v47 = vpop.permute.xlu1 %2989  ;;  %v5832_v43 = vpop.permute.xlu0 %2231  ;;  %v2608_v50 = vsub.f32 %v2344_v41, %v2544_v61  ;;  %v5876_v31 = vld [vmem:[#allocation2 + $0xa8] sm:$0xff] }
 0x3c6   :  { %3957 = vset.pattern.permute.xlu1 %v6817_v27  ;;  %1926 = vperm.xlu0 %3962, %v5836_v24   ;;  %v6831_v32 = vld [vmem:[#allocation16_spill] sm:$0xff]  ;;  %v3134_v14 = vadd.f32 %v5590_v38, %v2990_v47 }
 0x3c7   :  { %v5842_v0 = vmul.f32 %v2666_v18, %v2138_v37  ;;  %v5844_v44 = vmul.f32 %v2667_v42, %v2139_v30  ;;  %2259 = vperm.xlu1 %3957, %v5734_v48   ;;  %v2345_v48 = vmin.f32 %v5739_v39, %v5570_v10  ;;  %v5880_v15 = vadd.f32 %v5876_v31, %v6831_v32 }
 0x3c8   :  { %v2672_v18 = vmax.f32 %v2608_v50, 0.0  ;;  %v5894_v61 = vsub.f32 %v5876_v31, %v6831_v32 }
 0x3c9   :  { %v3192_v28 = vsub.f32 %v3128_v60, %v5842_v0  ;;  %v3193_v53 = vsub.f32 %v3129_v63, %v5844_v44  ;;  %v5851_v25 = vpop.permute.xlu0 %2431  ;;  %v2609_v17 = vsub.f32 %v2345_v48, %v2545_v29  ;;  %v1782_v29 = vmin.f32 %v5775_v19, %v5556_v9 }
 0x3ca   :  { %v1640_v1 = vpop.permute.xlu1 %1639  ;;  %3965 = vset.pattern.permute.xlu0 %v6819_v6 }
 0x3cb   :  { %v3256_v62 = vadd.f32 1e-06, %v3192_v28  ;;  %v3257_v52 = vadd.f32 1e-06, %v3193_v53  ;;  %2459 = vperm.xlu1 %3957, %v5743_v36   ;;  %3054 = vperm.xlu0 %3965, %v2934_v35   ;;  %v1784_v59 = vmin.f32 %v1640_v1, %v5556_v9  ;;  %v1785_v39 = vmin.f32 %v1640_v1, %v5558_v40  ;;  %v6830_v36 = vld [vmem:[#allocation13_spill] sm:$0xff] }
 0x3cc   :  { %v2933_v13 = vmul.f32 %v5783_v7, %v6830_v36  ;;  %v2014_v7 = vmax.f32 %v5794_v57, %v5547_v5  ;;  %v2673_v60 = vmax.f32 %v2609_v17, 0.0  ;;  %v1783_v1 = vmin.f32 %v5775_v19, %v5558_v40 }
 0x3cd   :  { %4275 = vrcp.f32 %v3256_v62  ;;  %v3135_v35 = vadd.f32 %v5592_v21, %v2990_v47 }
 0x3ce   :  { %v4272_v26 = vpop.eup %4271  ;;  %4277 = vrcp.f32 %v3257_v52  ;;  %v1872_v46 = vpop.permute.xlu1 %1871  ;;  %v2078_v52 = vsub.f32 %v1782_v29, %v2014_v7 }
 0x3cf   :  { %v5868_v45 = vpop.permute.xlu0 %1644  ;;  %v4274_v49 = vpop.eup %4273  ;;  %v3386_v12 = vmul.f32 %v4272_v26, %v5808_v8  ;;  %v2016_v34 = vmax.f32 %v1872_v46, %v5547_v5  ;;  %v2017_v54 = vmax.f32 %v1872_v46, %v5549_v22  ;;  %3958 = vset.pattern.permute.xlu1 %v6819_v6  ;;  %3967 = vset.pattern.permute.xlu0 %v6817_v27 }
 0x3d0   :  { %v3387_v37 = vmul.f32 %v4274_v49, %v5810_v23  ;;  %3049 = vperm.xlu1 %3958, %v2933_v13   ;;  %2279 = vperm.xlu0 %3967, %v5880_v15   ;;  %v2015_v23 = vmax.f32 %v5794_v57, %v5549_v22 }
 0x3d1   :  { %3450 = vst [vmem:[#allocation7 + $0x50] sm:$0xff] %v3386_v12  ;;  %v2080_v30 = vsub.f32 %v1784_v59, %v2016_v34  ;;  %v2081_v8 = vsub.f32 %v1785_v39, %v2017_v54  ;;  %v6832_v34 = vld [vmem:[#allocation23_spill] sm:$0xff] }
 0x3d2   :  { %3451 = vst [vmem:[#allocation7 + $0x58] sm:$0xff] %v3387_v37  ;;  %v2079_v48 = vsub.f32 %v1783_v1, %v2015_v23  ;;  %v5920_v54 = vadd.f32 %v5857_v3, %v6832_v34  ;;  %v3132_v23 = vadd.f32 %v5590_v38, %v5727_v20  ;;  %v2548_v1 = vmax.f32 %v5851_v25, %v5565_v51 }
 0x3d3   :  { %v5888_v42 = vpop.permute.xlu0 %1876  ;;  %v2144_v63 = vmax.f32 %v2080_v30, 0.0  ;;  %v2145_v28 = vmax.f32 %v2081_v8, 0.0  ;;  %v2220_v53 = vpop.permute.xlu1 %2219 }
 0x3d4   :  { %3960 = vset.pattern.permute.xlu1 %v6813_v55  ;;  %2479 = vperm.xlu0 %3967, %v5894_v61   ;;  %v2342_v19 = vmin.f32 %v2220_v53, %v5563_v4  ;;  %v2343_v49 = vmin.f32 %v2220_v53, %v5570_v10  ;;  %v2143_v30 = vmax.f32 %v2079_v48, 0.0 }
 0x3d5   :  { %v5902_v62 = vmul.f32 %v2672_v18, %v2144_v63  ;;  %v5904_v57 = vmul.f32 %v2673_v60, %v2145_v28  ;;  %1699 = vperm.xlu1 %3960, %v5787_v58   ;;  %v5930_v60 = vsub.f32 %v5857_v3, %v6832_v34  ;;  %v3133_v63 = vadd.f32 %v5592_v21, %v5727_v20 }
 0x3d6   :  { %v2549_v20 = vmax.f32 %v5851_v25, %v5567_v56 }
 0x3d7   :  { %v4276_v41 = vpop.eup %4275  ;;  %v3198_v26 = vsub.f32 %v3134_v14, %v5902_v62  ;;  %v3199_v50 = vsub.f32 %v3135_v35, %v5904_v57  ;;  %v2420_v47 = vpop.permute.xlu1 %2419  ;;  %v5951_v35 = vld [vmem:[#allocation2 + $0xb0] sm:$0xff] }
 0x3d8   :  { %v5912_v17 = vpop.permute.xlu0 %3004  ;;  %v4278_v59 = vpop.eup %4277  ;;  %v3384_v46 = vmul.f32 %v4276_v41, %v5842_v0  ;;  %v2542_v12 = vmax.f32 %v2420_v47, %v5565_v51  ;;  %v2543_v39 = vmax.f32 %v2420_v47, %v5567_v56  ;;  %3968 = vset.pattern.permute.xlu0 %v6813_v55  ;;  %v2142_v0 = vmax.f32 %v2078_v52, 0.0  ;;  %v6833_v52 = vld [vmem:[#allocation25_spill] sm:$0xff] }
 0x3d9   :  { %v3385_v36 = vmul.f32 %v4278_v59, %v5844_v44  ;;  %v3262_v13 = vadd.f32 1e-06, %v3198_v26  ;;  %v3263_v58 = vadd.f32 1e-06, %v3199_v50  ;;  %1931 = vperm.xlu1 %3960, %v5800_v11   ;;  %1704 = vperm.xlu0 %3968, %v5920_v54   ;;  %v2936_v41 = vmul.f32 %v5951_v35, %v6833_v52 }
 0x3da   :  { %3448 = vst [vmem:[#allocation7 + $0x40] sm:$0xff] %v3384_v46  ;;  %v2606_v32 = vsub.f32 %v2342_v19, %v2542_v12  ;;  %v2607_v37 = vsub.f32 %v2343_v49, %v2543_v39  ;;  %v2348_v50 = vmin.f32 %v5832_v43, %v5563_v4 }
 0x3db   :  { %3449 = vst [vmem:[#allocation7 + $0x48] sm:$0xff] %v3385_v36  ;;  %4279 = vrcp.f32 %v3262_v13 }
 0x3dc   :  { %4281 = vrcp.f32 %v3263_v58  ;;  %v2670_v8 = vmax.f32 %v2606_v32, 0.0  ;;  %v2671_v18 = vmax.f32 %v2607_v37, 0.0  ;;  %v3000_v7 = vpop.permute.xlu1 %2999  ;;  %v5926_v44 = vpop.permute.xlu0 %2239  ;;  %v2612_v19 = vsub.f32 %v2348_v50, %v2548_v1  ;;  %v5970_v58 = vld [vmem:[#allocation2 + $0xb8] sm:$0xff]  ;;  %v6835_v32 = vld [vmem:[#allocation20_spill] sm:$0xff] }
 0x3dd   :  { %3963 = vset.pattern.permute.xlu1 %v6817_v27  ;;  %1936 = vperm.xlu0 %3968, %v5930_v60   ;;  %v5974_v37 = vadd.f32 %v5970_v58, %v6835_v32  ;;  %v5988_v1 = vsub.f32 %v5970_v58, %v6835_v32  ;;  %v3138_v52 = vadd.f32 %v5590_v38, %v3000_v7 }
 0x3de   :  { %v5936_v11 = vmul.f32 %v2670_v8, %v2142_v0  ;;  %v5938_v28 = vmul.f32 %v2671_v18, %v2143_v30  ;;  %2267 = vperm.xlu1 %3963, %v5826_v33   ;;  %v2349_v33 = vmin.f32 %v5832_v43, %v5570_v10  ;;  %v2676_v8 = vmax.f32 %v2612_v19, 0.0 }
 0x3e0   :  { %v3196_v53 = vsub.f32 %v3132_v23, %v5936_v11  ;;  %v3197_v29 = vsub.f32 %v3133_v63, %v5938_v28  ;;  %v5945_v3 = vpop.permute.xlu0 %2439  ;;  %v2613_v47 = vsub.f32 %v2349_v33, %v2549_v20  ;;  %v1786_v20 = vmin.f32 %v5868_v45, %v5556_v9 }
 0x3e1   :  { %v1650_v14 = vpop.permute.xlu1 %1649  ;;  %3971 = vset.pattern.permute.xlu0 %v6819_v6 }
 0x3e2   :  { %v3260_v48 = vadd.f32 1e-06, %v3196_v53  ;;  %v3261_v26 = vadd.f32 1e-06, %v3197_v29  ;;  %2467 = vperm.xlu1 %3963, %v5836_v24   ;;  %3064 = vperm.xlu0 %3971, %v2936_v41   ;;  %v1788_v59 = vmin.f32 %v1650_v14, %v5556_v9  ;;  %v1789_v43 = vmin.f32 %v1650_v14, %v5558_v40  ;;  %v6834_v24 = vld [vmem:[#allocation15_spill] sm:$0xff] }
 0x3e3   :  { %v2935_v13 = vmul.f32 %v5876_v31, %v6834_v24  ;;  %v2018_v31 = vmax.f32 %v5888_v42, %v5547_v5  ;;  %v2677_v23 = vmax.f32 %v2613_v47, 0.0  ;;  %v1787_v14 = vmin.f32 %v5868_v45, %v5558_v40 }
 0x3e4   :  { %4283 = vrcp.f32 %v3260_v48  ;;  %v3139_v41 = vadd.f32 %v5592_v21, %v3000_v7 }
 0x3e5   :  { %v4280_v25 = vpop.eup %4279  ;;  %4285 = vrcp.f32 %v3261_v26  ;;  %v1882_v46 = vpop.permute.xlu1 %1881  ;;  %v2082_v26 = vsub.f32 %v1786_v20, %v2018_v31 }
 0x3e6   :  { %v5962_v49 = vpop.permute.xlu0 %1654  ;;  %v4282_v12 = vpop.eup %4281  ;;  %v3390_v39 = vmul.f32 %v4280_v25, %v5902_v62  ;;  %v2020_v34 = vmax.f32 %v1882_v46, %v5547_v5  ;;  %v2021_v36 = vmax.f32 %v1882_v46, %v5549_v22  ;;  %3964 = vset.pattern.permute.xlu1 %v6819_v6  ;;  %3973 = vset.pattern.permute.xlu0 %v6817_v27 }
 0x3e7   :  { %v3391_v0 = vmul.f32 %v4282_v12, %v5904_v57  ;;  %3059 = vperm.xlu1 %3964, %v2935_v13   ;;  %2287 = vperm.xlu0 %3973, %v5974_v37   ;;  %v2019_v57 = vmax.f32 %v5888_v42, %v5549_v22 }
 0x3e8   :  { %3454 = vst [vmem:[#allocation7 + $0x70] sm:$0xff] %v3390_v39  ;;  %v2084_v30 = vsub.f32 %v1788_v59, %v2020_v34  ;;  %v2085_v62 = vsub.f32 %v1789_v43, %v2021_v36  ;;  %v6836_v34 = vld [vmem:[#allocation27_spill] sm:$0xff] }
 0x3e9   :  { %3455 = vst [vmem:[#allocation7 + $0x78] sm:$0xff] %v3391_v0  ;;  %v2083_v33 = vsub.f32 %v1787_v14, %v2019_v57  ;;  %v6014_v36 = vadd.f32 %v5951_v35, %v6836_v34  ;;  %v3136_v57 = vadd.f32 %v5590_v38, %v5818_v16  ;;  %v2552_v14 = vmax.f32 %v5945_v3, %v5565_v51 }
 0x3ea   :  { %v5982_v18 = vpop.permute.xlu0 %1886  ;;  %v2148_v63 = vmax.f32 %v2084_v30, 0.0  ;;  %v2149_v53 = vmax.f32 %v2085_v62, 0.0  ;;  %v2228_v29 = vpop.permute.xlu1 %2227 }
 0x3eb   :  { %3966 = vset.pattern.permute.xlu1 %v6813_v55  ;;  %2487 = vperm.xlu0 %3973, %v5988_v1   ;;  %v2346_v45 = vmin.f32 %v2228_v29, %v5563_v4  ;;  %v2347_v12 = vmin.f32 %v2228_v29, %v5570_v10  ;;  %v2147_v30 = vmax.f32 %v2083_v33, 0.0 }
 0x3ec   :  { %v5996_v48 = vmul.f32 %v2676_v8, %v2148_v63  ;;  %v5998_v42 = vmul.f32 %v2677_v23, %v2149_v53  ;;  %1709 = vperm.xlu1 %3966, %v5880_v15   ;;  %v6024_v23 = vsub.f32 %v5951_v35, %v6836_v34  ;;  %v3137_v63 = vadd.f32 %v5592_v21, %v5818_v16 }
 0x3ed   :  { %v2553_v16 = vmax.f32 %v5945_v3, %v5567_v56 }
 0x3ee   :  { %v4284_v50 = vpop.eup %4283  ;;  %v3202_v25 = vsub.f32 %v3138_v52, %v5996_v48  ;;  %v3203_v19 = vsub.f32 %v3139_v41, %v5998_v42  ;;  %v2428_v7 = vpop.permute.xlu1 %2427  ;;  %v6045_v41 = vld [vmem:[#allocation2 + $0xc0] sm:$0xff] }
 0x3ef   :  { %v6006_v47 = vpop.permute.xlu0 %3014  ;;  %v4286_v59 = vpop.eup %4285  ;;  %v3388_v46 = vmul.f32 %v4284_v50, %v5936_v11  ;;  %v2546_v39 = vmax.f32 %v2428_v7, %v5565_v51  ;;  %v2547_v43 = vmax.f32 %v2428_v7, %v5567_v56  ;;  %3974 = vset.pattern.permute.xlu0 %v6813_v55  ;;  %v2146_v11 = vmax.f32 %v2082_v26, 0.0  ;;  %v6837_v26 = vld [vmem:[#allocation29_spill] sm:$0xff] }
 0x3f0   :  { %v3389_v24 = vmul.f32 %v4286_v59, %v5938_v28  ;;  %v3266_v13 = vadd.f32 1e-06, %v3202_v25  ;;  %v3267_v15 = vadd.f32 1e-06, %v3203_v19  ;;  %1941 = vperm.xlu1 %3966, %v5894_v61   ;;  %1714 = vperm.xlu0 %3974, %v6014_v36   ;;  %v2938_v50 = vmul.f32 %v6045_v41, %v6837_v26 }
 0x3f1   :  { %3452 = vst [vmem:[#allocation7 + $0x60] sm:$0xff] %v3388_v46  ;;  %v2610_v32 = vsub.f32 %v2346_v45, %v2546_v39  ;;  %v2611_v0 = vsub.f32 %v2347_v12, %v2547_v43  ;;  %v2352_v19 = vmin.f32 %v5926_v44, %v5563_v4 }
 0x3f2   :  { %3453 = vst [vmem:[#allocation7 + $0x68] sm:$0xff] %v3389_v24  ;;  %4287 = vrcp.f32 %v3266_v13 }
 0x3f3   :  { %4289 = vrcp.f32 %v3267_v15  ;;  %v2674_v62 = vmax.f32 %v2610_v32, 0.0  ;;  %v2675_v8 = vmax.f32 %v2611_v0, 0.0  ;;  %v3010_v31 = vpop.permute.xlu1 %3009  ;;  %v6020_v28 = vpop.permute.xlu0 %2247  ;;  %v2616_v45 = vsub.f32 %v2352_v19, %v2552_v14  ;;  %v6064_v15 = vld [vmem:[#allocation2 + $0xc8] sm:$0xff] }
 0x3f4   :  { %3969 = vset.pattern.permute.xlu1 %v6817_v27  ;;  %1946 = vperm.xlu0 %3974, %v6024_v23   ;;  %v6839_v32 = vld [vmem:[#allocation24_spill] sm:$0xff]  ;;  %v3142_v26 = vadd.f32 %v5590_v38, %v3010_v31 }
 0x3f5   :  { %v6030_v61 = vmul.f32 %v2674_v62, %v2146_v11  ;;  %v6032_v53 = vmul.f32 %v2675_v8, %v2147_v30  ;;  %2275 = vperm.xlu1 %3969, %v5920_v54   ;;  %v2353_v54 = vmin.f32 %v5926_v44, %v5570_v10  ;;  %v6068_v0 = vadd.f32 %v6064_v15, %v6839_v32 }
 0x3f6   :  { %v2680_v62 = vmax.f32 %v2616_v45, 0.0  ;;  %v6082_v14 = vsub.f32 %v6064_v15, %v6839_v32 }
 0x3f7   :  { %v3200_v29 = vsub.f32 %v3136_v57, %v6030_v61  ;;  %v3201_v20 = vsub.f32 %v3137_v63, %v6032_v53  ;;  %v6039_v35 = vpop.permute.xlu0 %2447  ;;  %v2617_v7 = vsub.f32 %v2353_v54, %v2553_v16  ;;  %v2023_v57 = vmax.f32 %v5982_v18, %v5549_v22 }
 0x3f8   :  { %v1660_v52 = vpop.permute.xlu1 %1659  ;;  %3977 = vset.pattern.permute.xlu0 %v6819_v6  ;;  %v1790_v16 = vmin.f32 %v5962_v49, %v5556_v9 }
 0x3f9   :  { %v3264_v33 = vadd.f32 1e-06, %v3200_v29  ;;  %v3265_v25 = vadd.f32 1e-06, %v3201_v20  ;;  %2475 = vperm.xlu1 %3969, %v5930_v60   ;;  %3074 = vperm.xlu0 %3977, %v2938_v50   ;;  %v1792_v59 = vmin.f32 %v1660_v52, %v5556_v9  ;;  %v1793_v44 = vmin.f32 %v1660_v52, %v5558_v40  ;;  %v6838_v60 = vld [vmem:[#allocation18_spill] sm:$0xff] }
 0x3fa   :  { %v2937_v13 = vmul.f32 %v5970_v58, %v6838_v60  ;;  %v2681_v8 = vmax.f32 %v2617_v7, 0.0  ;;  %v2022_v58 = vmax.f32 %v5982_v18, %v5547_v5  ;;  %v1791_v52 = vmin.f32 %v5962_v49, %v5558_v40 }
 0x3fb   :  { %4291 = vrcp.f32 %v3264_v33  ;;  %v3143_v50 = vadd.f32 %v5592_v21, %v3010_v31 }
 0x3fc   :  { %v4288_v3 = vpop.eup %4287  ;;  %4293 = vrcp.f32 %v3265_v25  ;;  %v1892_v46 = vpop.permute.xlu1 %1891  ;;  %v6840_v25 = vld [vmem:[#allocation31_spill] sm:$0xff]  ;;  %v2087_v45 = vsub.f32 %v1791_v52, %v2023_v57  ;;  %v3140_v57 = vadd.f32 %v5590_v38, %v5912_v17 }
 0x3fd   :  { %v6056_v12 = vpop.permute.xlu0 %1664  ;;  %v4290_v39 = vpop.eup %4289  ;;  %v3394_v43 = vmul.f32 %v4288_v3, %v5996_v48  ;;  %v2024_v34 = vmax.f32 %v1892_v46, %v5547_v5  ;;  %v2025_v24 = vmax.f32 %v1892_v46, %v5549_v22  ;;  %3970 = vset.pattern.permute.xlu1 %v6819_v6  ;;  %3979 = vset.pattern.permute.xlu0 %v6817_v27 }
 0x3fe   :  { %v3395_v11 = vmul.f32 %v4290_v39, %v5998_v42  ;;  %3069 = vperm.xlu1 %3970, %v2937_v13   ;;  %2295 = vperm.xlu0 %3979, %v6068_v0   ;;  %v6096_v19 = vadd.f32 %v6045_v41, %v6840_v25  ;;  %v2086_v3 = vsub.f32 %v1790_v16, %v2022_v58 }
 0x3ff   :  { %3458 = vst [vmem:[#allocation7 + $0x90] sm:$0xff] %v3394_v43  ;;  %v2088_v30 = vsub.f32 %v1792_v59, %v2024_v34  ;;  %v2089_v48 = vsub.f32 %v1793_v44, %v2025_v24 }
 0x400   :  { %3459 = vst [vmem:[#allocation7 + $0x98] sm:$0xff] %v3395_v11  ;;  %v2150_v11 = vmax.f32 %v2086_v3, 0.0 }
 0x401   :  { %v2152_v42 = vmax.f32 %v2088_v30, 0.0  ;;  %v2153_v63 = vmax.f32 %v2089_v48, 0.0  ;;  %v6078_v29 = vpop.permute.xlu0 %1896  ;;  %v2236_v20 = vpop.permute.xlu1 %2235 }
 0x402   :  { %3972 = vset.pattern.permute.xlu1 %v6813_v55  ;;  %2495 = vperm.xlu0 %3979, %v6082_v14   ;;  %v2350_v39 = vmin.f32 %v2236_v20, %v5563_v4  ;;  %v2351_v43 = vmin.f32 %v2236_v20, %v5570_v10 }
 0x403   :  { %v6090_v18 = vmul.f32 %v2680_v62, %v2152_v42  ;;  %v6092_v33 = vmul.f32 %v2681_v8, %v2153_v63  ;;  %1719 = vperm.xlu1 %3972, %v5974_v37   ;;  %v2151_v62 = vmax.f32 %v2087_v45, 0.0 }
 0x405   :  { %v4292_v54 = vpop.eup %4291  ;;  %v3206_v49 = vsub.f32 %v3142_v26, %v6090_v18  ;;  %v3207_v7 = vsub.f32 %v3143_v50, %v6092_v33  ;;  %v2436_v31 = vpop.permute.xlu1 %2435  ;;  %v6137_v26 = vld [vmem:[#allocation2 + $0xd0] sm:$0xff] }
 0x406   :  { %v4294_v59 = vpop.eup %4293  ;;  %v3392_v46 = vmul.f32 %v4292_v54, %v6030_v61  ;;  %v2550_v44 = vmax.f32 %v2436_v31, %v5565_v51  ;;  %v6107_v34 = vpop.permute.xlu0 %3024  ;;  %v2551_v32 = vmax.f32 %v2436_v31, %v5567_v56  ;;  %3980 = vset.pattern.permute.xlu0 %v6813_v55  ;;  %v6841_v50 = vld [vmem:[#allocation33_spill] sm:$0xff]  ;;  %v2557_v54 = vmax.f32 %v6039_v35, %v5567_v56  ;;  %v6842_v31 = vld [vmem:[#allocation22_spill] sm:$0xff] }
 0x407   :  { %v3393_v24 = vmul.f32 %v4294_v59, %v6032_v53  ;;  %v3270_v60 = vadd.f32 1e-06, %v3206_v49  ;;  %v3271_v13 = vadd.f32 1e-06, %v3207_v7  ;;  %1951 = vperm.xlu1 %3972, %v5988_v1   ;;  %1724 = vperm.xlu0 %3980, %v6096_v19   ;;  %v6118_v53 = vsub.f32 %v6045_v41, %v6840_v25 }
 0x408   :  { %3456 = vst [vmem:[#allocation7 + $0x80] sm:$0xff] %v3392_v46  ;;  %v2614_v37 = vsub.f32 %v2350_v39, %v2550_v44  ;;  %v2615_v61 = vsub.f32 %v2351_v43, %v2551_v32  ;;  %v3141_v1 = vadd.f32 %v5592_v21, %v5912_v17  ;;  %v2940_v17 = vmul.f32 %v6137_v26, %v6841_v50  ;;  %v6153_v46 = vld [vmem:[#allocation2 + $0xd8] sm:$0xff] }
 0x409   :  { %3457 = vst [vmem:[#allocation7 + $0x88] sm:$0xff] %v3393_v24  ;;  %4295 = vrcp.f32 %v3270_v60  ;;  %v2556_v25 = vmax.f32 %v6039_v35, %v5565_v51  ;;  %v2357_v49 = vmin.f32 %v6020_v28, %v5570_v10  ;;  %v2939_v59 = vmul.f32 %v6064_v15, %v6842_v31  ;;  %v6843_v35 = vld [vmem:[#allocation28_spill] sm:$0xff] }
 0x40a   :  { %4297 = vrcp.f32 %v3271_v13  ;;  %v2678_v30 = vmax.f32 %v2614_v37, 0.0  ;;  %v6114_v48 = vpop.permute.xlu1 %3019  ;;  %v2679_v8 = vmax.f32 %v2615_v61, 0.0  ;;  %v6120_v58 = vpop.permute.xlu0 %2255  ;;  %v6157_v39 = vadd.f32 %v6153_v46, %v6843_v35 }
 0x40b   :  { %3975 = vset.pattern.permute.xlu1 %v6817_v27  ;;  %1956 = vperm.xlu0 %3980, %v6118_v53   ;;  %v2621_v24 = vsub.f32 %v2357_v49, %v2557_v54  ;;  %v1794_v50 = vmin.f32 %v6056_v12, %v5556_v9 }
 0x40c   :  { %v6124_v42 = vmul.f32 %v2678_v30, %v2150_v11  ;;  %v6128_v63 = vmul.f32 %v2679_v8, %v2151_v62  ;;  %2283 = vperm.xlu1 %3975, %v6014_v36   ;;  %v2356_v36 = vmin.f32 %v6020_v28, %v5563_v4  ;;  %v2027_v30 = vmax.f32 %v6078_v29, %v5549_v22 }
 0x40e   :  { %v3204_v41 = vsub.f32 %v3140_v57, %v6124_v42  ;;  %v3205_v20 = vsub.f32 %v3141_v1, %v6128_v63  ;;  %v6135_v16 = vpop.permute.xlu0 %2455  ;;  %v2620_v44 = vsub.f32 %v2356_v36, %v2556_v25  ;;  %v2685_v57 = vmax.f32 %v2621_v24, 0.0 }
 0x40f   :  { %v1670_v52 = vpop.permute.xlu1 %1669  ;;  %3983 = vset.pattern.permute.xlu0 %v6819_v6  ;;  %v3147_v25 = vadd.f32 %v5592_v21, %v6114_v48 }
 0x410   :  { %v3268_v3 = vadd.f32 1e-06, %v3204_v41  ;;  %v3269_v45 = vadd.f32 1e-06, %v3205_v20  ;;  %2483 = vperm.xlu1 %3975, %v6024_v23   ;;  %3084 = vperm.xlu0 %3983, %v2940_v17   ;;  %v1796_v60 = vmin.f32 %v1670_v52, %v5556_v9  ;;  %v1797_v15 = vmin.f32 %v1670_v52, %v5558_v40 }
 0x411   :  { %v2684_v8 = vmax.f32 %v2620_v44, 0.0  ;;  %v6178_v52 = vsub.f32 %v6153_v46, %v6843_v35  ;;  %v1795_v17 = vmin.f32 %v6056_v12, %v5558_v40 }
 0x412   :  { %4299 = vrcp.f32 %v3268_v3 }
 0x413   :  { %v4296_v7 = vpop.eup %4295  ;;  %4301 = vrcp.f32 %v3269_v45  ;;  %v1902_v23 = vpop.permute.xlu1 %1901  ;;  %v2091_v49 = vsub.f32 %v1795_v17, %v2027_v30 }
 0x414   :  { %v4298_v43 = vpop.eup %4297  ;;  %v3398_v28 = vmul.f32 %v4296_v7, %v6090_v18  ;;  %v6161_v13 = vpop.permute.xlu0 %1674  ;;  %v2028_v37 = vmax.f32 %v1902_v23, %v5547_v5  ;;  %v2029_v61 = vmax.f32 %v1902_v23, %v5549_v22  ;;  %3976 = vset.pattern.permute.xlu1 %v6819_v6  ;;  %3985 = vset.pattern.permute.xlu0 %v6817_v27 }
 0x415   :  { %v3399_v32 = vmul.f32 %v4298_v43, %v6092_v33  ;;  %3079 = vperm.xlu1 %3976, %v2939_v59   ;;  %2303 = vperm.xlu0 %3985, %v6157_v39   ;;  %v2026_v33 = vmax.f32 %v6078_v29, %v5547_v5  ;;  %v3146_v29 = vadd.f32 %v5590_v38, %v6114_v48 }
 0x416   :  { %3462 = vst [vmem:[#allocation7 + $0xb0] sm:$0xff] %v3398_v28  ;;  %v2092_v18 = vsub.f32 %v1796_v60, %v2028_v37  ;;  %v2093_v11 = vsub.f32 %v1797_v15, %v2029_v61  ;;  %v6844_v60 = vld [vmem:[#allocation35_spill] sm:$0xff]  ;;  %v2155_v61 = vmax.f32 %v2091_v49, 0.0 }
 0x417   :  { %3463 = vst [vmem:[#allocation7 + $0xb8] sm:$0xff] %v3399_v32  ;;  %v2090_v36 = vsub.f32 %v1794_v50, %v2026_v33  ;;  %v6216_v30 = vsub.f32 %v6137_v26, %v6844_v60 }
 0x418   :  { %v6174_v62 = vpop.permute.xlu0 %1906  ;;  %v2156_v1 = vmax.f32 %v2092_v18, 0.0  ;;  %v2157_v41 = vmax.f32 %v2093_v11, 0.0  ;;  %v2244_v20 = vpop.permute.xlu1 %2243 }
 0x419   :  { %3978 = vset.pattern.permute.xlu1 %v6813_v55  ;;  %2503 = vperm.xlu0 %3985, %v6178_v52   ;;  %v2354_v59 = vmin.f32 %v2244_v20, %v5563_v4  ;;  %v2355_v24 = vmin.f32 %v2244_v20, %v5570_v10 }
 0x41a   :  { %v6188_v54 = vmul.f32 %v2684_v8, %v2156_v1  ;;  %v6190_v3 = vmul.f32 %v2685_v57, %v2157_v41  ;;  %1729 = vperm.xlu1 %3978, %v6068_v0   ;;  %v3144_v57 = vadd.f32 %v5590_v38, %v6006_v47 }
 0x41c   :  { %v4300_v45 = vpop.eup %4299  ;;  %v3210_v31 = vsub.f32 %v3146_v29, %v6188_v54  ;;  %v3211_v48 = vsub.f32 %v3147_v25, %v6190_v3  ;;  %v2444_v35 = vpop.permute.xlu1 %2443  ;;  %v6235_v29 = vld [vmem:[#allocation2 + $0xe0] sm:$0xff] }
 0x41d   :  { %v4302_v12 = vpop.eup %4301  ;;  %v3396_v7 = vmul.f32 %v4300_v45, %v6124_v42  ;;  %v6199_v43 = vpop.permute.xlu0 %3034  ;;  %v2554_v28 = vmax.f32 %v2444_v35, %v5565_v51  ;;  %v2555_v0 = vmax.f32 %v2444_v35, %v5567_v56  ;;  %v6207_v42 = vadd.f32 %v6137_v26, %v6844_v60  ;;  %3986 = vset.pattern.permute.xlu0 %v6813_v55  ;;  %v6847_v35 = vld [vmem:[#allocation32_spill] sm:$0xff] }
 0x41e   :  { %v3397_v44 = vmul.f32 %v4302_v12, %v6128_v63  ;;  %v3274_v23 = vadd.f32 1e-06, %v3210_v31  ;;  %v3275_v32 = vadd.f32 1e-06, %v3211_v48  ;;  %1961 = vperm.xlu1 %3978, %v6082_v14   ;;  %v2154_v63 = vmax.f32 %v2090_v36, 0.0  ;;  %v6846_v31 = vld [vmem:[#allocation26_spill] sm:$0xff] }
 0x41f   :  { %3460 = vst [vmem:[#allocation7 + $0xa0] sm:$0xff] %v3396_v7  ;;  %v2618_v15 = vsub.f32 %v2354_v59, %v2554_v28  ;;  %v2619_v37 = vsub.f32 %v2355_v24, %v2555_v0  ;;  %1734 = vperm.xlu0 %3986, %v6207_v42   ;;  %v3145_v14 = vadd.f32 %v5592_v21, %v6006_v47  ;;  %v6845_v47 = vld [vmem:[#allocation36_spill] sm:$0xff] }
 0x420   :  { %3461 = vst [vmem:[#allocation7 + $0xa8] sm:$0xff] %v3397_v44  ;;  %4303 = vrcp.f32 %v3274_v23  ;;  %v2942_v25 = vmul.f32 %v6235_v29, %v6845_v47  ;;  %v2560_v45 = vmax.f32 %v6135_v16, %v5565_v51  ;;  %v2360_v12 = vmin.f32 %v6120_v58, %v5563_v4  ;;  %v6249_v59 = vld [vmem:[#allocation2 + $0xe8] sm:$0xff] }
 0x421   :  { %4305 = vrcp.f32 %v3275_v32  ;;  %v2682_v18 = vmax.f32 %v2618_v15, 0.0  ;;  %v2683_v11 = vmax.f32 %v2619_v37, 0.0  ;;  %v6212_v33 = vpop.permute.xlu1 %3029  ;;  %v6218_v8 = vpop.permute.xlu0 %2263  ;;  %v2941_v48 = vmul.f32 %v6153_v46, %v6846_v31 }
 0x422   :  { %3981 = vset.pattern.permute.xlu1 %v6817_v27  ;;  %v6253_v44 = vadd.f32 %v6249_v59, %v6847_v35  ;;  %v2624_v28 = vsub.f32 %v2360_v12, %v2560_v45  ;;  %v1798_v47 = vmin.f32 %v6161_v13, %v5556_v9  ;;  %v3150_v45 = vadd.f32 %v5590_v38, %v6212_v33  ;;  %v6848_v12 = vld [vmem:[#allocation37_spill] sm:$0xff] }
 0x423   :  { %v6224_v1 = vmul.f32 %v2682_v18, %v2154_v63  ;;  %v6226_v41 = vmul.f32 %v2683_v11, %v2155_v61  ;;  %1966 = vperm.xlu0 %3986, %v6216_v30   ;;  %2291 = vperm.xlu1 %3981, %v6096_v19   ;;  %v2561_v19 = vmax.f32 %v6135_v16, %v5567_v56 }
 0x424   :  { %v2361_v16 = vmin.f32 %v6120_v58, %v5570_v10  ;;  %v2688_v61 = vmax.f32 %v2624_v28, 0.0  ;;  %v2030_v18 = vmax.f32 %v6174_v62, %v5547_v5 }
 0x425   :  { %v3208_v26 = vsub.f32 %v3144_v57, %v6224_v1  ;;  %v3209_v20 = vsub.f32 %v3145_v14, %v6226_v41  ;;  %v6233_v50 = vpop.permute.xlu0 %2463 }
 0x426   :  { %v1680_v17 = vpop.permute.xlu1 %1679  ;;  %v2625_v32 = vsub.f32 %v2361_v16, %v2561_v19 }
 0x427   :  { %v3272_v36 = vadd.f32 1e-06, %v3208_v26  ;;  %v3273_v49 = vadd.f32 1e-06, %v3209_v20  ;;  %3988 = vset.pattern.permute.xlu0 %v6819_v6  ;;  %2491 = vperm.xlu1 %3981, %v6118_v53   ;;  %v1800_v60 = vmin.f32 %v1680_v17, %v5556_v9  ;;  %v1801_v37 = vmin.f32 %v1680_v17, %v5558_v40 }
 0x428   :  { %3094 = vperm.xlu0 %3988, %v2942_v25   ;;  %v6276_v26 = vsub.f32 %v6249_v59, %v6847_v35  ;;  %v2689_v20 = vmax.f32 %v2625_v32, 0.0  ;;  %v1799_v25 = vmin.f32 %v6161_v13, %v5558_v40  ;;  %v6295_v13 = vadd.f32 %v6235_v29, %v6848_v12 }
 0x429   :  { %4307 = vrcp.f32 %v3272_v36  ;;  %v3151_v36 = vadd.f32 %v5592_v21, %v6212_v33 }
 0x42a   :  { %v4304_v7 = vpop.eup %4303  ;;  %4309 = vrcp.f32 %v3273_v49  ;;  %v1912_v53 = vpop.permute.xlu1 %1911 }
 0x42b   :  { %v4306_v24 = vpop.eup %4305  ;;  %v3402_v0 = vmul.f32 %v4304_v7, %v6188_v54  ;;  %v2032_v23 = vmax.f32 %v1912_v53, %v5547_v5  ;;  %v6260_v46 = vpop.permute.xlu0 %1684  ;;  %v2033_v63 = vmax.f32 %v1912_v53, %v5549_v22  ;;  %3982 = vset.pattern.permute.xlu1 %v6819_v6  ;;  %v2094_v7 = vsub.f32 %v1798_v47, %v2030_v18 }
 0x42c   :  { %v3403_v15 = vmul.f32 %v4306_v24, %v6190_v3  ;;  %3990 = vset.pattern.permute.xlu0 %v6817_v27  ;;  %3089 = vperm.xlu1 %3982, %v2941_v48   ;;  %v2031_v3 = vmax.f32 %v6174_v62, %v5549_v22 }
 0x42d   :  { %3466 = vst [vmem:[#allocation7 + $0xd0] sm:$0xff] %v3402_v0  ;;  %v2096_v58 = vsub.f32 %v1800_v60, %v2032_v23  ;;  %v2097_v54 = vsub.f32 %v1801_v37, %v2033_v63  ;;  %2311 = vperm.xlu0 %3990, %v6253_v44   ;;  %v2158_v63 = vmax.f32 %v2094_v7, 0.0 }
 0x42e   :  { %3467 = vst [vmem:[#allocation7 + $0xd8] sm:$0xff] %v3403_v15  ;;  %v2095_v31 = vsub.f32 %v1799_v25, %v2031_v3 }
 0x42f   :  { %v2160_v11 = vmax.f32 %v2096_v58, 0.0  ;;  %v6272_v57 = vpop.permute.xlu0 %1916  ;;  %v2252_v14 = vpop.permute.xlu1 %2251  ;;  %v2161_v17 = vmax.f32 %v2097_v54, 0.0 }
 0x430   :  { %3984 = vset.pattern.permute.xlu1 %v6813_v55  ;;  %v2358_v53 = vmin.f32 %v2252_v14, %v5563_v4  ;;  %v2359_v24 = vmin.f32 %v2252_v14, %v5570_v10  ;;  %v2159_v58 = vmax.f32 %v2095_v31, 0.0  ;;  %v2365_v31 = vmin.f32 %v6218_v8, %v5570_v10 }
 0x431   :  { %v6284_v62 = vmul.f32 %v2688_v61, %v2160_v11  ;;  %v6289_v49 = vmul.f32 %v2689_v20, %v2161_v17  ;;  %2511 = vperm.xlu0 %3990, %v6276_v26   ;;  %1739 = vperm.xlu1 %3984, %v6157_v39   ;;  %v3149_v11 = vadd.f32 %v5592_v21, %v6107_v34 }
 0x432   :  { %v2564_v20 = vmax.f32 %v6233_v50, %v5565_v51 }
 0x433   :  { %v4308_v19 = vpop.eup %4307  ;;  %v3214_v48 = vsub.f32 %v3150_v45, %v6284_v62  ;;  %v3215_v33 = vsub.f32 %v3151_v36, %v6289_v49  ;;  %v2452_v28 = vpop.permute.xlu1 %2451  ;;  %v6333_v45 = vld [vmem:[#allocation2 + $0xf8] sm:$0xff]  ;;  %v2565_v36 = vmax.f32 %v6233_v50, %v5567_v56 }
 0x434   :  { %v4310_v35 = vpop.eup %4309  ;;  %v3400_v16 = vmul.f32 %v4308_v19, %v6224_v1  ;;  %v6302_v39 = vpop.permute.xlu0 %3044  ;;  %v2558_v23 = vmax.f32 %v2452_v28, %v5565_v51  ;;  %v2559_v32 = vmax.f32 %v2452_v28, %v5567_v56 }
 0x435   :  { %v3401_v0 = vmul.f32 %v4310_v35, %v6226_v41  ;;  %v3278_v60 = vadd.f32 1e-06, %v3214_v48  ;;  %v3279_v15 = vadd.f32 1e-06, %v3215_v33  ;;  %3991 = vset.pattern.permute.xlu0 %v6813_v55  ;;  %1971 = vperm.xlu1 %3984, %v6178_v52   ;;  %v6312_v41 = vsub.f32 %v6235_v29, %v6848_v12 }
 0x436   :  { %3464 = vst [vmem:[#allocation7 + $0xc0] sm:$0xff] %v3400_v16  ;;  %v2622_v1 = vsub.f32 %v2358_v53, %v2558_v23  ;;  %v2623_v37 = vsub.f32 %v2359_v24, %v2559_v32  ;;  %1744 = vperm.xlu0 %3991, %v6295_v13   ;;  %v3148_v52 = vadd.f32 %v5590_v38, %v6107_v34  ;;  %v4403_v32 = vld [vmem:[#allocation2 + $0xf0] sm:$0xff] }
 0x437   :  { %3465 = vst [vmem:[#allocation7 + $0xc8] sm:$0xff] %v3401_v0  ;;  %4311 = vrcp.f32 %v3278_v60  ;;  %v6337_v34 = vadd.f32 %v6333_v45, %v5514_v2  ;;  %v6350_v35 = vsub.f32 %v6333_v45, %v5514_v2  ;;  %v2629_v33 = vsub.f32 %v2365_v31, %v2565_v36 }
 0x438   :  { %4313 = vrcp.f32 %v3279_v15  ;;  %v2686_v54 = vmax.f32 %v2622_v1, 0.0  ;;  %v2687_v61 = vmax.f32 %v2623_v37, 0.0  ;;  %v3040_v18 = vpop.permute.xlu1 %3039  ;;  %v6314_v3 = vpop.permute.xlu0 %2271  ;;  %v6849_v15 = vld [vmem:[#allocation39_spill] sm:$0xff]  ;;  %v2034_v37 = vmax.f32 %v6272_v57, %v5547_v5 }
 0x439   :  { %3987 = vset.pattern.permute.xlu1 %v6817_v27  ;;  %v6364_v1 = vadd.f32 %v4403_v32, %v6849_v15 }
 0x43a   :  { %v6321_v14 = vmul.f32 %v2686_v54, %v2158_v63  ;;  %v6323_v29 = vmul.f32 %v2687_v61, %v2159_v58  ;;  %1976 = vperm.xlu0 %3991, %v6312_v41   ;;  %2299 = vperm.xlu1 %3987, %v6207_v42   ;;  %v2364_v42 = vmin.f32 %v6218_v8, %v5563_v4  ;;  %v2693_v58 = vmax.f32 %v2629_v33, 0.0 }
 0x43b   :  { %v2035_v54 = vmax.f32 %v6272_v57, %v5549_v22 }
 0x43c   :  { %v3212_v17 = vsub.f32 %v3148_v52, %v6321_v14  ;;  %v3213_v47 = vsub.f32 %v3149_v11, %v6323_v29  ;;  %v6331_v25 = vpop.permute.xlu0 %2471  ;;  %v2628_v50 = vsub.f32 %v2364_v42, %v2564_v20  ;;  %v1802_v11 = vmin.f32 %v6260_v46, %v5556_v9 }
 0x43d   :  { %v1690_v19 = vpop.permute.xlu1 %1689  ;;  %v1803_v20 = vmin.f32 %v6260_v46, %v5558_v40 }
 0x43e   :  { %v3276_v12 = vadd.f32 1e-06, %v3212_v17  ;;  %v3277_v7 = vadd.f32 1e-06, %v3213_v47  ;;  %3994 = vset.pattern.permute.xlu0 %v6817_v27  ;;  %2499 = vperm.xlu1 %3987, %v6216_v30   ;;  %v1804_v24 = vmin.f32 %v1690_v19, %v5556_v9  ;;  %v1805_v0 = vmin.f32 %v1690_v19, %v5558_v40 }
 0x43f   :  { %2319 = vperm.xlu0 %3994, %v6337_v34   ;;  %v3154_v17 = vadd.f32 %v5590_v38, %v3040_v18  ;;  %v3155_v47 = vadd.f32 %v5592_v21, %v3040_v18  ;;  %v6386_v19 = vsub.f32 %v4403_v32, %v6849_v15  ;;  %v2098_v42 = vsub.f32 %v1802_v11, %v2034_v37 }
 0x440   :  { %4315 = vrcp.f32 %v3276_v12  ;;  %v2099_v46 = vsub.f32 %v1803_v20, %v2035_v54  ;;  %v3152_v54 = vadd.f32 %v5590_v38, %v6199_v43  ;;  %v2568_v20 = vmax.f32 %v6331_v25, %v5565_v51 }
 0x441   :  { %v4312_v48 = vpop.eup %4311  ;;  %4317 = vrcp.f32 %v3277_v7  ;;  %v1922_v30 = vpop.permute.xlu1 %1921 }
 0x442   :  { %v4314_v16 = vpop.eup %4313  ;;  %v3406_v53 = vmul.f32 %v4312_v48, %v6284_v62  ;;  %v6354_v28 = vpop.permute.xlu0 %1694  ;;  %v2036_v60 = vmax.f32 %v1922_v30, %v5547_v5  ;;  %v2037_v2 = vmax.f32 %v1922_v30, %v5549_v22  ;;  %3989 = vset.pattern.permute.xlu1 %v6813_v55  ;;  %v2163_v15 = vmax.f32 %v2099_v46, 0.0 }
 0x443   :  { %v3407_v8 = vmul.f32 %v4314_v16, %v6289_v49  ;;  %2519 = vperm.xlu0 %3994, %v6350_v35   ;;  %1749 = vperm.xlu1 %3989, %v6253_v44   ;;  %v2692_v49 = vmax.f32 %v2628_v50, 0.0 }
 0x444   :  { %3470 = vst [vmem:[#allocation7 + $0xf0] sm:$0xff] %v3406_v53  ;;  %v2100_v62 = vsub.f32 %v1804_v24, %v2036_v60  ;;  %v2101_v23 = vsub.f32 %v1805_v0, %v2037_v2 }
 0x445   :  { %3471 = vst [vmem:[#allocation7 + $0xf8] sm:$0xff] %v3407_v8 }
 0x446   :  { %v6368_v63 = vpop.permute.xlu0 %1926  ;;  %v2164_v61 = vmax.f32 %v2100_v62, 0.0  ;;  %v2165_v52 = vmax.f32 %v2101_v23, 0.0  ;;  %v2260_v44 = vpop.permute.xlu1 %2259  ;;  %v2162_v23 = vmax.f32 %v2098_v42, 0.0 }
 0x447   :  { %3995 = vset.pattern.permute.xlu0 %v6813_v55  ;;  %1981 = vperm.xlu1 %3989, %v6276_v26   ;;  %v2362_v31 = vmin.f32 %v2260_v44, %v5563_v4  ;;  %v2363_v33 = vmin.f32 %v2260_v44, %v5570_v10 }
 0x448   :  { %v6380_v36 = vmul.f32 %v2692_v49, %v2164_v61  ;;  %v6382_v57 = vmul.f32 %v2693_v58, %v2165_v52  ;;  %1754 = vperm.xlu0 %3995, %v6364_v1  }
 0x44a   :  { %v4316_v12 = vpop.eup %4315  ;;  %v3218_v7 = vsub.f32 %v3154_v17, %v6380_v36  ;;  %v3219_v26 = vsub.f32 %v3155_v47, %v6382_v57  ;;  %v2460_v48 = vpop.permute.xlu1 %2459  ;;  %v2569_v17 = vmax.f32 %v6331_v25, %v5567_v56 }
 0x44b   :  { %v6391_v18 = vpop.permute.xlu0 %3054  ;;  %v4318_v50 = vpop.eup %4317  ;;  %v3404_v16 = vmul.f32 %v4316_v12, %v6321_v14  ;;  %v2562_v53 = vmax.f32 %v2460_v48, %v5565_v51  ;;  %v2563_v24 = vmax.f32 %v2460_v48, %v5567_v56  ;;  %3992 = vset.pattern.permute.xlu1 %v6817_v27  ;;  %v6850_v14 = vld [vmem:[#allocation38_spill] sm:$0xff]  ;;  %v2369_v12 = vmin.f32 %v6314_v3, %v5570_v10 }
 0x44c   :  { %v3405_v30 = vmul.f32 %v4318_v50, %v6323_v29  ;;  %v3282_v8 = vadd.f32 1e-06, %v3218_v7  ;;  %v3283_v0 = vadd.f32 1e-06, %v3219_v26  ;;  %1986 = vperm.xlu0 %3995, %v6386_v19   ;;  %2307 = vperm.xlu1 %3992, %v6295_v13   ;;  %v2944_v62 = vmul.f32 %v4403_v32, %v6850_v14 }
 0x44d   :  { %3468 = vst [vmem:[#allocation7 + $0xe0] sm:$0xff] %v3404_v16  ;;  %v2626_v60 = vsub.f32 %v2362_v31, %v2562_v53  ;;  %v2627_v2 = vsub.f32 %v2363_v33, %v2563_v24  ;;  %v3153_v13 = vadd.f32 %v5592_v21, %v6199_v43  ;;  %v2633_v26 = vsub.f32 %v2369_v12, %v2569_v17 }
 0x44e   :  { %3469 = vst [vmem:[#allocation7 + $0xe8] sm:$0xff] %v3405_v30  ;;  %4319 = vrcp.f32 %v3282_v8  ;;  %v2038_v8 = vmax.f32 %v6368_v63, %v5547_v5 }
 0x44f   :  { %4321 = vrcp.f32 %v3283_v0  ;;  %v2690_v49 = vmax.f32 %v2626_v60, 0.0  ;;  %v2691_v37 = vmax.f32 %v2627_v2, 0.0  ;;  %v3050_v58 = vpop.permute.xlu1 %3049  ;;  %v6402_v29 = vpop.permute.xlu0 %2279  ;;  %v2039_v60 = vmax.f32 %v6368_v63, %v5549_v22 }
 0x450   :  { %3998 = vset.pattern.permute.xlu0 %v6819_v6  ;;  %2507 = vperm.xlu1 %3992, %v6312_v41   ;;  %v2368_v41 = vmin.f32 %v6314_v3, %v5563_v4 }
 0x451   :  { %v2754_v61 = vmul.f32 %v2690_v49, %v2162_v23  ;;  %v6409_v32 = vmul.f32 %v2691_v37, %v2163_v15  ;;  %3104 = vperm.xlu0 %3998, %v2944_v62   ;;  %v3158_v23 = vadd.f32 %v5590_v38, %v3050_v58  ;;  %v3159_v15 = vadd.f32 %v5592_v21, %v3050_v58 }
 0x452   :  { %v2632_v7 = vsub.f32 %v2368_v41, %v2568_v20 }
 0x453   :  { %v3216_v52 = vsub.f32 %v3152_v54, %v2754_v61  ;;  %v3217_v44 = vsub.f32 %v3153_v13, %v6409_v32  ;;  %v6413_v11 = vpop.permute.xlu0 %2479 }
 0x454   :  { %v1700_v47 = vpop.permute.xlu1 %1699  ;;  %3993 = vset.pattern.permute.xlu1 %v6813_v55  ;;  %v2696_v30 = vmax.f32 %v2632_v7, 0.0 }
 0x455   :  { %v3280_v42 = vadd.f32 1e-06, %v3216_v52  ;;  %v3281_v43 = vadd.f32 1e-06, %v3217_v44  ;;  %1759 = vperm.xlu1 %3993, %v6337_v34   ;;  %v1808_v25 = vmin.f32 %v1700_v47, %v5556_v9  ;;  %v1809_v16 = vmin.f32 %v1700_v47, %v5558_v40 }
 0x457   :  { %4323 = vrcp.f32 %v3280_v42 }
 0x458   :  { %v4320_v46 = vpop.eup %4319  ;;  %4325 = vrcp.f32 %v3281_v43  ;;  %v1932_v31 = vpop.permute.xlu1 %1931 }
 0x459   :  { %v6426_v48 = vpop.permute.xlu0 %1704  ;;  %v4322_v50 = vpop.eup %4321  ;;  %v3410_v55 = vmul.f32 %v4320_v46, %v6380_v36  ;;  %v2040_v33 = vmax.f32 %v1932_v31, %v5547_v5  ;;  %v2041_v3 = vmax.f32 %v1932_v31, %v5549_v22  ;;  %1991 = vperm.xlu1 %3993, %v6350_v35   ;;  %v2697_v36 = vmax.f32 %v2633_v26, 0.0  ;;  %v6851_v26 = vld [vmem:[#allocation30_spill] sm:$0xff] }
 0x45a   :  { %v3411_v34 = vmul.f32 %v4322_v50, %v6382_v57  ;;  %v1806_v35 = vmin.f32 %v6354_v28, %v5556_v9  ;;  %v1807_v57 = vmin.f32 %v6354_v28, %v5558_v40 }
 0x45b   :  { %3474 = vst [vmem:[#allocation7 + $0x110] sm:$0xff] %v3410_v55  ;;  %v2104_v53 = vsub.f32 %v1808_v25, %v2040_v33  ;;  %v2105_v24 = vsub.f32 %v1809_v16, %v2041_v3  ;;  %v2943_v25 = vmul.f32 %v6249_v59, %v6851_v26 }
 0x45c   :  { %3475 = vst [vmem:[#allocation7 + $0x118] sm:$0xff] %v3411_v34  ;;  %v2102_v63 = vsub.f32 %v1806_v35, %v2038_v8  ;;  %v2103_v13 = vsub.f32 %v1807_v57, %v2039_v60  ;;  %v6852_v34 = vld [vmem:[#allocation34_spill] sm:$0xff] }
 0x45d   :  { %v6436_v0 = vpop.permute.xlu0 %1936  ;;  %v2168_v2 = vmax.f32 %v2104_v53, 0.0  ;;  %v2169_v14 = vmax.f32 %v2105_v24, 0.0  ;;  %v2268_v62 = vpop.permute.xlu1 %2267  ;;  %3996 = vset.pattern.permute.xlu1 %v6817_v27  ;;  %v2945_v53 = vmul.f32 %v6333_v45, %v6852_v34  ;;  %v2373_v45 = vmin.f32 %v6402_v29, %v5570_v10 }
 0x45e   :  { %2315 = vperm.xlu1 %3996, %v6364_v1   ;;  %v2366_v20 = vmin.f32 %v2268_v62, %v5563_v4  ;;  %v2367_v58 = vmin.f32 %v2268_v62, %v5570_v10  ;;  %v2166_v31 = vmax.f32 %v2102_v63, 0.0 }
 0x45f   :  { %v2760_v49 = vmul.f32 %v2696_v30, %v2168_v2  ;;  %v6447_v37 = vmul.f32 %v2697_v36, %v2169_v14  ;;  %v2572_v36 = vmax.f32 %v6413_v11, %v5565_v51 }
 0x461   :  { %v4324_v54 = vpop.eup %4323  ;;  %v3222_v52 = vsub.f32 %v3158_v23, %v2760_v49  ;;  %v3223_v44 = vsub.f32 %v3159_v15, %v6447_v37  ;;  %v2468_v28 = vpop.permute.xlu1 %2467 }
 0x462   :  { %v6452_v17 = vpop.permute.xlu0 %3064  ;;  %v4326_v27 = vpop.eup %4325  ;;  %v3408_v47 = vmul.f32 %v4324_v54, %v2754_v61  ;;  %v2566_v42 = vmax.f32 %v2468_v28, %v5565_v51  ;;  %v2567_v43 = vmax.f32 %v2468_v28, %v5567_v56  ;;  %2515 = vperm.xlu1 %3996, %v6386_v19   ;;  %v2167_v61 = vmax.f32 %v2103_v13, 0.0 }
 0x463   :  { %v3409_v1 = vmul.f32 %v4326_v27, %v6409_v32  ;;  %v3286_v41 = vadd.f32 1e-06, %v3222_v52  ;;  %v3287_v12 = vadd.f32 1e-06, %v3223_v44  ;;  %v3156_v19 = vadd.f32 %v5590_v38, %v6302_v39 }
 0x464   :  { %3472 = vst [vmem:[#allocation7 + $0x100] sm:$0xff] %v3408_v47  ;;  %v2630_v46 = vsub.f32 %v2366_v20, %v2566_v42  ;;  %v2631_v7 = vsub.f32 %v2367_v58, %v2567_v43  ;;  %v3157_v32 = vadd.f32 %v5592_v21, %v6302_v39  ;;  %v2372_v39 = vmin.f32 %v6402_v29, %v5563_v4 }
 0x465   :  { %3473 = vst [vmem:[#allocation7 + $0x108] sm:$0xff] %v3409_v1  ;;  %4327 = vrcp.f32 %v3286_v41  ;;  %v2042_v47 = vmax.f32 %v6436_v0, %v5547_v5 }
 0x466   :  { %4329 = vrcp.f32 %v3287_v12  ;;  %v2694_v50 = vmax.f32 %v2630_v46, 0.0  ;;  %v2695_v55 = vmax.f32 %v2631_v7, 0.0  ;;  %v3060_v16 = vpop.permute.xlu1 %3059  ;;  %v6461_v33 = vpop.permute.xlu0 %2287  ;;  %3997 = vset.pattern.permute.xlu1 %v6819_v6  ;;  %v2573_v6 = vmax.f32 %v6413_v11, %v5567_v56 }
 0x467   :  { %3099 = vperm.xlu1 %3997, %v2943_v25   ;;  %v2636_v35 = vsub.f32 %v2372_v39, %v2572_v36  ;;  %v1811_v12 = vmin.f32 %v6426_v48, %v5558_v40  ;;  %v3162_v46 = vadd.f32 %v5590_v38, %v3060_v16  ;;  %v3163_v7 = vadd.f32 %v5592_v21, %v3060_v16 }
 0x468   :  { %v2758_v3 = vmul.f32 %v2694_v50, %v2166_v31  ;;  %v2759_v59 = vmul.f32 %v2695_v55, %v2167_v61  ;;  %v2637_v57 = vsub.f32 %v2373_v45, %v2573_v6 }
 0x469   :  { %v2700_v27 = vmax.f32 %v2636_v35, 0.0 }
 0x46a   :  { %v3220_v24 = vsub.f32 %v3156_v19, %v2758_v3  ;;  %v3221_v30 = vsub.f32 %v3157_v32, %v2759_v59  ;;  %v6470_v8 = vpop.permute.xlu0 %2487  ;;  %v2701_v42 = vmax.f32 %v2637_v57, 0.0 }
 0x46b   :  { %v1710_v60 = vpop.permute.xlu1 %1709  ;;  %3109 = vperm.xlu1 %3997, %v2945_v53  }
 0x46c   :  { %v3284_v2 = vadd.f32 1e-06, %v3220_v24  ;;  %v3285_v14 = vadd.f32 1e-06, %v3221_v30  ;;  %v1812_v23 = vmin.f32 %v1710_v60, %v5556_v9  ;;  %v1813_v13 = vmin.f32 %v1710_v60, %v5558_v40 }
 0x46e   :  { %4331 = vrcp.f32 %v3284_v2 }
 0x46f   :  { %v4328_v62 = vpop.eup %4327  ;;  %4333 = vrcp.f32 %v3285_v14  ;;  %v1942_v15 = vpop.permute.xlu1 %1941 }
 0x470   :  { %v6481_v63 = vpop.permute.xlu0 %1714  ;;  %v4330_v11 = vpop.eup %4329  ;;  %v3414_v54 = vmul.f32 %v4328_v62, %v2760_v49  ;;  %v2044_v52 = vmax.f32 %v1942_v15, %v5547_v5  ;;  %v2045_v44 = vmax.f32 %v1942_v15, %v5549_v22  ;;  %v2043_v49 = vmax.f32 %v6436_v0, %v5549_v22 }
 0x471   :  { %v3415_v29 = vmul.f32 %v4330_v11, %v6447_v37  ;;  %v1810_v37 = vmin.f32 %v6426_v48, %v5556_v9 }
 0x472   :  { %3478 = vst [vmem:[#allocation7 + $0x130] sm:$0xff] %v3414_v54  ;;  %v2108_v20 = vsub.f32 %v1812_v23, %v2044_v52  ;;  %v2109_v28 = vsub.f32 %v1813_v13, %v2045_v44  ;;  %v2107_v0 = vsub.f32 %v1811_v12, %v2043_v49  ;;  %v3160_v23 = vadd.f32 %v5590_v38, %v6391_v18 }
 0x473   :  { %3479 = vst [vmem:[#allocation7 + $0x138] sm:$0xff] %v3415_v29  ;;  %v2106_v31 = vsub.f32 %v1810_v37, %v2042_v47  ;;  %v2576_v44 = vmax.f32 %v6470_v8, %v5565_v51 }
 0x474   :  { %v6489_v58 = vpop.permute.xlu0 %1946  ;;  %v2172_v43 = vmax.f32 %v2108_v20, 0.0  ;;  %v2173_v1 = vmax.f32 %v2109_v28, 0.0  ;;  %v2276_v41 = vpop.permute.xlu1 %2275  ;;  %v2171_v45 = vmax.f32 %v2107_v0, 0.0 }
 0x475   :  { %v2370_v19 = vmin.f32 %v2276_v41, %v5563_v4  ;;  %v2371_v16 = vmin.f32 %v2276_v41, %v5570_v10  ;;  %v2170_v39 = vmax.f32 %v2106_v31, 0.0 }
 0x476   :  { %v6499_v26 = vmul.f32 %v2700_v27, %v2172_v43  ;;  %v6501_v25 = vmul.f32 %v2701_v42, %v2173_v1 }
 0x478   :  { %v4332_v61 = vpop.eup %4331  ;;  %v3226_v50 = vsub.f32 %v3162_v46, %v6499_v26  ;;  %v3227_v55 = vsub.f32 %v3163_v7, %v6501_v25  ;;  %v2476_v32 = vpop.permute.xlu1 %2475 }
 0x479   :  { %v6506_v34 = vpop.permute.xlu0 %3074  ;;  %v4334_v48 = vpop.eup %4333  ;;  %v3412_v53 = vmul.f32 %v4332_v61, %v2758_v3  ;;  %v2570_v24 = vmax.f32 %v2476_v32, %v5565_v51  ;;  %v2571_v30 = vmax.f32 %v2476_v32, %v5567_v56 }
 0x47a   :  { %v3413_v36 = vmul.f32 %v4334_v48, %v2759_v59  ;;  %v3290_v6 = vadd.f32 1e-06, %v3226_v50  ;;  %v3291_v60 = vadd.f32 1e-06, %v3227_v55  ;;  %v3161_v59 = vadd.f32 %v5592_v21, %v6391_v18 }
 0x47b   :  { %3476 = vst [vmem:[#allocation7 + $0x120] sm:$0xff] %v3412_v53  ;;  %v2634_v2 = vsub.f32 %v2370_v19, %v2570_v24  ;;  %v2635_v14 = vsub.f32 %v2371_v16, %v2571_v30  ;;  %v2577_v18 = vmax.f32 %v6470_v8, %v5567_v56 }
 0x47c   :  { %3477 = vst [vmem:[#allocation7 + $0x128] sm:$0xff] %v3413_v36  ;;  %4335 = vrcp.f32 %v3290_v6 }
 0x47d   :  { %4337 = vrcp.f32 %v3291_v60  ;;  %v2698_v62 = vmax.f32 %v2634_v2, 0.0  ;;  %v2699_v35 = vmax.f32 %v2635_v14, 0.0  ;;  %v6511_v3 = vpop.permute.xlu1 %3069  ;;  %v6513_v57 = vpop.permute.xlu0 %2295 }
 0x47f   :  { %v6519_v15 = vmul.f32 %v2698_v62, %v2170_v39  ;;  %v6521_v11 = vmul.f32 %v2699_v35, %v2171_v45 }
 0x481   :  { %v3224_v54 = vsub.f32 %v3160_v23, %v6519_v15  ;;  %v3225_v13 = vsub.f32 %v3161_v59, %v6521_v11  ;;  %v6525_v52 = vpop.permute.xlu0 %2495 }
 0x482   :  { %v6531_v29 = vpop.permute.xlu1 %1719 }
 0x483   :  { %4415 = shalt.err (!%p4412_p4)
}
 0x484   :  { %s4416_s20 = scalar_lea.hbm %s6767_s6, 32 }
 0x485   :  { %p4417_p5 = scmp.ne.s32.totalorder %s6767_s6, %s4416_s20  ;;  %p4420_p6 = scmp.lt.u32.totalorder %s4416_s20, %s6767_s6 }
 0x487   :  { %p4422_p7 = pnand %p4420_p6, %p4417_p5 }
 0x489   :  { %4425 = shalt.err (!%p4422_p7)
}
 0x48a   :  { %3525 = dma.vmem_to_hbm [thread:$0]  %s3523_s15, 32, %s6767_s6, [#allocation5]   ;;  %v3288_v8 = vadd.f32 1e-06, %v3224_v54  ;;  %v3289_v20 = vadd.f32 1e-06, %v3225_v13  ;;  %v2376_v28 = vmin.f32 %v6461_v33, %v5563_v4  ;;  %v2377_v27 = vmin.f32 %v6461_v33, %v5570_v10 }
 0x48b   :  { %s4426_s27 = scalar_lea.vmem %s3510_s17, 4096  ;;  %p4431_p9 = scmp.lt.s32.totalorder %s3510_s17, %s3510_s17 }
 0x48c   :  { %4339 = vrcp.f32 %v3288_v8  ;;  %p4427_p8 = scmp.ne.s32.totalorder %s3510_s17, %s4426_s27  ;;  %p4432_p10 = scmp.lt.s32.totalorder %s4426_s27, %s4426_s27 }
 0x48e   :  { %p4433_p11 = por %p4432_p10, %p4431_p9 }
 0x490   :  { %p4434_p12 = pnand %p4433_p11, %p4427_p8 }
 0x492   :  { %4437 = shalt.err (!%p4434_p12)
}
 0x493   :  { %s4438_s6 = scalar_lea.hbm %s6766_s5, 4096 }
 0x494   :  { %p4439_p13 = scmp.ne.s32.totalorder %s6766_s5, %s4438_s6  ;;  %p4442_p0 = scmp.lt.u32.totalorder %s4438_s6, %s6766_s5 }
 0x496   :  { %p4444_p1 = pnand %p4442_p0, %p4439_p13 }
 0x498   :  { %4447 = shalt.err (!%p4444_p1)
}
 0x499   :  { %s4507_s12 = smov 128   ;;  %s4508_s13 = smov 8   ;;  %v4336_v33 = vpop.eup %4335  ;;  %v2640_v47 = vsub.f32 %v2376_v28, %v2576_v44  ;;  %v2641_v42 = vsub.f32 %v2377_v27, %v2577_v18  ;;  %4341 = vrcp.f32 %v3289_v20  ;;  %v1816_v49 = vmin.f32 %v6531_v29, %v5556_v9  ;;  %v1952_v43 = vpop.permute.xlu1 %1951 }
 0x49a   :  { %3515 = dma.vmem_to_hbm [thread:$0]  %s3510_s17, 4096, %s6766_s5, [#allocation3], %s4507_s12, %s4507_s12, %s4508_s13   ;;  %v6563_v1 = vpop.permute.xlu0 %1724  ;;  %v4338_v41 = vpop.eup %4337  ;;  %v3418_v37 = vmul.f32 %v4336_v33, %v6499_v26  ;;  %v1817_v12 = vmin.f32 %v6531_v29, %v5558_v40  ;;  %v2048_v46 = vmax.f32 %v1952_v43, %v5547_v5  ;;  %v2049_v7 = vmax.f32 %v1952_v43, %v5549_v22 }
 0x49b   :  { %s4509_s3 = smov [#allocation6]   ;;  %v3419_v31 = vmul.f32 %v4338_v41, %v6501_v25 }
 0x49c   :  { %s3532_s4 = sshll.u32 %s4509_s3, 4  ;;  %s3533_s4 = int_to_ptr.vmem [resolvable:$true] %s3532_s4 }
 0x49d   :  { %s4448_s5 = scalar_lea.vmem %s3533_s4, 32  ;;  %p4453_p3 = scmp.lt.s32.totalorder %s3533_s4, %s3533_s4 }
 0x49e   :  { %p4449_p2 = scmp.ne.s32.totalorder %s3533_s4, %s4448_s5  ;;  %p4454_p4 = scmp.lt.s32.totalorder %s4448_s5, %s4448_s5 }
 0x4a0   :  { %p4455_p5 = por %p4454_p4, %p4453_p3 }
 0x4a2   :  { %p4456_p6 = pnand %p4455_p5, %p4449_p2 }
 0x4a4   :  { %4459 = shalt.err (!%p4456_p6)
}
 0x4a5   :  { %s4460_s16 = scalar_lea.hbm %s6768_s7, 32 }
 0x4a6   :  { %p4461_p7 = scmp.ne.s32.totalorder %s6768_s7, %s4460_s16  ;;  %p4464_p8 = scmp.lt.u32.totalorder %s4460_s16, %s6768_s7 }
 0x4a8   :  { %p4466_p9 = pnand %p4464_p8, %p4461_p7 }
 0x4aa   :  { %4469 = shalt.err (!%p4466_p9)
}
 0x4ab   :  { %3535 = dma.vmem_to_hbm [thread:$0]  %s3533_s4, 32, %s6768_s7, [#allocation5]   ;;  %3482 = vst [vmem:[#allocation7 + $0x150] sm:$0xff] %v3418_v37  ;;  %v2112_v26 = vsub.f32 %v1816_v49, %v2048_v46  ;;  %v2113_v25 = vsub.f32 %v1817_v12, %v2049_v7  ;;  %v2704_v61 = vmax.f32 %v2640_v47, 0.0  ;;  %3483 = vst [vmem:[#allocation7 + $0x158] sm:$0xff] %v3419_v31  ;;  %v2046_v0 = vmax.f32 %v6489_v58, %v5547_v5  ;;  %v6585_v50 = vpop.permute.xlu0 %1956  ;;  %v2284_v53 = vpop.permute.xlu1 %2283 }
 0x4ac   :  { %v2705_v55 = vmax.f32 %v2641_v42, 0.0  ;;  %v2047_v19 = vmax.f32 %v6489_v58, %v5549_v22  ;;  %v1814_v16 = vmin.f32 %v6481_v63, %v5556_v9  ;;  %v1815_v24 = vmin.f32 %v6481_v63, %v5558_v40  ;;  %v4340_v14 = vpop.eup %4339  ;;  %s4510_s7 = smov [#allocation7]  }
 0x4ad   :  { %v2176_v32 = vmax.f32 %v2112_v26, 0.0  ;;  %v2177_v48 = vmax.f32 %v2113_v25, 0.0  ;;  %v3166_v30 = vadd.f32 %v5590_v38, %v6511_v3  ;;  %v3167_v36 = vadd.f32 %v5592_v21, %v6511_v3  ;;  %v4342_v59 = vpop.eup %4341  ;;  %s3541_s22 = sshll.u32 %s4510_s7, 4  ;;  %s3542_s22 = int_to_ptr.vmem [resolvable:$true] %s3541_s22 }
 0x4ae   :  { %v2110_v2 = vsub.f32 %v1814_v16, %v2046_v0  ;;  %v2111_v58 = vsub.f32 %v1815_v24, %v2047_v19  ;;  %v2374_v62 = vmin.f32 %v2284_v53, %v5563_v4  ;;  %v3416_v63 = vmul.f32 %v4340_v14, %v6519_v15  ;;  %s4470_s23 = scalar_lea.vmem %s3542_s22, 8192  ;;  %p4475_p11 = scmp.lt.s32.totalorder %s3542_s22, %s3542_s22 }
 0x4af   :  { %v2768_v6 = vmul.f32 %v2704_v61, %v2176_v32  ;;  %v2769_v60 = vmul.f32 %v2705_v55, %v2177_v48  ;;  %v2484_v35 = vpop.permute.xlu1 %2483  ;;  %v6598_v23 = vpop.permute.xlu0 %3084  ;;  %v2375_v54 = vmin.f32 %v2284_v53, %v5570_v10  ;;  %v3417_v44 = vmul.f32 %v4342_v59, %v6521_v11  ;;  %p4471_p10 = scmp.ne.s32.totalorder %s3542_s22, %s4470_s23  ;;  %p4476_p12 = scmp.lt.s32.totalorder %s4470_s23, %s4470_s23 }
 0x4b0   :  { %v2574_v13 = vmax.f32 %v2484_v35, %v5565_v51  ;;  %v2575_v3 = vmax.f32 %v2484_v35, %v5567_v56  ;;  %3480 = vst [vmem:[#allocation7 + $0x140] sm:$0xff] %v3416_v63  ;;  %v2174_v28 = vmax.f32 %v2110_v2, 0.0  ;;  %v2175_v27 = vmax.f32 %v2111_v58, 0.0 }
 0x4b1   :  { %v3230_v39 = vsub.f32 %v3166_v30, %v2768_v6  ;;  %v3231_v45 = vsub.f32 %v3167_v36, %v2769_v60  ;;  %3481 = vst [vmem:[#allocation7 + $0x148] sm:$0xff] %v3417_v44  ;;  %v3164_v49 = vadd.f32 %v5590_v38, %v6452_v17  ;;  %v3165_v11 = vadd.f32 %v5592_v21, %v6452_v17  ;;  %p4477_p13 = por %p4476_p12, %p4475_p11 }
 0x4b2   :  { %v2638_v8 = vsub.f32 %v2374_v62, %v2574_v13  ;;  %v2639_v20 = vsub.f32 %v2375_v54, %v2575_v3  ;;  %v2580_v31 = vmax.f32 %v6525_v52, %v5565_v51  ;;  %v2581_v61 = vmax.f32 %v6525_v52, %v5567_v56 }
 0x4b3   :  { %v3294_v18 = vadd.f32 1e-06, %v3230_v39  ;;  %v3295_v29 = vadd.f32 1e-06, %v3231_v45  ;;  %v3080_v47 = vpop.permute.xlu1 %3079  ;;  %v6605_v42 = vpop.permute.xlu0 %2303  ;;  %v2380_v0 = vmin.f32 %v6513_v57, %v5563_v4  ;;  %v2381_v55 = vmin.f32 %v6513_v57, %v5570_v10  ;;  %p4478_p0 = pnand %p4477_p13, %p4471_p10 }
 0x4b4   :  { %v2702_v33 = vmax.f32 %v2638_v8, 0.0  ;;  %v2703_v15 = vmax.f32 %v2639_v20, 0.0  ;;  %v2051_v45 = vmax.f32 %v6585_v50, %v5549_v22  ;;  %v1818_v63 = vmin.f32 %v6563_v1, %v5556_v9 }
 0x4b5   :  { %4343 = vrcp.f32 %v3294_v18  ;;  %v2644_v48 = vsub.f32 %v2380_v0, %v2580_v31  ;;  %v2645_v30 = vsub.f32 %v2381_v55, %v2581_v61  ;;  %v1819_v54 = vmin.f32 %v6563_v1, %v5558_v40 }
 0x4b6   :  { %4345 = vrcp.f32 %v3295_v29  ;;  %v2766_v43 = vmul.f32 %v2702_v33, %v2174_v28  ;;  %v2767_v41 = vmul.f32 %v2703_v15, %v2175_v27  ;;  %v3170_v13 = vadd.f32 %v5590_v38, %v3080_v47 }
 0x4b7   :  { %v6611_v46 = vpop.permute.xlu0 %2503  ;;  %v1730_v7 = vpop.permute.xlu1 %1729  ;;  %v2708_v39 = vmax.f32 %v2644_v48, 0.0  ;;  %v3171_v44 = vadd.f32 %v5592_v21, %v3080_v47  ;;  %v2115_v20 = vsub.f32 %v1819_v54, %v2051_v45 }
 0x4b8   :  { %v3228_v37 = vsub.f32 %v3164_v49, %v2766_v43  ;;  %v3229_v12 = vsub.f32 %v3165_v11, %v2767_v41  ;;  %v1820_v16 = vmin.f32 %v1730_v7, %v5556_v9  ;;  %v1821_v52 = vmin.f32 %v1730_v7, %v5558_v40 }
 0x4ba   :  { %v3292_v26 = vadd.f32 1e-06, %v3228_v37  ;;  %v3293_v25 = vadd.f32 1e-06, %v3229_v12 }
 0x4bb   :  { %v1962_v19 = vpop.permute.xlu1 %1961  ;;  %v6625_v14 = vpop.permute.xlu0 %1734 }
 0x4bc   :  { %4347 = vrcp.f32 %v3292_v26  ;;  %v2052_v24 = vmax.f32 %v1962_v19, %v5547_v5  ;;  %v2053_v2 = vmax.f32 %v1962_v19, %v5549_v22 }
 0x4bd   :  { %4349 = vrcp.f32 %v3293_v25 }
 0x4be   :  { %v2116_v58 = vsub.f32 %v1820_v16, %v2052_v24  ;;  %v2117_v57 = vsub.f32 %v1821_v52, %v2053_v2  ;;  %v2584_v16 = vmax.f32 %v6611_v46, %v5565_v51  ;;  %v2585_v52 = vmax.f32 %v6611_v46, %v5567_v56 }
 0x4bf   :  { %v4344_v17 = vpop.eup %4343  ;;  %v2292_v35 = vpop.permute.xlu1 %2291 }
 0x4c0   :  { %v4346_v32 = vpop.eup %4345  ;;  %v3422_v53 = vmul.f32 %v4344_v17, %v2768_v6  ;;  %v2050_v6 = vmax.f32 %v6585_v50, %v5547_v5  ;;  %v2180_v62 = vmax.f32 %v2116_v58, 0.0  ;;  %v2181_v59 = vmax.f32 %v2117_v57, 0.0  ;;  %v6637_v29 = vpop.permute.xlu0 %1966 }
 0x4c1   :  { %v3423_v36 = vmul.f32 %v4346_v32, %v2769_v60  ;;  %v2709_v60 = vmax.f32 %v2645_v30, 0.0  ;;  %v2378_v11 = vmin.f32 %v2292_v35, %v5563_v4  ;;  %v2379_v1 = vmin.f32 %v2292_v35, %v5570_v10 }
 0x4c2   :  { %3486 = vst [vmem:[#allocation7 + $0x170] sm:$0xff] %v3422_v53  ;;  %v2772_v3 = vmul.f32 %v2708_v39, %v2180_v62  ;;  %v2114_v50 = vsub.f32 %v1818_v63, %v2050_v6  ;;  %v2179_v17 = vmax.f32 %v2115_v20, 0.0  ;;  %v3169_v32 = vadd.f32 %v5592_v21, %v6506_v34 }
 0x4c3   :  { %3487 = vst [vmem:[#allocation7 + $0x178] sm:$0xff] %v3423_v36  ;;  %v2773_v18 = vmul.f32 %v2709_v60, %v2181_v59  ;;  %v2492_v27 = vpop.permute.xlu1 %2491  ;;  %v2384_v58 = vmin.f32 %v6605_v42, %v5563_v4 }
 0x4c4   :  { %v3234_v28 = vsub.f32 %v3170_v13, %v2772_v3  ;;  %v2578_v7 = vmax.f32 %v2492_v27, %v5565_v51  ;;  %v2579_v47 = vmax.f32 %v2492_v27, %v5567_v56  ;;  %v6643_v61 = vpop.permute.xlu0 %3094  ;;  %v2178_v0 = vmax.f32 %v2114_v50, 0.0 }
 0x4c5   :  { %v3235_v49 = vsub.f32 %v3171_v44, %v2773_v18  ;;  %v2648_v45 = vsub.f32 %v2384_v58, %v2584_v16 }
 0x4c6   :  { %v4348_v8 = vpop.eup %4347  ;;  %v3298_v12 = vadd.f32 1e-06, %v3234_v28  ;;  %v2642_v26 = vsub.f32 %v2378_v11, %v2578_v7  ;;  %v2643_v25 = vsub.f32 %v2379_v1, %v2579_v47  ;;  %v1823_v11 = vmin.f32 %v6625_v14, %v5558_v40 }
 0x4c7   :  { %v4350_v33 = vpop.eup %4349  ;;  %v3420_v15 = vmul.f32 %v4348_v8, %v2766_v43  ;;  %v3299_v31 = vadd.f32 1e-06, %v3235_v49  ;;  %v3090_v43 = vpop.permute.xlu1 %3089  ;;  %v2712_v20 = vmax.f32 %v2648_v45, 0.0  ;;  %v1822_v49 = vmin.f32 %v6625_v14, %v5556_v9 }
 0x4c8   :  { %v3421_v37 = vmul.f32 %v4350_v33, %v2767_v41  ;;  %4351 = vrcp.f32 %v3298_v12  ;;  %v2706_v55 = vmax.f32 %v2642_v26, 0.0  ;;  %v2707_v19 = vmax.f32 %v2643_v25, 0.0  ;;  %v6653_v2 = vpop.permute.xlu0 %2311 }
 0x4c9   :  { %3484 = vst [vmem:[#allocation7 + $0x160] sm:$0xff] %v3420_v15  ;;  %4353 = vrcp.f32 %v3299_v31  ;;  %v3168_v41 = vadd.f32 %v5590_v38, %v6506_v34  ;;  %v2385_v34 = vmin.f32 %v6605_v42, %v5570_v10  ;;  %v3174_v1 = vadd.f32 %v5590_v38, %v3090_v43 }
 0x4ca   :  { %3485 = vst [vmem:[#allocation7 + $0x168] sm:$0xff] %v3421_v37  ;;  %v2770_v48 = vmul.f32 %v2706_v55, %v2178_v0  ;;  %v2771_v53 = vmul.f32 %v2707_v19, %v2179_v17  ;;  %v3175_v37 = vadd.f32 %v5592_v21, %v3090_v43  ;;  %v3172_v45 = vadd.f32 %v5590_v38, %v6598_v23 }
 0x4cb   :  { %v1740_v36 = vpop.permute.xlu1 %1739  ;;  %v2649_v60 = vsub.f32 %v2385_v34, %v2585_v52 }
 0x4cc   :  { %v3232_v24 = vsub.f32 %v3168_v41, %v2770_v48  ;;  %v3233_v30 = vsub.f32 %v3169_v32, %v2771_v53  ;;  %v1824_v46 = vmin.f32 %v1740_v36, %v5556_v9  ;;  %v1825_v54 = vmin.f32 %v1740_v36, %v5558_v40  ;;  %v6663_v8 = vpop.permute.xlu0 %2511 }
 0x4cd   :  { %v2713_v27 = vmax.f32 %v2649_v60, 0.0 }
 0x4ce   :  { %v3296_v57 = vadd.f32 1e-06, %v3232_v24  ;;  %v3297_v39 = vadd.f32 1e-06, %v3233_v30 }
 0x4cf   :  { %v1972_v62 = vpop.permute.xlu1 %1971 }
 0x4d0   :  { %4355 = vrcp.f32 %v3296_v57  ;;  %v2056_v13 = vmax.f32 %v1972_v62, %v5547_v5  ;;  %v2057_v44 = vmax.f32 %v1972_v62, %v5549_v22  ;;  %v1745_v31 = vpop.permute.xlu0 %1744 }
 0x4d1   :  { %4357 = vrcp.f32 %v3297_v39 }
 0x4d2   :  { %v4352_v6 = vpop.eup %4351  ;;  %v2120_v42 = vsub.f32 %v1824_v46, %v2056_v13  ;;  %v2121_v50 = vsub.f32 %v1825_v54, %v2057_v44 }
 0x4d3   :  { %v4354_v35 = vpop.eup %4353  ;;  %v3426_v59 = vmul.f32 %v4352_v6, %v2772_v3  ;;  %v2054_v3 = vmax.f32 %v6637_v29, %v5547_v5  ;;  %v2300_v28 = vpop.permute.xlu1 %2299 }
 0x4d4   :  { %v3427_v63 = vmul.f32 %v4354_v35, %v2773_v18  ;;  %v2055_v18 = vmax.f32 %v6637_v29, %v5549_v22  ;;  %v2184_v33 = vmax.f32 %v2120_v42, 0.0  ;;  %v2185_v15 = vmax.f32 %v2121_v50, 0.0 }
 0x4d5   :  { %3490 = vst [vmem:[#allocation7 + $0x190] sm:$0xff] %v3426_v59  ;;  %v2118_v47 = vsub.f32 %v1822_v49, %v2054_v3  ;;  %v2382_v55 = vmin.f32 %v2300_v28, %v5563_v4  ;;  %v2383_v32 = vmin.f32 %v2300_v28, %v5570_v10 }
 0x4d6   :  { %3491 = vst [vmem:[#allocation7 + $0x198] sm:$0xff] %v3427_v63  ;;  %v2776_v12 = vmul.f32 %v2712_v20, %v2184_v33  ;;  %v2777_v7 = vmul.f32 %v2713_v27, %v2185_v15  ;;  %v2119_v0 = vsub.f32 %v1823_v11, %v2055_v18  ;;  %v1826_v27 = vmin.f32 %v1745_v31, %v5556_v9 }
 0x4d7   :  { %v2500_v26 = vpop.permute.xlu1 %2499  ;;  %v2182_v58 = vmax.f32 %v2118_v47, 0.0  ;;  %v1827_v18 = vmin.f32 %v1745_v31, %v5558_v40 }
 0x4d8   :  { %v3238_v29 = vsub.f32 %v3174_v1, %v2776_v12  ;;  %v3239_v17 = vsub.f32 %v3175_v37, %v2777_v7  ;;  %v2582_v14 = vmax.f32 %v2500_v26, %v5565_v51  ;;  %v2583_v16 = vmax.f32 %v2500_v26, %v5567_v56 }
 0x4d9   :  { %v2183_v39 = vmax.f32 %v2119_v0, 0.0 }
 0x4da   :  { %v4356_v25 = vpop.eup %4355  ;;  %v3302_v24 = vadd.f32 1e-06, %v3238_v29  ;;  %v3303_v30 = vadd.f32 1e-06, %v3239_v17  ;;  %v2646_v36 = vsub.f32 %v2382_v55, %v2582_v14  ;;  %v2647_v52 = vsub.f32 %v2383_v32, %v2583_v16 }
 0x4db   :  { %v4358_v19 = vpop.eup %4357  ;;  %v3424_v41 = vmul.f32 %v4356_v25, %v2770_v48  ;;  %v6679_v57 = vpop.permute.xlu1 %1749  ;;  %v3176_v32 = vadd.f32 %v5590_v38, %v6643_v61  ;;  %v3177_v16 = vadd.f32 %v5592_v21, %v6643_v61  ;;  %v2589_v61 = vmax.f32 %v6663_v8, %v5567_v56 }
 0x4dc   :  { %v3425_v43 = vmul.f32 %v4358_v19, %v2771_v53  ;;  %4359 = vrcp.f32 %v3302_v24  ;;  %v1977_v48 = vpop.permute.xlu0 %1976  ;;  %v2710_v34 = vmax.f32 %v2646_v36, 0.0  ;;  %v2711_v6 = vmax.f32 %v2647_v52, 0.0 }
 0x4dd   :  { %3488 = vst [vmem:[#allocation7 + $0x180] sm:$0xff] %v3424_v41  ;;  %4361 = vrcp.f32 %v3303_v30  ;;  %v3173_v53 = vadd.f32 %v5592_v21, %v6598_v23  ;;  %v2058_v50 = vmax.f32 %v1977_v48, %v5547_v5  ;;  %v2059_v20 = vmax.f32 %v1977_v48, %v5549_v22 }
 0x4de   :  { %3489 = vst [vmem:[#allocation7 + $0x188] sm:$0xff] %v3425_v43  ;;  %v2774_v62 = vmul.f32 %v2710_v34, %v2182_v58  ;;  %v2775_v35 = vmul.f32 %v2711_v6, %v2183_v39  ;;  %v2588_v34 = vmax.f32 %v6663_v8, %v5565_v51  ;;  %v1828_v6 = vmin.f32 %v6679_v57, %v5556_v9 }
 0x4df   :  { %v1982_v60 = vpop.permute.xlu1 %1981  ;;  %v2122_v15 = vsub.f32 %v1826_v27, %v2058_v50  ;;  %v2123_v49 = vsub.f32 %v1827_v18, %v2059_v20 }
 0x4e0   :  { %v3236_v59 = vsub.f32 %v3172_v45, %v2774_v62  ;;  %v3237_v46 = vsub.f32 %v3173_v53, %v2775_v35  ;;  %v6685_v13 = vpop.permute.xlu0 %2319  ;;  %v2060_v36 = vmax.f32 %v1982_v60, %v5547_v5  ;;  %v2061_v52 = vmax.f32 %v1982_v60, %v5549_v22 }
 0x4e1   :  { %v2186_v0 = vmax.f32 %v2122_v15, 0.0  ;;  %v2187_v31 = vmax.f32 %v2123_v49, 0.0  ;;  %v1829_v45 = vmin.f32 %v6679_v57, %v5558_v40  ;;  %v2388_v60 = vmin.f32 %v6653_v2, %v5563_v4 }
 0x4e2   :  { %v3300_v63 = vadd.f32 1e-06, %v3236_v59  ;;  %v3301_v54 = vadd.f32 1e-06, %v3237_v46  ;;  %v2389_v59 = vmin.f32 %v6653_v2, %v5570_v10  ;;  %v2393_v2 = vmin.f32 %v6685_v13, %v5570_v10 }
 0x4e3   :  { %v2308_v44 = vpop.permute.xlu1 %2307  ;;  %v2125_v8 = vsub.f32 %v1829_v45, %v2061_v52  ;;  %v2652_v50 = vsub.f32 %v2388_v60, %v2588_v34 }
 0x4e4   :  { %4363 = vrcp.f32 %v3300_v63  ;;  %v6691_v33 = vpop.permute.xlu0 %2519  ;;  %v2386_v1 = vmin.f32 %v2308_v44, %v5563_v4  ;;  %v2387_v37 = vmin.f32 %v2308_v44, %v5570_v10  ;;  %v2124_v63 = vsub.f32 %v1828_v6, %v2060_v36 }
 0x4e5   :  { %4365 = vrcp.f32 %v3301_v54  ;;  %v2592_v46 = vmax.f32 %v6691_v33, %v5565_v51  ;;  %v2653_v20 = vsub.f32 %v2389_v59, %v2589_v61 }
 0x4e6   :  { %v4360_v42 = vpop.eup %4359  ;;  %v2188_v49 = vmax.f32 %v2124_v63, 0.0 }
 0x4e7   :  { %v4362_v3 = vpop.eup %4361  ;;  %v3430_v28 = vmul.f32 %v4360_v42, %v2776_v12  ;;  %v2508_v11 = vpop.permute.xlu1 %2507 }
 0x4e8   :  { %v3431_v23 = vmul.f32 %v4362_v3, %v2777_v7  ;;  %v2586_v47 = vmax.f32 %v2508_v11, %v5565_v51  ;;  %v2587_v12 = vmax.f32 %v2508_v11, %v5567_v56  ;;  %v1755_v29 = vpop.permute.xlu0 %1754  ;;  %v2392_v3 = vmin.f32 %v6685_v13, %v5563_v4 }
 0x4e9   :  { %3494 = vst [vmem:[#allocation7 + $0x1b0] sm:$0xff] %v3430_v28  ;;  %v1830_v28 = vmin.f32 %v1755_v29, %v5556_v9  ;;  %v2189_v11 = vmax.f32 %v2125_v8, 0.0 }
 0x4ea   :  { %3495 = vst [vmem:[#allocation7 + $0x1b8] sm:$0xff] %v3431_v23  ;;  %v2650_v7 = vsub.f32 %v2386_v1, %v2586_v47  ;;  %v2651_v26 = vsub.f32 %v2387_v37, %v2587_v12  ;;  %v1831_v23 = vmin.f32 %v1755_v29, %v5558_v40  ;;  %v2656_v15 = vsub.f32 %v2392_v3, %v2592_v46 }
 0x4eb   :  { %v1760_v19 = vpop.permute.xlu1 %1759 }
 0x4ec   :  { %v2714_v17 = vmax.f32 %v2650_v7, 0.0  ;;  %v2715_v55 = vmax.f32 %v2651_v26, 0.0  ;;  %v1987_v53 = vpop.permute.xlu0 %1986  ;;  %v1832_v27 = vmin.f32 %v1760_v19, %v5556_v9  ;;  %v1833_v47 = vmin.f32 %v1760_v19, %v5558_v40 }
 0x4ed   :  { %v2062_v54 = vmax.f32 %v1987_v53, %v5547_v5  ;;  %v2063_v44 = vmax.f32 %v1987_v53, %v5549_v22 }
 0x4ee   :  { %v4364_v25 = vpop.eup %4363  ;;  %v6701_v24 = vmul.f32 %v2714_v17, %v2186_v0  ;;  %v6703_v30 = vmul.f32 %v2715_v55, %v2187_v31  ;;  %v2717_v0 = vmax.f32 %v2653_v20, 0.0  ;;  %v2720_v17 = vmax.f32 %v2656_v15, 0.0 }
 0x4ef   :  { %v4366_v41 = vpop.eup %4365  ;;  %v3428_v14 = vmul.f32 %v4364_v25, %v2774_v62  ;;  %v1992_v48 = vpop.permute.xlu1 %1991  ;;  %v2126_v1 = vsub.f32 %v1830_v28, %v2062_v54  ;;  %v2127_v37 = vsub.f32 %v1831_v23, %v2063_v44  ;;  %v2716_v25 = vmax.f32 %v2652_v50, 0.0 }
 0x4f0   :  { %v3429_v43 = vmul.f32 %v4366_v41, %v2775_v35  ;;  %v3240_v58 = vsub.f32 %v3176_v32, %v6701_v24  ;;  %v3241_v39 = vsub.f32 %v3177_v16, %v6703_v30  ;;  %v2064_v57 = vmax.f32 %v1992_v48, %v5547_v5 }
 0x4f1   :  { %3492 = vst [vmem:[#allocation7 + $0x1a0] sm:$0xff] %v3428_v14  ;;  %v2065_v18 = vmax.f32 %v1992_v48, %v5549_v22  ;;  %v2593_v5 = vmax.f32 %v6691_v33, %v5567_v56  ;;  %v3105_v33 = vpop.permute.xlu0 %3104  ;;  %v2190_v32 = vmax.f32 %v2126_v1, 0.0  ;;  %v2191_v40 = vmax.f32 %v2127_v37, 0.0 }
 0x4f2   :  { %3493 = vst [vmem:[#allocation7 + $0x1a8] sm:$0xff] %v3429_v43  ;;  %v3304_v62 = vadd.f32 1e-06, %v3240_v58  ;;  %v3305_v35 = vadd.f32 1e-06, %v3241_v39  ;;  %v2128_v12 = vsub.f32 %v1832_v27, %v2064_v57  ;;  %v2780_v19 = vmul.f32 %v2716_v25, %v2188_v49 }
 0x4f3   :  { %v2316_v42 = vpop.permute.xlu1 %2315  ;;  %v2129_v31 = vsub.f32 %v1833_v47, %v2065_v18  ;;  %v2657_v29 = vsub.f32 %v2393_v2, %v2593_v5  ;;  %v2781_v14 = vmul.f32 %v2717_v0, %v2189_v11  ;;  %v3181_v61 = vadd.f32 %v5592_v21, %v3105_v33 }
 0x4f4   :  { %4367 = vrcp.f32 %v3304_v62  ;;  %v2390_v7 = vmin.f32 %v2316_v42, %v5563_v4  ;;  %v2391_v26 = vmin.f32 %v2316_v42, %v5570_v10  ;;  %v3180_v4 = vadd.f32 %v5590_v38, %v3105_v33 }
 0x4f5   :  { %4369 = vrcp.f32 %v3305_v35  ;;  %v2192_v10 = vmax.f32 %v2128_v12, 0.0  ;;  %v2193_v58 = vmax.f32 %v2129_v31, 0.0  ;;  %v2721_v53 = vmax.f32 %v2657_v29, 0.0 }
 0x4f7   :  { %v2516_v13 = vpop.permute.xlu1 %2515  ;;  %v2785_v8 = vmul.f32 %v2721_v53, %v2193_v58 }
 0x4f8   :  { %v2590_v9 = vmax.f32 %v2516_v13, %v5565_v51  ;;  %v2591_v22 = vmax.f32 %v2516_v13, %v5567_v56 }
 0x4fa   :  { %v2654_v55 = vsub.f32 %v2390_v7, %v2590_v9  ;;  %v2655_v41 = vsub.f32 %v2391_v26, %v2591_v22 }
 0x4fb   :  { %v3100_v36 = vpop.permute.xlu1 %3099 }
 0x4fc   :  { %v2718_v43 = vmax.f32 %v2654_v55, 0.0  ;;  %v2719_v51 = vmax.f32 %v2655_v41, 0.0  ;;  %v3178_v39 = vadd.f32 %v5590_v38, %v3100_v36  ;;  %v3179_v48 = vadd.f32 %v5592_v21, %v3100_v36 }
 0x4fe   :  { %v4368_v16 = vpop.eup %4367  ;;  %v2782_v6 = vmul.f32 %v2718_v43, %v2190_v32  ;;  %v2783_v45 = vmul.f32 %v2719_v51, %v2191_v40  ;;  %v3242_v62 = vsub.f32 %v3178_v39, %v2780_v19  ;;  %v3243_v35 = vsub.f32 %v3179_v48, %v2781_v14 }
 0x4ff   :  { %v4370_v56 = vpop.eup %4369  ;;  %v3432_v52 = vmul.f32 %v4368_v16, %v6701_v24  ;;  %v3110_v46 = vpop.permute.xlu1 %3109  ;;  %v2784_v24 = vmul.f32 %v2720_v17, %v2192_v10 }
 0x500   :  { %v3433_v34 = vmul.f32 %v4370_v56, %v6703_v30  ;;  %v3244_v60 = vsub.f32 %v3180_v4, %v2782_v6  ;;  %v3245_v59 = vsub.f32 %v3181_v61, %v2783_v45  ;;  %v3306_v63 = vadd.f32 1e-06, %v3242_v62 }
 0x501   :  { %3496 = vst [vmem:[#allocation7 + $0x1c0] sm:$0xff] %v3432_v52  ;;  %v3182_v54 = vadd.f32 %v5590_v38, %v3110_v46  ;;  %v3183_v44 = vadd.f32 %v5592_v21, %v3110_v46  ;;  %v3307_v42 = vadd.f32 1e-06, %v3243_v35 }
 0x502   :  { %3497 = vst [vmem:[#allocation7 + $0x1c8] sm:$0xff] %v3433_v34  ;;  %v3308_v30 = vadd.f32 1e-06, %v3244_v60  ;;  %v3309_v57 = vadd.f32 1e-06, %v3245_v59  ;;  %4371 = vrcp.f32 %v3306_v63 }
 0x503   :  { %v3246_v50 = vsub.f32 %v3182_v54, %v2784_v24  ;;  %v3247_v20 = vsub.f32 %v3183_v44, %v2785_v8 }
 0x504   :  { %4373 = vrcp.f32 %v3308_v30 }
 0x505   :  { %4375 = vrcp.f32 %v3309_v57  ;;  %v3310_v3 = vadd.f32 1e-06, %v3246_v50  ;;  %v3311_v2 = vadd.f32 1e-06, %v3247_v20 }
 0x506   :  { %4377 = vrcp.f32 %v3307_v42 }
 0x507   :  { %4379 = vrcp.f32 %v3310_v3 }
 0x508   :  { %4381 = vrcp.f32 %v3311_v2 }
 0x50c   :  { %v4372_v28 = vpop.eup %4371 }
 0x50d   :  { %v3434_v27 = vmul.f32 %v4372_v28, %v2780_v19 }
 0x50e   :  { %v4374_v23 = vpop.eup %4373 }
 0x50f   :  { %v4376_v18 = vpop.eup %4375  ;;  %v3436_v38 = vmul.f32 %v4374_v23, %v2782_v6  ;;  %3498 = vst [vmem:[#allocation7 + $0x1d0] sm:$0xff] %v3434_v27 }
 0x510   :  { %v4378_v21 = vpop.eup %4377  ;;  %v3437_v5 = vmul.f32 %v4376_v18, %v2783_v45 }
 0x511   :  { %v4380_v15 = vpop.eup %4379  ;;  %3500 = vst [vmem:[#allocation7 + $0x1e0] sm:$0xff] %v3436_v38  ;;  %v3435_v49 = vmul.f32 %v4378_v21, %v2781_v14 }
 0x512   :  { %v4382_v11 = vpop.eup %4381  ;;  %3501 = vst [vmem:[#allocation7 + $0x1e8] sm:$0xff] %v3437_v5  ;;  %v3438_v1 = vmul.f32 %v4380_v15, %v2784_v24 }
 0x513   :  { %3499 = vst [vmem:[#allocation7 + $0x1d8] sm:$0xff] %v3435_v49  ;;  %v3439_v37 = vmul.f32 %v4382_v11, %v2785_v8 }
 0x514   :  { %3502 = vst [vmem:[#allocation7 + $0x1f0] sm:$0xff] %v3438_v1 }
 0x515   :  { %3503 = vst [vmem:[#allocation7 + $0x1f8] sm:$0xff] %v3439_v37 }
 0x516   :  { %4481 = shalt.err (!%p4478_p0)
}
 0x517   :  { %s4482_s26 = scalar_lea.hbm %s6769_s8, 8192 }
 0x518   :  { %p4483_p1 = scmp.ne.s32.totalorder %s6769_s8, %s4482_s26  ;;  %p4486_p2 = scmp.lt.u32.totalorder %s4482_s26, %s6769_s8 }
 0x51a   :  { %p4488_p3 = pnand %p4486_p2, %p4483_p1 }
 0x51c   :  { %4491 = shalt.err (!%p4488_p3)
}
 0x51d   :  { %s4511_s30 = smov 256   ;;  %s4512_s9 = smov 16  }
 0x51e   :  { %3547 = dma.vmem_to_hbm [thread:$0]  %s3542_s22, 8192, %s6769_s8, [#allocation8], %s4511_s30, %s4511_s30, %s4512_s9  }
 0x51f   :  { %4492 = dma.done.wait [#allocation3], 4096  }
 0x520   :  { %4493 = vsyncadd [#allocation3], 4294963200 }
 0x521   :  { %4494 = dma.done.wait [#allocation5], 64  }
 0x522   :  { %4495 = vsyncadd [#allocation5], 4294967232 }
 0x523   :  { %4496 = dma.done.wait [#allocation8], 8192  }
 0x524   :  { %4497 = vsyncadd [#allocation8], 4294959104 }
 0x525   :  { %3560 = vsyncpa [#allocation3], 1 }
 0x526   :  { %3561 = vsyncpa [#allocation5], 1 }
 0x527   :  { %3562 = vsyncpa [#allocation8], 1 }

</bundles_post_ra>
